<compile_context>
chip_gen: v7x
topology: tpu7x:2x2x1
jax: 0.10.0
libtpu: 0.0.40
codegen_flags: <defaults>
</compile_context>

<pallas_src>
import functools
import math

import jax
import jax.numpy as jnp
from jax.experimental import pallas as pl
from jax.experimental.pallas import tpu as pltpu

BN_EPS = 1e-5
_INV_SQRT2 = 1.0 / math.sqrt(2.0)
_VMEM_LIMIT = 32 * 1024 * 1024  # safe on v5e/v6e/v7x


def _largest_divisor(n, limit):
    """Largest divisor of n that is <= limit (always >= 1)."""
    limit = max(1, min(n, limit))
    best = 1
    for d in range(1, limit + 1):
        if n % d == 0:
            best = d
    return best


# --------------------- Pass 1: conv (bf16 MXU) + BN partial stats ------------

def _conv_stats_kernel(*refs, plan, n_x, tb, wo, cout):
    """One grid step = `tb` output rows.

    refs = (x_refs..., w_ref, y_ref, s1_ref, s2_ref)
      x_refs[k]: (tb, width_k, 3*Cin) bf16 -- kh-concatenated input rows
      w_ref    : (3, 3*Cin, Cout)     bf16 -- one (3*Cin, Cout) slab per kw
      y_ref    : (tb, Wo, Cout)       f32  -- conv output tile
      s1/s2    : (1, 1, Cout)         f32  -- per-tile sum / sum-of-squares
    """
    x_refs = refs[:n_x]
    w_ref = refs[n_x]
    y_ref = refs[n_x + 1]
    s1_ref = refs[n_x + 2]
    s2_ref = refs[n_x + 3]

    s1 = jnp.zeros((1, cout), jnp.float32)
    s2 = jnp.zeros((1, cout), jnp.float32)
    for r in range(tb):                       # static unroll over rows in tile
        acc = None
        for kw, (ri, off) in enumerate(plan):
            xt = x_refs[ri][r, off:off + wo, :]        # (Wo, 3*Cin) bf16
            d = jnp.dot(xt, w_ref[kw], preferred_element_type=jnp.float32)
            acc = d if acc is None else acc + d
        y_ref[r] = acc                                  # (Wo, Cout) f32
        s1 = s1 + jnp.sum(acc, axis=0, keepdims=True)
        s2 = s2 + jnp.sum(acc * acc, axis=0, keepdims=True)
    s1_ref[0] = s1
    s2_ref[0] = s2


def _conv_pass(x_bf16, w_taps, stride):
    """3x3 conv, pad=1, no bias. Returns (y (NR, Wo, Cout) f32, s1, s2, dims)."""
    n, h, w, cin = x_bf16.shape
    c3 = 3 * cin
    cout = w_taps.shape[-1]
    ho = (h - 1) // stride + 1
    wo = (w - 1) // stride + 1
    nr = n * ho
    wp = w + 2

    # -- glue: pad + gather the 3 kh rows per output row, concat on channels --
    xp = jnp.pad(x_bf16, ((0, 0), (1, 1), (1, 1), (0, 0)))
    row_idx = stride * jnp.arange(ho)[:, None] + jnp.arange(3)[None, :]  # (Ho,3)
    xg = xp[:, row_idx]                               # (N, Ho, 3, Wp, C)
    xg = jnp.transpose(xg, (0, 1, 3, 2, 4))           # (N, Ho, Wp, 3, C)
    xg = xg.reshape(nr, wp, c3)                       # (N*Ho, Wp, 3*C)

    if stride == 1:
        x_arrays = [xg]
        plan = ((0, 0), (0, 1), (0, 2))               # cols ow + kw
    else:
        x_even = xg[:, 0::2, :]                       # cols 0,2,4,...
        x_odd = xg[:, 1::2, :]                        # cols 1,3,5,...
        x_arrays = [x_even, x_odd]
        plan = ((0, 0), (1, 0), (0, 1))               # cols 2*ow, 2*ow+1, 2*ow+2

    tb = _largest_divisor(nr, min(8, max(1, 256 // max(wo, 1))))
    n_tiles = nr // tb
    n_x = len(x_arrays)

    kernel = functools.partial(
        _conv_stats_kernel, plan=plan, n_x=n_x, tb=tb, wo=wo, cout=cout)

    in_specs = [
        pl.BlockSpec((tb, xa.shape[1], c3), lambda i: (i, 0, 0))
        for xa in x_arrays
    ]
    # Weights stay VMEM-resident across the whole grid (constant index_map).
    in_specs.append(pl.BlockSpec((3, c3, cout), lambda i: (0, 0, 0)))

    out_shape = (
        jax.ShapeDtypeStruct((nr, wo, cout), jnp.float32),      # conv output
        jax.ShapeDtypeStruct((n_tiles, 1, cout), jnp.float32),  # per-tile sum
        jax.ShapeDtypeStruct((n_tiles, 1, cout), jnp.float32),  # per-tile sumsq
    )
    out_specs = (
        pl.BlockSpec((tb, wo, cout), lambda i: (i, 0, 0)),
        pl.BlockSpec((1, 1, cout), lambda i: (i, 0, 0)),
        pl.BlockSpec((1, 1, cout), lambda i: (i, 0, 0)),
    )

    y, s1, s2 = pl.pallas_call(
        kernel,
        grid=(n_tiles,),
        in_specs=in_specs,
        out_specs=out_specs,
        out_shape=out_shape,
        compiler_params=pltpu.CompilerParams(
            dimension_semantics=("parallel",),
            vmem_limit_bytes=_VMEM_LIMIT,
        ),
    )(*x_arrays, w_taps)
    return y, s1, s2, (n, ho, wo, cout)


# --------------------- Pass 2: BN normalize + exact erf GELU -----------------

def _bn_gelu_kernel(y_ref, scale_ref, shift_ref, o_ref):
    z = y_ref[...] * scale_ref[...] + shift_ref[...]
    o_ref[...] = 0.5 * z * (1.0 + jax.lax.erf(z * _INV_SQRT2))


def _bn_gelu_pass(y, scale, shift):
    nr, wo, cout = y.shape
    t2 = _largest_divisor(nr, max(1, 2048 // max(wo, 1)))
    n_tiles = nr // t2
    return pl.pallas_call(
        _bn_gelu_kernel,
        grid=(n_tiles,),
        in_specs=[
            pl.BlockSpec((t2, wo, cout), lambda i: (i, 0, 0)),
            pl.BlockSpec((1, cout), lambda i: (0, 0)),   # resident
            pl.BlockSpec((1, cout), lambda i: (0, 0)),   # resident
        ],
        out_specs=pl.BlockSpec((t2, wo, cout), lambda i: (i, 0, 0)),
        out_shape=jax.ShapeDtypeStruct((nr, wo, cout), jnp.float32),
        compiler_params=pltpu.CompilerParams(
            dimension_semantics=("parallel",),
            vmem_limit_bytes=_VMEM_LIMIT,
        ),
    )(y, scale, shift)


# --------------------------------- Layer / module ----------------------------

@functools.partial(jax.jit, static_argnames=("stride",))
def conv_bn_gelu(x_nhwc, w_taps, gamma, beta, *, stride):
    """One Conv2d(3x3, pad=1, no bias) + BatchNorm2d(train) + GELU block."""
    x_bf16 = x_nhwc.astype(jnp.bfloat16)
    y, s1, s2, (n, ho, wo, cout) = _conv_pass(x_bf16, w_taps, stride)
    m = n * ho * wo

    # Tiny cross-tile BN reduction (plain JAX); fold into scale/shift.
    total = jnp.sum(s1, axis=(0, 1))                       # (Cout,)
    total_sq = jnp.sum(s2, axis=(0, 1))
    mean = total / m
    var = jnp.maximum(total_sq / m - mean * mean, 0.0)     # biased variance
    scale = gamma * jax.lax.rsqrt(var + BN_EPS)
    shift = beta - mean * scale

    out = _bn_gelu_pass(y, scale[None, :], shift[None, :])
    return out.reshape(n, ho, wo, cout)


def init_conv_sequence_params(key, embed_dim):
    """Kaiming-normal (fan_out, relu) conv weights; BN gamma=1, beta=0."""
    params = []
    strides = (2, 1, 2, 1)
    fan_out = embed_dim * 3 * 3
    std = math.sqrt(2.0 / fan_out)
    for s in strides:
        key, wk = jax.random.split(key)
        # PyTorch Conv2d weight layout: (Cout, Cin, kH, kW)
        w_oihw = jax.random.normal(wk, (embed_dim, embed_dim, 3, 3), jnp.float32) * std
        # (Cout, Cin, kh, kw) -> (kw, kh, Cin, Cout) -> (3, 3*Cin, Cout), bf16 MXU
        w_taps = jnp.transpose(w_oihw, (3, 2, 1, 0)).reshape(3, 3 * embed_dim, embed_dim)
        params.append({
            "w_oihw": w_oihw,
            "w_taps": w_taps.astype(jnp.bfloat16),
            "gamma": jnp.ones((embed_dim,), jnp.float32),
            "beta": jnp.zeros((embed_dim,), jnp.float32),
            "stride": s,
        })
    return params


def conv_sequence(x_nchw, params):
    """Forward of ConvSequence.  (N, C, H, W) -> (N, C, H//4, W//4)."""
    x = jnp.transpose(x_nchw, (0, 2, 3, 1))   # NCHW -> NHWC (channels on lanes)
    for p in params:
        x = conv_bn_gelu(x, p["w_taps"], p["gamma"], p["beta"], stride=p["stride"])
    return jnp.transpose(x, (0, 3, 1, 2))     # NHWC -> NCHW


def conv_sequence_reference(x_nchw, params):
    """Pure-JAX f32 reference (lax conv + train-mode BN + exact GELU)."""
    x = jnp.transpose(x_nchw, (0, 2, 3, 1))
    for p in params:
        s = p["stride"]
        w_hwio = jnp.transpose(p["w_oihw"], (2, 3, 1, 0))
        y = jax.lax.conv_general_dilated(
            x, w_hwio, window_strides=(s, s), padding=((1, 1), (1, 1)),
            dimension_numbers=("NHWC", "HWIO", "NHWC"))
        mean = jnp.mean(y, axis=(0, 1, 2))
        var = jnp.mean(jnp.square(y - mean), axis=(0, 1, 2))
        z = (y - mean) * jax.lax.rsqrt(var + BN_EPS) * p["gamma"] + p["beta"]
        x = 0.5 * z * (1.0 + jax.lax.erf(z * _INV_SQRT2))
    return jnp.transpose(x, (0, 3, 1, 2))


if __name__ == "__main__":
    key = jax.random.PRNGKey(0)
    embed_dim = 128            # lane-aligned small config (SAM2 default is 256)
    batch, spatial = 2, 16

    k_x, k_p = jax.random.split(key)
    x = jax.random.normal(k_x, (batch, embed_dim, spatial, spatial), jnp.float32)
    params = init_conv_sequence_params(k_p, embed_dim)

    out = jax.block_until_ready(conv_sequence(x, params))
    assert out.shape == (batch, embed_dim, spatial // 4, spatial // 4), out.shape
    assert bool(jnp.all(jnp.isfinite(out)))

    # Loose-tolerance check vs an f32 reference (kernel matmuls run in bf16).
    ref = jax.block_until_ready(conv_sequence_reference(x, params))
    assert bool(jnp.allclose(out, ref, atol=1e-1, rtol=1e-1)), \
        float(jnp.max(jnp.abs(out - ref)))

    print("KERNEL_OK")
</pallas_src>

<mosaic_0001>
module attributes {stable_mosaic.version = 11 : i64} {
  func.func @_conv_stats_kernel(%arg0: i32, %arg1: memref<8x9x384xbf16, #tpu.memory_space<vmem>>, %arg2: memref<8x9x384xbf16, #tpu.memory_space<vmem>>, %arg3: memref<3x384x128xbf16, #tpu.memory_space<vmem>>, %arg4: memref<8x8x128xf32, #tpu.memory_space<vmem>>, %arg5: memref<1x1x128xf32, #tpu.memory_space<vmem>>, %arg6: memref<1x1x128xf32, #tpu.memory_space<vmem>>) attributes {dimension_semantics = [#tpu.dimension_semantics<parallel>], iteration_bounds = array<i64: 2>, scalar_prefetch = 0 : i64, scratch_operands = 0 : i64, tpu.core_type = #tpu.core_type<tc>, window_params = [{transform_indices = @transform_0, window_bounds = array<i64: 8, 9, 384>}, {transform_indices = @transform_1, window_bounds = array<i64: 8, 9, 384>}, {pipeline_mode = #tpu.pipeline_mode<synchronous>, transform_indices = @transform_2, window_bounds = array<i64: 3, 384, 128>}, {transform_indices = @transform_3, window_bounds = array<i64: 8, 8, 128>}, {transform_indices = @transform_4, window_bounds = array<i64: 1, 1, 128>}, {transform_indices = @transform_5, window_bounds = array<i64: 1, 1, 128>}]} {
    %cst = arith.constant 0.000000e+00 : f32
    %0 = vector.broadcast %cst : f32 to vector<1x128xf32>
    %cst_0 = arith.constant 0.000000e+00 : f32
    %1 = vector.broadcast %cst_0 : f32 to vector<1x128xf32>
    %c0 = arith.constant 0 : index
    %c0_1 = arith.constant 0 : index
    %c0_2 = arith.constant 0 : index
    %2 = vector.load %arg1[%c0, %c0_1, %c0_2] : memref<8x9x384xbf16, #tpu.memory_space<vmem>>, vector<1x8x384xbf16>
    %3 = vector.shape_cast %2 : vector<1x8x384xbf16> to vector<8x384xbf16>
    %c0_3 = arith.constant 0 : index
    %c0_4 = arith.constant 0 : index
    %c0_5 = arith.constant 0 : index
    %4 = vector.load %arg3[%c0_3, %c0_4, %c0_5] : memref<3x384x128xbf16, #tpu.memory_space<vmem>>, vector<1x384x128xbf16>
    %5 = vector.shape_cast %4 : vector<1x384x128xbf16> to vector<384x128xbf16>
    %cst_6 = arith.constant dense<0.000000e+00> : vector<8x128xf32>
    %6 = tpu.matmul %3, %5, %cst_6 {dimension_numbers = #tpu.dot_dimension_numbers<[1], [0], [0], [1], [0, 0, 1, 1], [], []>} : vector<8x384xbf16>, vector<384x128xbf16>, vector<8x128xf32> -> vector<8x128xf32>
    %c0_7 = arith.constant 0 : index
    %c0_8 = arith.constant 0 : index
    %c0_9 = arith.constant 0 : index
    %7 = vector.load %arg2[%c0_7, %c0_8, %c0_9] : memref<8x9x384xbf16, #tpu.memory_space<vmem>>, vector<1x8x384xbf16>
    %8 = vector.shape_cast %7 : vector<1x8x384xbf16> to vector<8x384xbf16>
    %c1 = arith.constant 1 : index
    %c0_10 = arith.constant 0 : index
    %c0_11 = arith.constant 0 : index
    %9 = vector.load %arg3[%c1, %c0_10, %c0_11] : memref<3x384x128xbf16, #tpu.memory_space<vmem>>, vector<1x384x128xbf16>
    %10 = vector.shape_cast %9 : vector<1x384x128xbf16> to vector<384x128xbf16>
    %cst_12 = arith.constant dense<0.000000e+00> : vector<8x128xf32>
    %11 = tpu.matmul %8, %10, %cst_12 {dimension_numbers = #tpu.dot_dimension_numbers<[1], [0], [0], [1], [0, 0, 1, 1], [], []>} : vector<8x384xbf16>, vector<384x128xbf16>, vector<8x128xf32> -> vector<8x128xf32>
    %12 = arith.addf %6, %11 : vector<8x128xf32>
    %c0_13 = arith.constant 0 : index
    %c1_14 = arith.constant 1 : index
    %c0_15 = arith.constant 0 : index
    %13 = vector.load %arg1[%c0_13, %c1_14, %c0_15] : memref<8x9x384xbf16, #tpu.memory_space<vmem>>, vector<1x8x384xbf16>
    %14 = vector.shape_cast %13 : vector<1x8x384xbf16> to vector<8x384xbf16>
    %c2 = arith.constant 2 : index
    %c0_16 = arith.constant 0 : index
    %c0_17 = arith.constant 0 : index
    %15 = vector.load %arg3[%c2, %c0_16, %c0_17] : memref<3x384x128xbf16, #tpu.memory_space<vmem>>, vector<1x384x128xbf16>
    %16 = vector.shape_cast %15 : vector<1x384x128xbf16> to vector<384x128xbf16>
    %cst_18 = arith.constant dense<0.000000e+00> : vector<8x128xf32>
    %17 = tpu.matmul %14, %16, %cst_18 {dimension_numbers = #tpu.dot_dimension_numbers<[1], [0], [0], [1], [0, 0, 1, 1], [], []>} : vector<8x384xbf16>, vector<384x128xbf16>, vector<8x128xf32> -> vector<8x128xf32>
    %18 = arith.addf %12, %17 : vector<8x128xf32>
    %c0_19 = arith.constant 0 : index
    %c0_20 = arith.constant 0 : index
    %c0_21 = arith.constant 0 : index
    %19 = vector.load %arg4[%c0_19, %c0_20, %c0_21] : memref<8x8x128xf32, #tpu.memory_space<vmem>>, vector<1x8x128xf32>
    %20 = vector.shape_cast %19 : vector<1x8x128xf32> to vector<8x128xf32>
    %21 = vector.shape_cast %18 : vector<8x128xf32> to vector<1x8x128xf32>
    tpu.vector_store %arg4[%c0_19, %c0_20, %c0_21], %21 {strides = array<i32>} : memref<8x8x128xf32, #tpu.memory_space<vmem>>, vector<1x8x128xf32>,
    %cst_22 = arith.constant dense<0.000000e+00> : vector<128xf32>
    %22 = vector.multi_reduction <add>, %18, %cst_22 [0] : vector<8x128xf32> to vector<128xf32>
    %23 = vector.shape_cast %22 : vector<128xf32> to vector<1x128xf32>
    %24 = arith.addf %0, %23 : vector<1x128xf32>
    %25 = arith.mulf %18, %18 : vector<8x128xf32>
    %cst_23 = arith.constant dense<0.000000e+00> : vector<128xf32>
    %26 = vector.multi_reduction <add>, %25, %cst_23 [0] : vector<8x128xf32> to vector<128xf32>
    %27 = vector.shape_cast %26 : vector<128xf32> to vector<1x128xf32>
    %28 = arith.addf %1, %27 : vector<1x128xf32>
    %c1_24 = arith.constant 1 : index
    %c0_25 = arith.constant 0 : index
    %c0_26 = arith.constant 0 : index
    %29 = vector.load %arg1[%c1_24, %c0_25, %c0_26] : memref<8x9x384xbf16, #tpu.memory_space<vmem>>, vector<1x8x384xbf16>
    %30 = vector.shape_cast %29 : vector<1x8x384xbf16> to vector<8x384xbf16>
    %c0_27 = arith.constant 0 : index
    %c0_28 = arith.constant 0 : index
    %c0_29 = arith.constant 0 : index
    %31 = vector.load %arg3[%c0_27, %c0_28, %c0_29] : memref<3x384x128xbf16, #tpu.memory_space<vmem>>, vector<1x384x128xbf16>
    %32 = vector.shape_cast %31 : vector<1x384x128xbf16> to vector<384x128xbf16>
    %cst_30 = arith.constant dense<0.000000e+00> : vector<8x128xf32>
    %33 = tpu.matmul %30, %32, %cst_30 {dimension_numbers = #tpu.dot_dimension_numbers<[1], [0], [0], [1], [0, 0, 1, 1], [], []>} : vector<8x384xbf16>, vector<384x128xbf16>, vector<8x128xf32> -> vector<8x128xf32>
    %c1_31 = arith.constant 1 : index
    %c0_32 = arith.constant 0 : index
    %c0_33 = arith.constant 0 : index
    %34 = vector.load %arg2[%c1_31, %c0_32, %c0_33] : memref<8x9x384xbf16, #tpu.memory_space<vmem>>, vector<1x8x384xbf16>
    %35 = vector.shape_cast %34 : vector<1x8x384xbf16> to vector<8x384xbf16>
    %c1_34 = arith.constant 1 : index
    %c0_35 = arith.constant 0 : index
    %c0_36 = arith.constant 0 : index
    %36 = vector.load %arg3[%c1_34, %c0_35, %c0_36] : memref<3x384x128xbf16, #tpu.memory_space<vmem>>, vector<1x384x128xbf16>
    %37 = vector.shape_cast %36 : vector<1x384x128xbf16> to vector<384x128xbf16>
    %cst_37 = arith.constant dense<0.000000e+00> : vector<8x128xf32>
    %38 = tpu.matmul %35, %37, %cst_37 {dimension_numbers = #tpu.dot_dimension_numbers<[1], [0], [0], [1], [0, 0, 1, 1], [], []>} : vector<8x384xbf16>, vector<384x128xbf16>, vector<8x128xf32> -> vector<8x128xf32>
    %39 = arith.addf %33, %38 : vector<8x128xf32>
    %c1_38 = arith.constant 1 : index
    %c1_39 = arith.constant 1 : index
    %c0_40 = arith.constant 0 : index
    %40 = vector.load %arg1[%c1_38, %c1_39, %c0_40] : memref<8x9x384xbf16, #tpu.memory_space<vmem>>, vector<1x8x384xbf16>
    %41 = vector.shape_cast %40 : vector<1x8x384xbf16> to vector<8x384xbf16>
    %c2_41 = arith.constant 2 : index
    %c0_42 = arith.constant 0 : index
    %c0_43 = arith.constant 0 : index
    %42 = vector.load %arg3[%c2_41, %c0_42, %c0_43] : memref<3x384x128xbf16, #tpu.memory_space<vmem>>, vector<1x384x128xbf16>
    %43 = vector.shape_cast %42 : vector<1x384x128xbf16> to vector<384x128xbf16>
    %cst_44 = arith.constant dense<0.000000e+00> : vector<8x128xf32>
    %44 = tpu.matmul %41, %43, %cst_44 {dimension_numbers = #tpu.dot_dimension_numbers<[1], [0], [0], [1], [0, 0, 1, 1], [], []>} : vector<8x384xbf16>, vector<384x128xbf16>, vector<8x128xf32> -> vector<8x128xf32>
    %45 = arith.addf %39, %44 : vector<8x128xf32>
    %c1_45 = arith.constant 1 : index
    %c0_46 = arith.constant 0 : index
    %c0_47 = arith.constant 0 : index
    %46 = vector.load %arg4[%c1_45, %c0_46, %c0_47] : memref<8x8x128xf32, #tpu.memory_space<vmem>>, vector<1x8x128xf32>
    %47 = vector.shape_cast %46 : vector<1x8x128xf32> to vector<8x128xf32>
    %48 = vector.shape_cast %45 : vector<8x128xf32> to vector<1x8x128xf32>
    tpu.vector_store %arg4[%c1_45, %c0_46, %c0_47], %48 {strides = array<i32>} : memref<8x8x128xf32, #tpu.memory_space<vmem>>, vector<1x8x128xf32>,
    %cst_48 = arith.constant dense<0.000000e+00> : vector<128xf32>
    %49 = vector.multi_reduction <add>, %45, %cst_48 [0] : vector<8x128xf32> to vector<128xf32>
    %50 = vector.shape_cast %49 : vector<128xf32> to vector<1x128xf32>
    %51 = arith.addf %24, %50 : vector<1x128xf32>
    %52 = arith.mulf %45, %45 : vector<8x128xf32>
    %cst_49 = arith.constant dense<0.000000e+00> : vector<128xf32>
    %53 = vector.multi_reduction <add>, %52, %cst_49 [0] : vector<8x128xf32> to vector<128xf32>
    %54 = vector.shape_cast %53 : vector<128xf32> to vector<1x128xf32>
    %55 = arith.addf %28, %54 : vector<1x128xf32>
    %c2_50 = arith.constant 2 : index
    %c0_51 = arith.constant 0 : index
    %c0_52 = arith.constant 0 : index
    %56 = vector.load %arg1[%c2_50, %c0_51, %c0_52] : memref<8x9x384xbf16, #tpu.memory_space<vmem>>, vector<1x8x384xbf16>
    %57 = vector.shape_cast %56 : vector<1x8x384xbf16> to vector<8x384xbf16>
    %c0_53 = arith.constant 0 : index
    %c0_54 = arith.constant 0 : index
    %c0_55 = arith.constant 0 : index
    %58 = vector.load %arg3[%c0_53, %c0_54, %c0_55] : memref<3x384x128xbf16, #tpu.memory_space<vmem>>, vector<1x384x128xbf16>
    %59 = vector.shape_cast %58 : vector<1x384x128xbf16> to vector<384x128xbf16>
    %cst_56 = arith.constant dense<0.000000e+00> : vector<8x128xf32>
    %60 = tpu.matmul %57, %59, %cst_56 {dimension_numbers = #tpu.dot_dimension_numbers<[1], [0], [0], [1], [0, 0, 1, 1], [], []>} : vector<8x384xbf16>, vector<384x128xbf16>, vector<8x128xf32> -> vector<8x128xf32>
    %c2_57 = arith.constant 2 : index
    %c0_58 = arith.constant 0 : index
    %c0_59 = arith.constant 0 : index
    %61 = vector.load %arg2[%c2_57, %c0_58, %c0_59] : memref<8x9x384xbf16, #tpu.memory_space<vmem>>, vector<1x8x384xbf16>
    %62 = vector.shape_cast %61 : vector<1x8x384xbf16> to vector<8x384xbf16>
    %c1_60 = arith.constant 1 : index
    %c0_61 = arith.constant 0 : index
    %c0_62 = arith.constant 0 : index
    %63 = vector.load %arg3[%c1_60, %c0_61, %c0_62] : memref<3x384x128xbf16, #tpu.memory_space<vmem>>, vector<1x384x128xbf16>
    %64 = vector.shape_cast %63 : vector<1x384x128xbf16> to vector<384x128xbf16>
    %cst_63 = arith.constant dense<0.000000e+00> : vector<8x128xf32>
    %65 = tpu.matmul %62, %64, %cst_63 {dimension_numbers = #tpu.dot_dimension_numbers<[1], [0], [0], [1], [0, 0, 1, 1], [], []>} : vector<8x384xbf16>, vector<384x128xbf16>, vector<8x128xf32> -> vector<8x128xf32>
    %66 = arith.addf %60, %65 : vector<8x128xf32>
    %c2_64 = arith.constant 2 : index
    %c1_65 = arith.constant 1 : index
    %c0_66 = arith.constant 0 : index
    %67 = vector.load %arg1[%c2_64, %c1_65, %c0_66] : memref<8x9x384xbf16, #tpu.memory_space<vmem>>, vector<1x8x384xbf16>
    %68 = vector.shape_cast %67 : vector<1x8x384xbf16> to vector<8x384xbf16>
    %c2_67 = arith.constant 2 : index
    %c0_68 = arith.constant 0 : index
    %c0_69 = arith.constant 0 : index
    %69 = vector.load %arg3[%c2_67, %c0_68, %c0_69] : memref<3x384x128xbf16, #tpu.memory_space<vmem>>, vector<1x384x128xbf16>
    %70 = vector.shape_cast %69 : vector<1x384x128xbf16> to vector<384x128xbf16>
    %cst_70 = arith.constant dense<0.000000e+00> : vector<8x128xf32>
    %71 = tpu.matmul %68, %70, %cst_70 {dimension_numbers = #tpu.dot_dimension_numbers<[1], [0], [0], [1], [0, 0, 1, 1], [], []>} : vector<8x384xbf16>, vector<384x128xbf16>, vector<8x128xf32> -> vector<8x128xf32>
    %72 = arith.addf %66, %71 : vector<8x128xf32>
    %c2_71 = arith.constant 2 : index
    %c0_72 = arith.constant 0 : index
    %c0_73 = arith.constant 0 : index
    %73 = vector.load %arg4[%c2_71, %c0_72, %c0_73] : memref<8x8x128xf32, #tpu.memory_space<vmem>>, vector<1x8x128xf32>
    %74 = vector.shape_cast %73 : vector<1x8x128xf32> to vector<8x128xf32>
    %75 = vector.shape_cast %72 : vector<8x128xf32> to vector<1x8x128xf32>
    tpu.vector_store %arg4[%c2_71, %c0_72, %c0_73], %75 {strides = array<i32>} : memref<8x8x128xf32, #tpu.memory_space<vmem>>, vector<1x8x128xf32>,
    %cst_74 = arith.constant dense<0.000000e+00> : vector<128xf32>
    %76 = vector.multi_reduction <add>, %72, %cst_74 [0] : vector<8x128xf32> to vector<128xf32>
    %77 = vector.shape_cast %76 : vector<128xf32> to vector<1x128xf32>
    %78 = arith.addf %51, %77 : vector<1x128xf32>
    %79 = arith.mulf %72, %72 : vector<8x128xf32>
    %cst_75 = arith.constant dense<0.000000e+00> : vector<128xf32>
    %80 = vector.multi_reduction <add>, %79, %cst_75 [0] : vector<8x128xf32> to vector<128xf32>
    %81 = vector.shape_cast %80 : vector<128xf32> to vector<1x128xf32>
    %82 = arith.addf %55, %81 : vector<1x128xf32>
    %c3 = arith.constant 3 : index
    %c0_76 = arith.constant 0 : index
    %c0_77 = arith.constant 0 : index
    %83 = vector.load %arg1[%c3, %c0_76, %c0_77] : memref<8x9x384xbf16, #tpu.memory_space<vmem>>, vector<1x8x384xbf16>
    %84 = vector.shape_cast %83 : vector<1x8x384xbf16> to vector<8x384xbf16>
    %c0_78 = arith.constant 0 : index
    %c0_79 = arith.constant 0 : index
    %c0_80 = arith.constant 0 : index
    %85 = vector.load %arg3[%c0_78, %c0_79, %c0_80] : memref<3x384x128xbf16, #tpu.memory_space<vmem>>, vector<1x384x128xbf16>
    %86 = vector.shape_cast %85 : vector<1x384x128xbf16> to vector<384x128xbf16>
    %cst_81 = arith.constant dense<0.000000e+00> : vector<8x128xf32>
    %87 = tpu.matmul %84, %86, %cst_81 {dimension_numbers = #tpu.dot_dimension_numbers<[1], [0], [0], [1], [0, 0, 1, 1], [], []>} : vector<8x384xbf16>, vector<384x128xbf16>, vector<8x128xf32> -> vector<8x128xf32>
    %c3_82 = arith.constant 3 : index
    %c0_83 = arith.constant 0 : index
    %c0_84 = arith.constant 0 : index
    %88 = vector.load %arg2[%c3_82, %c0_83, %c0_84] : memref<8x9x384xbf16, #tpu.memory_space<vmem>>, vector<1x8x384xbf16>
    %89 = vector.shape_cast %88 : vector<1x8x384xbf16> to vector<8x384xbf16>
    %c1_85 = arith.constant 1 : index
    %c0_86 = arith.constant 0 : index
    %c0_87 = arith.constant 0 : index
    %90 = vector.load %arg3[%c1_85, %c0_86, %c0_87] : memref<3x384x128xbf16, #tpu.memory_space<vmem>>, vector<1x384x128xbf16>
    %91 = vector.shape_cast %90 : vector<1x384x128xbf16> to vector<384x128xbf16>
    %cst_88 = arith.constant dense<0.000000e+00> : vector<8x128xf32>
    %92 = tpu.matmul %89, %91, %cst_88 {dimension_numbers = #tpu.dot_dimension_numbers<[1], [0], [0], [1], [0, 0, 1, 1], [], []>} : vector<8x384xbf16>, vector<384x128xbf16>, vector<8x128xf32> -> vector<8x128xf32>
    %93 = arith.addf %87, %92 : vector<8x128xf32>
    %c3_89 = arith.constant 3 : index
    %c1_90 = arith.constant 1 : index
    %c0_91 = arith.constant 0 : index
    %94 = vector.load %arg1[%c3_89, %c1_90, %c0_91] : memref<8x9x384xbf16, #tpu.memory_space<vmem>>, vector<1x8x384xbf16>
    %95 = vector.shape_cast %94 : vector<1x8x384xbf16> to vector<8x384xbf16>
    %c2_92 = arith.constant 2 : index
    %c0_93 = arith.constant 0 : index
    %c0_94 = arith.constant 0 : index
    %96 = vector.load %arg3[%c2_92, %c0_93, %c0_94] : memref<3x384x128xbf16, #tpu.memory_space<vmem>>, vector<1x384x128xbf16>
    %97 = vector.shape_cast %96 : vector<1x384x128xbf16> to vector<384x128xbf16>
    %cst_95 = arith.constant dense<0.000000e+00> : vector<8x128xf32>
    %98 = tpu.matmul %95, %97, %cst_95 {dimension_numbers = #tpu.dot_dimension_numbers<[1], [0], [0], [1], [0, 0, 1, 1], [], []>} : vector<8x384xbf16>, vector<384x128xbf16>, vector<8x128xf32> -> vector<8x128xf32>
    %99 = arith.addf %93, %98 : vector<8x128xf32>
    %c3_96 = arith.constant 3 : index
    %c0_97 = arith.constant 0 : index
    %c0_98 = arith.constant 0 : index
    %100 = vector.load %arg4[%c3_96, %c0_97, %c0_98] : memref<8x8x128xf32, #tpu.memory_space<vmem>>, vector<1x8x128xf32>
    %101 = vector.shape_cast %100 : vector<1x8x128xf32> to vector<8x128xf32>
    %102 = vector.shape_cast %99 : vector<8x128xf32> to vector<1x8x128xf32>
    tpu.vector_store %arg4[%c3_96, %c0_97, %c0_98], %102 {strides = array<i32>} : memref<8x8x128xf32, #tpu.memory_space<vmem>>, vector<1x8x128xf32>,
    %cst_99 = arith.constant dense<0.000000e+00> : vector<128xf32>
    %103 = vector.multi_reduction <add>, %99, %cst_99 [0] : vector<8x128xf32> to vector<128xf32>
    %104 = vector.shape_cast %103 : vector<128xf32> to vector<1x128xf32>
    %105 = arith.addf %78, %104 : vector<1x128xf32>
    %106 = arith.mulf %99, %99 : vector<8x128xf32>
    %cst_100 = arith.constant dense<0.000000e+00> : vector<128xf32>
    %107 = vector.multi_reduction <add>, %106, %cst_100 [0] : vector<8x128xf32> to vector<128xf32>
    %108 = vector.shape_cast %107 : vector<128xf32> to vector<1x128xf32>
    %109 = arith.addf %82, %108 : vector<1x128xf32>
    %c4 = arith.constant 4 : index
    %c0_101 = arith.constant 0 : index
    %c0_102 = arith.constant 0 : index
    %110 = vector.load %arg1[%c4, %c0_101, %c0_102] : memref<8x9x384xbf16, #tpu.memory_space<vmem>>, vector<1x8x384xbf16>
    %111 = vector.shape_cast %110 : vector<1x8x384xbf16> to vector<8x384xbf16>
    %c0_103 = arith.constant 0 : index
    %c0_104 = arith.constant 0 : index
    %c0_105 = arith.constant 0 : index
    %112 = vector.load %arg3[%c0_103, %c0_104, %c0_105] : memref<3x384x128xbf16, #tpu.memory_space<vmem>>, vector<1x384x128xbf16>
    %113 = vector.shape_cast %112 : vector<1x384x128xbf16> to vector<384x128xbf16>
    %cst_106 = arith.constant dense<0.000000e+00> : vector<8x128xf32>
    %114 = tpu.matmul %111, %113, %cst_106 {dimension_numbers = #tpu.dot_dimension_numbers<[1], [0], [0], [1], [0, 0, 1, 1], [], []>} : vector<8x384xbf16>, vector<384x128xbf16>, vector<8x128xf32> -> vector<8x128xf32>
    %c4_107 = arith.constant 4 : index
    %c0_108 = arith.constant 0 : index
    %c0_109 = arith.constant 0 : index
    %115 = vector.load %arg2[%c4_107, %c0_108, %c0_109] : memref<8x9x384xbf16, #tpu.memory_space<vmem>>, vector<1x8x384xbf16>
    %116 = vector.shape_cast %115 : vector<1x8x384xbf16> to vector<8x384xbf16>
    %c1_110 = arith.constant 1 : index
    %c0_111 = arith.constant 0 : index
    %c0_112 = arith.constant 0 : index
    %117 = vector.load %arg3[%c1_110, %c0_111, %c0_112] : memref<3x384x128xbf16, #tpu.memory_space<vmem>>, vector<1x384x128xbf16>
    %118 = vector.shape_cast %117 : vector<1x384x128xbf16> to vector<384x128xbf16>
    %cst_113 = arith.constant dense<0.000000e+00> : vector<8x128xf32>
    %119 = tpu.matmul %116, %118, %cst_113 {dimension_numbers = #tpu.dot_dimension_numbers<[1], [0], [0], [1], [0, 0, 1, 1], [], []>} : vector<8x384xbf16>, vector<384x128xbf16>, vector<8x128xf32> -> vector<8x128xf32>
    %120 = arith.addf %114, %119 : vector<8x128xf32>
    %c4_114 = arith.constant 4 : index
    %c1_115 = arith.constant 1 : index
    %c0_116 = arith.constant 0 : index
    %121 = vector.load %arg1[%c4_114, %c1_115, %c0_116] : memref<8x9x384xbf16, #tpu.memory_space<vmem>>, vector<1x8x384xbf16>
    %122 = vector.shape_cast %121 : vector<1x8x384xbf16> to vector<8x384xbf16>
    %c2_117 = arith.constant 2 : index
    %c0_118 = arith.constant 0 : index
    %c0_119 = arith.constant 0 : index
    %123 = vector.load %arg3[%c2_117, %c0_118, %c0_119] : memref<3x384x128xbf16, #tpu.memory_space<vmem>>, vector<1x384x128xbf16>
    %124 = vector.shape_cast %123 : vector<1x384x128xbf16> to vector<384x128xbf16>
    %cst_120 = arith.constant dense<0.000000e+00> : vector<8x128xf32>
    %125 = tpu.matmul %122, %124, %cst_120 {dimension_numbers = #tpu.dot_dimension_numbers<[1], [0], [0], [1], [0, 0, 1, 1], [], []>} : vector<8x384xbf16>, vector<384x128xbf16>, vector<8x128xf32> -> vector<8x128xf32>
    %126 = arith.addf %120, %125 : vector<8x128xf32>
    %c4_121 = arith.constant 4 : index
    %c0_122 = arith.constant 0 : index
    %c0_123 = arith.constant 0 : index
    %127 = vector.load %arg4[%c4_121, %c0_122, %c0_123] : memref<8x8x128xf32, #tpu.memory_space<vmem>>, vector<1x8x128xf32>
    %128 = vector.shape_cast %127 : vector<1x8x128xf32> to vector<8x128xf32>
    %129 = vector.shape_cast %126 : vector<8x128xf32> to vector<1x8x128xf32>
    tpu.vector_store %arg4[%c4_121, %c0_122, %c0_123], %129 {strides = array<i32>} : memref<8x8x128xf32, #tpu.memory_space<vmem>>, vector<1x8x128xf32>,
    %cst_124 = arith.constant dense<0.000000e+00> : vector<128xf32>
    %130 = vector.multi_reduction <add>, %126, %cst_124 [0] : vector<8x128xf32> to vector<128xf32>
    %131 = vector.shape_cast %130 : vector<128xf32> to vector<1x128xf32>
    %132 = arith.addf %105, %131 : vector<1x128xf32>
    %133 = arith.mulf %126, %126 : vector<8x128xf32>
    %cst_125 = arith.constant dense<0.000000e+00> : vector<128xf32>
    %134 = vector.multi_reduction <add>, %133, %cst_125 [0] : vector<8x128xf32> to vector<128xf32>
    %135 = vector.shape_cast %134 : vector<128xf32> to vector<1x128xf32>
    %136 = arith.addf %109, %135 : vector<1x128xf32>
    %c5 = arith.constant 5 : index
    %c0_126 = arith.constant 0 : index
    %c0_127 = arith.constant 0 : index
    %137 = vector.load %arg1[%c5, %c0_126, %c0_127] : memref<8x9x384xbf16, #tpu.memory_space<vmem>>, vector<1x8x384xbf16>
    %138 = vector.shape_cast %137 : vector<1x8x384xbf16> to vector<8x384xbf16>
    %c0_128 = arith.constant 0 : index
    %c0_129 = arith.constant 0 : index
    %c0_130 = arith.constant 0 : index
    %139 = vector.load %arg3[%c0_128, %c0_129, %c0_130] : memref<3x384x128xbf16, #tpu.memory_space<vmem>>, vector<1x384x128xbf16>
    %140 = vector.shape_cast %139 : vector<1x384x128xbf16> to vector<384x128xbf16>
    %cst_131 = arith.constant dense<0.000000e+00> : vector<8x128xf32>
    %141 = tpu.matmul %138, %140, %cst_131 {dimension_numbers = #tpu.dot_dimension_numbers<[1], [0], [0], [1], [0, 0, 1, 1], [], []>} : vector<8x384xbf16>, vector<384x128xbf16>, vector<8x128xf32> -> vector<8x128xf32>
    %c5_132 = arith.constant 5 : index
    %c0_133 = arith.constant 0 : index
    %c0_134 = arith.constant 0 : index
    %142 = vector.load %arg2[%c5_132, %c0_133, %c0_134] : memref<8x9x384xbf16, #tpu.memory_space<vmem>>, vector<1x8x384xbf16>
    %143 = vector.shape_cast %142 : vector<1x8x384xbf16> to vector<8x384xbf16>
    %c1_135 = arith.constant 1 : index
    %c0_136 = arith.constant 0 : index
    %c0_137 = arith.constant 0 : index
    %144 = vector.load %arg3[%c1_135, %c0_136, %c0_137] : memref<3x384x128xbf16, #tpu.memory_space<vmem>>, vector<1x384x128xbf16>
    %145 = vector.shape_cast %144 : vector<1x384x128xbf16> to vector<384x128xbf16>
    %cst_138 = arith.constant dense<0.000000e+00> : vector<8x128xf32>
    %146 = tpu.matmul %143, %145, %cst_138 {dimension_numbers = #tpu.dot_dimension_numbers<[1], [0], [0], [1], [0, 0, 1, 1], [], []>} : vector<8x384xbf16>, vector<384x128xbf16>, vector<8x128xf32> -> vector<8x128xf32>
    %147 = arith.addf %141, %146 : vector<8x128xf32>
    %c5_139 = arith.constant 5 : index
    %c1_140 = arith.constant 1 : index
    %c0_141 = arith.constant 0 : index
    %148 = vector.load %arg1[%c5_139, %c1_140, %c0_141] : memref<8x9x384xbf16, #tpu.memory_space<vmem>>, vector<1x8x384xbf16>
    %149 = vector.shape_cast %148 : vector<1x8x384xbf16> to vector<8x384xbf16>
    %c2_142 = arith.constant 2 : index
    %c0_143 = arith.constant 0 : index
    %c0_144 = arith.constant 0 : index
    %150 = vector.load %arg3[%c2_142, %c0_143, %c0_144] : memref<3x384x128xbf16, #tpu.memory_space<vmem>>, vector<1x384x128xbf16>
    %151 = vector.shape_cast %150 : vector<1x384x128xbf16> to vector<384x128xbf16>
    %cst_145 = arith.constant dense<0.000000e+00> : vector<8x128xf32>
    %152 = tpu.matmul %149, %151, %cst_145 {dimension_numbers = #tpu.dot_dimension_numbers<[1], [0], [0], [1], [0, 0, 1, 1], [], []>} : vector<8x384xbf16>, vector<384x128xbf16>, vector<8x128xf32> -> vector<8x128xf32>
    %153 = arith.addf %147, %152 : vector<8x128xf32>
    %c5_146 = arith.constant 5 : index
    %c0_147 = arith.constant 0 : index
    %c0_148 = arith.constant 0 : index
    %154 = vector.load %arg4[%c5_146, %c0_147, %c0_148] : memref<8x8x128xf32, #tpu.memory_space<vmem>>, vector<1x8x128xf32>
    %155 = vector.shape_cast %154 : vector<1x8x128xf32> to vector<8x128xf32>
    %156 = vector.shape_cast %153 : vector<8x128xf32> to vector<1x8x128xf32>
    tpu.vector_store %arg4[%c5_146, %c0_147, %c0_148], %156 {strides = array<i32>} : memref<8x8x128xf32, #tpu.memory_space<vmem>>, vector<1x8x128xf32>,
    %cst_149 = arith.constant dense<0.000000e+00> : vector<128xf32>
    %157 = vector.multi_reduction <add>, %153, %cst_149 [0] : vector<8x128xf32> to vector<128xf32>
    %158 = vector.shape_cast %157 : vector<128xf32> to vector<1x128xf32>
    %159 = arith.addf %132, %158 : vector<1x128xf32>
    %160 = arith.mulf %153, %153 : vector<8x128xf32>
    %cst_150 = arith.constant dense<0.000000e+00> : vector<128xf32>
    %161 = vector.multi_reduction <add>, %160, %cst_150 [0] : vector<8x128xf32> to vector<128xf32>
    %162 = vector.shape_cast %161 : vector<128xf32> to vector<1x128xf32>
    %163 = arith.addf %136, %162 : vector<1x128xf32>
    %c6 = arith.constant 6 : index
    %c0_151 = arith.constant 0 : index
    %c0_152 = arith.constant 0 : index
    %164 = vector.load %arg1[%c6, %c0_151, %c0_152] : memref<8x9x384xbf16, #tpu.memory_space<vmem>>, vector<1x8x384xbf16>
    %165 = vector.shape_cast %164 : vector<1x8x384xbf16> to vector<8x384xbf16>
    %c0_153 = arith.constant 0 : index
    %c0_154 = arith.constant 0 : index
    %c0_155 = arith.constant 0 : index
    %166 = vector.load %arg3[%c0_153, %c0_154, %c0_155] : memref<3x384x128xbf16, #tpu.memory_space<vmem>>, vector<1x384x128xbf16>
    %167 = vector.shape_cast %166 : vector<1x384x128xbf16> to vector<384x128xbf16>
    %cst_156 = arith.constant dense<0.000000e+00> : vector<8x128xf32>
    %168 = tpu.matmul %165, %167, %cst_156 {dimension_numbers = #tpu.dot_dimension_numbers<[1], [0], [0], [1], [0, 0, 1, 1], [], []>} : vector<8x384xbf16>, vector<384x128xbf16>, vector<8x128xf32> -> vector<8x128xf32>
    %c6_157 = arith.constant 6 : index
    %c0_158 = arith.constant 0 : index
    %c0_159 = arith.constant 0 : index
    %169 = vector.load %arg2[%c6_157, %c0_158, %c0_159] : memref<8x9x384xbf16, #tpu.memory_space<vmem>>, vector<1x8x384xbf16>
    %170 = vector.shape_cast %169 : vector<1x8x384xbf16> to vector<8x384xbf16>
    %c1_160 = arith.constant 1 : index
    %c0_161 = arith.constant 0 : index
    %c0_162 = arith.constant 0 : index
    %171 = vector.load %arg3[%c1_160, %c0_161, %c0_162] : memref<3x384x128xbf16, #tpu.memory_space<vmem>>, vector<1x384x128xbf16>
    %172 = vector.shape_cast %171 : vector<1x384x128xbf16> to vector<384x128xbf16>
    %cst_163 = arith.constant dense<0.000000e+00> : vector<8x128xf32>
    %173 = tpu.matmul %170, %172, %cst_163 {dimension_numbers = #tpu.dot_dimension_numbers<[1], [0], [0], [1], [0, 0, 1, 1], [], []>} : vector<8x384xbf16>, vector<384x128xbf16>, vector<8x128xf32> -> vector<8x128xf32>
    %174 = arith.addf %168, %173 : vector<8x128xf32>
    %c6_164 = arith.constant 6 : index
    %c1_165 = arith.constant 1 : index
    %c0_166 = arith.constant 0 : index
    %175 = vector.load %arg1[%c6_164, %c1_165, %c0_166] : memref<8x9x384xbf16, #tpu.memory_space<vmem>>, vector<1x8x384xbf16>
    %176 = vector.shape_cast %175 : vector<1x8x384xbf16> to vector<8x384xbf16>
    %c2_167 = arith.constant 2 : index
    %c0_168 = arith.constant 0 : index
    %c0_169 = arith.constant 0 : index
    %177 = vector.load %arg3[%c2_167, %c0_168, %c0_169] : memref<3x384x128xbf16, #tpu.memory_space<vmem>>, vector<1x384x128xbf16>
    %178 = vector.shape_cast %177 : vector<1x384x128xbf16> to vector<384x128xbf16>
    %cst_170 = arith.constant dense<0.000000e+00> : vector<8x128xf32>
    %179 = tpu.matmul %176, %178, %cst_170 {dimension_numbers = #tpu.dot_dimension_numbers<[1], [0], [0], [1], [0, 0, 1, 1], [], []>} : vector<8x384xbf16>, vector<384x128xbf16>, vector<8x128xf32> -> vector<8x128xf32>
    %180 = arith.addf %174, %179 : vector<8x128xf32>
    %c6_171 = arith.constant 6 : index
    %c0_172 = arith.constant 0 : index
    %c0_173 = arith.constant 0 : index
    %181 = vector.load %arg4[%c6_171, %c0_172, %c0_173] : memref<8x8x128xf32, #tpu.memory_space<vmem>>, vector<1x8x128xf32>
    %182 = vector.shape_cast %181 : vector<1x8x128xf32> to vector<8x128xf32>
    %183 = vector.shape_cast %180 : vector<8x128xf32> to vector<1x8x128xf32>
    tpu.vector_store %arg4[%c6_171, %c0_172, %c0_173], %183 {strides = array<i32>} : memref<8x8x128xf32, #tpu.memory_space<vmem>>, vector<1x8x128xf32>,
    %cst_174 = arith.constant dense<0.000000e+00> : vector<128xf32>
    %184 = vector.multi_reduction <add>, %180, %cst_174 [0] : vector<8x128xf32> to vector<128xf32>
    %185 = vector.shape_cast %184 : vector<128xf32> to vector<1x128xf32>
    %186 = arith.addf %159, %185 : vector<1x128xf32>
    %187 = arith.mulf %180, %180 : vector<8x128xf32>
    %cst_175 = arith.constant dense<0.000000e+00> : vector<128xf32>
    %188 = vector.multi_reduction <add>, %187, %cst_175 [0] : vector<8x128xf32> to vector<128xf32>
    %189 = vector.shape_cast %188 : vector<128xf32> to vector<1x128xf32>
    %190 = arith.addf %163, %189 : vector<1x128xf32>
    %c7 = arith.constant 7 : index
    %c0_176 = arith.constant 0 : index
    %c0_177 = arith.constant 0 : index
    %191 = vector.load %arg1[%c7, %c0_176, %c0_177] : memref<8x9x384xbf16, #tpu.memory_space<vmem>>, vector<1x8x384xbf16>
    %192 = vector.shape_cast %191 : vector<1x8x384xbf16> to vector<8x384xbf16>
    %c0_178 = arith.constant 0 : index
    %c0_179 = arith.constant 0 : index
    %c0_180 = arith.constant 0 : index
    %193 = vector.load %arg3[%c0_178, %c0_179, %c0_180] : memref<3x384x128xbf16, #tpu.memory_space<vmem>>, vector<1x384x128xbf16>
    %194 = vector.shape_cast %193 : vector<1x384x128xbf16> to vector<384x128xbf16>
    %cst_181 = arith.constant dense<0.000000e+00> : vector<8x128xf32>
    %195 = tpu.matmul %192, %194, %cst_181 {dimension_numbers = #tpu.dot_dimension_numbers<[1], [0], [0], [1], [0, 0, 1, 1], [], []>} : vector<8x384xbf16>, vector<384x128xbf16>, vector<8x128xf32> -> vector<8x128xf32>
    %c7_182 = arith.constant 7 : index
    %c0_183 = arith.constant 0 : index
    %c0_184 = arith.constant 0 : index
    %196 = vector.load %arg2[%c7_182, %c0_183, %c0_184] : memref<8x9x384xbf16, #tpu.memory_space<vmem>>, vector<1x8x384xbf16>
    %197 = vector.shape_cast %196 : vector<1x8x384xbf16> to vector<8x384xbf16>
    %c1_185 = arith.constant 1 : index
    %c0_186 = arith.constant 0 : index
    %c0_187 = arith.constant 0 : index
    %198 = vector.load %arg3[%c1_185, %c0_186, %c0_187] : memref<3x384x128xbf16, #tpu.memory_space<vmem>>, vector<1x384x128xbf16>
    %199 = vector.shape_cast %198 : vector<1x384x128xbf16> to vector<384x128xbf16>
    %cst_188 = arith.constant dense<0.000000e+00> : vector<8x128xf32>
    %200 = tpu.matmul %197, %199, %cst_188 {dimension_numbers = #tpu.dot_dimension_numbers<[1], [0], [0], [1], [0, 0, 1, 1], [], []>} : vector<8x384xbf16>, vector<384x128xbf16>, vector<8x128xf32> -> vector<8x128xf32>
    %201 = arith.addf %195, %200 : vector<8x128xf32>
    %c7_189 = arith.constant 7 : index
    %c1_190 = arith.constant 1 : index
    %c0_191 = arith.constant 0 : index
    %202 = vector.load %arg1[%c7_189, %c1_190, %c0_191] : memref<8x9x384xbf16, #tpu.memory_space<vmem>>, vector<1x8x384xbf16>
    %203 = vector.shape_cast %202 : vector<1x8x384xbf16> to vector<8x384xbf16>
    %c2_192 = arith.constant 2 : index
    %c0_193 = arith.constant 0 : index
    %c0_194 = arith.constant 0 : index
    %204 = vector.load %arg3[%c2_192, %c0_193, %c0_194] : memref<3x384x128xbf16, #tpu.memory_space<vmem>>, vector<1x384x128xbf16>
    %205 = vector.shape_cast %204 : vector<1x384x128xbf16> to vector<384x128xbf16>
    %cst_195 = arith.constant dense<0.000000e+00> : vector<8x128xf32>
    %206 = tpu.matmul %203, %205, %cst_195 {dimension_numbers = #tpu.dot_dimension_numbers<[1], [0], [0], [1], [0, 0, 1, 1], [], []>} : vector<8x384xbf16>, vector<384x128xbf16>, vector<8x128xf32> -> vector<8x128xf32>
    %207 = arith.addf %201, %206 : vector<8x128xf32>
    %c7_196 = arith.constant 7 : index
    %c0_197 = arith.constant 0 : index
    %c0_198 = arith.constant 0 : index
    %208 = vector.load %arg4[%c7_196, %c0_197, %c0_198] : memref<8x8x128xf32, #tpu.memory_space<vmem>>, vector<1x8x128xf32>
    %209 = vector.shape_cast %208 : vector<1x8x128xf32> to vector<8x128xf32>
    %210 = vector.shape_cast %207 : vector<8x128xf32> to vector<1x8x128xf32>
    tpu.vector_store %arg4[%c7_196, %c0_197, %c0_198], %210 {strides = array<i32>} : memref<8x8x128xf32, #tpu.memory_space<vmem>>, vector<1x8x128xf32>,
    %cst_199 = arith.constant dense<0.000000e+00> : vector<128xf32>
    %211 = vector.multi_reduction <add>, %207, %cst_199 [0] : vector<8x128xf32> to vector<128xf32>
    %212 = vector.shape_cast %211 : vector<128xf32> to vector<1x128xf32>
    %213 = arith.addf %186, %212 : vector<1x128xf32>
    %214 = arith.mulf %207, %207 : vector<8x128xf32>
    %cst_200 = arith.constant dense<0.000000e+00> : vector<128xf32>
    %215 = vector.multi_reduction <add>, %214, %cst_200 [0] : vector<8x128xf32> to vector<128xf32>
    %216 = vector.shape_cast %215 : vector<128xf32> to vector<1x128xf32>
    %217 = arith.addf %190, %216 : vector<1x128xf32>
    %c0_201 = arith.constant 0 : index
    %c0_202 = arith.constant 0 : index
    %c0_203 = arith.constant 0 : index
    %218 = vector.load %arg5[%c0_201, %c0_202, %c0_203] : memref<1x1x128xf32, #tpu.memory_space<vmem>>, vector<1x1x128xf32>
    %219 = vector.shape_cast %218 : vector<1x1x128xf32> to vector<1x128xf32>
    %220 = vector.shape_cast %213 : vector<1x128xf32> to vector<1x1x128xf32>
    tpu.vector_store %arg5[%c0_201, %c0_202, %c0_203], %220 {strides = array<i32>} : memref<1x1x128xf32, #tpu.memory_space<vmem>>, vector<1x1x128xf32>,
    %c0_204 = arith.constant 0 : index
    %c0_205 = arith.constant 0 : index
    %c0_206 = arith.constant 0 : index
    %221 = vector.load %arg6[%c0_204, %c0_205, %c0_206] : memref<1x1x128xf32, #tpu.memory_space<vmem>>, vector<1x1x128xf32>
    %222 = vector.shape_cast %221 : vector<1x1x128xf32> to vector<1x128xf32>
    %223 = vector.shape_cast %217 : vector<1x128xf32> to vector<1x1x128xf32>
    tpu.vector_store %arg6[%c0_204, %c0_205, %c0_206], %223 {strides = array<i32>} : memref<1x1x128xf32, #tpu.memory_space<vmem>>, vector<1x1x128xf32>,
    return
  }
  func.func @transform_0(%arg0: i32) -> (i32, i32, i32) {
    %c0_i32 = arith.constant 0 : i32
    %c0_i32_0 = arith.constant 0 : i32
    %c0_i32_1 = arith.constant 0 : i32
    return %arg0, %c0_i32, %c0_i32_0 : i32, i32, i32
  }
  func.func @transform_1(%arg0: i32) -> (i32, i32, i32) {
    %c0_i32 = arith.constant 0 : i32
    %c0_i32_0 = arith.constant 0 : i32
    %c0_i32_1 = arith.constant 0 : i32
    return %arg0, %c0_i32, %c0_i32_0 : i32, i32, i32
  }
  func.func @transform_2(%arg0: i32) -> (i32, i32, i32) {
    %c0_i32 = arith.constant 0 : i32
    %c0_i32_0 = arith.constant 0 : i32
    %c0_i32_1 = arith.constant 0 : i32
    %c0_i32_2 = arith.constant 0 : i32
    return %c0_i32, %c0_i32_0, %c0_i32_1 : i32, i32, i32
  }
  func.func @transform_3(%arg0: i32) -> (i32, i32, i32) {
    %c0_i32 = arith.constant 0 : i32
    %c0_i32_0 = arith.constant 0 : i32
    %c0_i32_1 = arith.constant 0 : i32
    return %arg0, %c0_i32, %c0_i32_0 : i32, i32, i32
  }
  func.func @transform_4(%arg0: i32) -> (i32, i32, i32) {
    %c0_i32 = arith.constant 0 : i32
    %c0_i32_0 = arith.constant 0 : i32
    %c0_i32_1 = arith.constant 0 : i32
    return %arg0, %c0_i32, %c0_i32_0 : i32, i32, i32
  }
  func.func @transform_5(%arg0: i32) -> (i32, i32, i32) {
    %c0_i32 = arith.constant 0 : i32
    %c0_i32_0 = arith.constant 0 : i32
    %c0_i32_1 = arith.constant 0 : i32
    return %arg0, %c0_i32, %c0_i32_0 : i32, i32, i32
  }
}

module attributes {stable_mosaic.version = 11 : i64} {
  func.func @_bn_gelu_kernel(%arg0: i32, %arg1: memref<16x8x128xf32, #tpu.memory_space<vmem>>, %arg2: memref<1x128xf32, #tpu.memory_space<vmem>>, %arg3: memref<1x128xf32, #tpu.memory_space<vmem>>, %arg4: memref<16x8x128xf32, #tpu.memory_space<vmem>>) attributes {dimension_semantics = [#tpu.dimension_semantics<parallel>], iteration_bounds = array<i64: 1>, scalar_prefetch = 0 : i64, scratch_operands = 0 : i64, tpu.core_type = #tpu.core_type<tc>, window_params = [{transform_indices = @transform_0, window_bounds = array<i64: 16, 8, 128>}, {pipeline_mode = #tpu.pipeline_mode<synchronous>, transform_indices = @transform_1, window_bounds = array<i64: 1, 128>}, {pipeline_mode = #tpu.pipeline_mode<synchronous>, transform_indices = @transform_2, window_bounds = array<i64: 1, 128>}, {transform_indices = @transform_3, window_bounds = array<i64: 16, 8, 128>}]} {
    %c0 = arith.constant 0 : index
    %c0_0 = arith.constant 0 : index
    %c0_1 = arith.constant 0 : index
    %0 = vector.load %arg1[%c0, %c0_0, %c0_1] : memref<16x8x128xf32, #tpu.memory_space<vmem>>, vector<16x8x128xf32>
    %c0_2 = arith.constant 0 : index
    %c0_3 = arith.constant 0 : index
    %1 = vector.load %arg2[%c0_2, %c0_3] : memref<1x128xf32, #tpu.memory_space<vmem>>, vector<1x128xf32>
    %2 = vector.shape_cast %1 : vector<1x128xf32> to vector<1x1x128xf32>
    %3 = vector.broadcast %2 : vector<1x1x128xf32> to vector<16x8x128xf32>
    %4 = arith.mulf %0, %3 : vector<16x8x128xf32>
    %c0_4 = arith.constant 0 : index
    %c0_5 = arith.constant 0 : index
    %5 = vector.load %arg3[%c0_4, %c0_5] : memref<1x128xf32, #tpu.memory_space<vmem>>, vector<1x128xf32>
    %6 = vector.shape_cast %5 : vector<1x128xf32> to vector<1x1x128xf32>
    %7 = vector.broadcast %6 : vector<1x1x128xf32> to vector<16x8x128xf32>
    %8 = arith.addf %4, %7 : vector<16x8x128xf32>
    %cst = arith.constant 5.000000e-01 : f32
    %9 = vector.broadcast %cst : f32 to vector<16x8x128xf32>
    %10 = arith.mulf %9, %8 : vector<16x8x128xf32>
    %cst_6 = arith.constant 0.707106769 : f32
    %11 = vector.broadcast %cst_6 : f32 to vector<16x8x128xf32>
    %12 = arith.mulf %8, %11 : vector<16x8x128xf32>
    %13 = math.erf %12 : vector<16x8x128xf32>
    %cst_7 = arith.constant 1.000000e+00 : f32
    %14 = vector.broadcast %cst_7 : f32 to vector<16x8x128xf32>
    %15 = arith.addf %14, %13 : vector<16x8x128xf32>
    %16 = arith.mulf %10, %15 : vector<16x8x128xf32>
    %c0_8 = arith.constant 0 : index
    %c0_9 = arith.constant 0 : index
    %c0_10 = arith.constant 0 : index
    %17 = vector.load %arg4[%c0_8, %c0_9, %c0_10] : memref<16x8x128xf32, #tpu.memory_space<vmem>>, vector<16x8x128xf32>
    tpu.vector_store %arg4[%c0_8, %c0_9, %c0_10], %16 {strides = array<i32>} : memref<16x8x128xf32, #tpu.memory_space<vmem>>, vector<16x8x128xf32>,
    return
  }
  func.func @transform_0(%arg0: i32) -> (i32, i32, i32) {
    %c0_i32 = arith.constant 0 : i32
    %c0_i32_0 = arith.constant 0 : i32
    %c0_i32_1 = arith.constant 0 : i32
    return %arg0, %c0_i32, %c0_i32_0 : i32, i32, i32
  }
  func.func @transform_1(%arg0: i32) -> (i32, i32) {
    %c0_i32 = arith.constant 0 : i32
    %c0_i32_0 = arith.constant 0 : i32
    %c0_i32_1 = arith.constant 0 : i32
    return %c0_i32, %c0_i32_0 : i32, i32
  }
  func.func @transform_2(%arg0: i32) -> (i32, i32) {
    %c0_i32 = arith.constant 0 : i32
    %c0_i32_0 = arith.constant 0 : i32
    %c0_i32_1 = arith.constant 0 : i32
    return %c0_i32, %c0_i32_0 : i32, i32
  }
  func.func @transform_3(%arg0: i32) -> (i32, i32, i32) {
    %c0_i32 = arith.constant 0 : i32
    %c0_i32_0 = arith.constant 0 : i32
    %c0_i32_1 = arith.constant 0 : i32
    return %arg0, %c0_i32, %c0_i32_0 : i32, i32, i32
  }
}

</mosaic_0001>

<bundles_post_ra>
// kernel: conv_bn_gelu.3
= control target key start
LH: loop header
LB: loop body
LE: loop exit
PB: predicated region body
PF: predicated region fallthrough
CT: control target
= control target key end

     0   :  { %s411_s0 = inlined_call_operand.vmem [shape: f32[16,8,128], index: 0, kind: input, shape index: {}]   ;;  %s412_s1 = inlined_call_operand.vmem [shape: f32[1,128], index: 1, kind: input, shape index: {}]   ;;  %s413_s2 = inlined_call_operand.vmem [shape: f32[1,128], index: 2, kind: input, shape index: {}]   ;;  %s414_s3 = inlined_call_operand.hbm [shape: f32[16,8,128], index: 3, kind: output, shape index: {}]  }
   0x1   :  { %v15_v0 = vld [vmem:[%s411_s0] sm:$0xff]  ;;  %v16_v4 = vld [vmem:[%s411_s0 + $0x8] sm:$0xff]  ;;  %v17_v5 = vld [vmem:[%s411_s0 + $0x10] sm:$0xff] }
   0x2   :  { %v279_v1 = vld [vmem:[%s412_s1] ss:$0 sm:$0xff]  ;;  %v18_v6 = vld [vmem:[%s411_s0 + $0x18] sm:$0xff]  ;;  %v20_v11 = vld [vmem:[%s411_s0 + $0x28] sm:$0xff] }
   0x3   :  { %v284_v2 = vld [vmem:[%s413_s2] ss:$0 sm:$0xff]  ;;  %v38_v3 = vmul.f32 %v279_v1, %v15_v0  ;;  %v39_v7 = vmul.f32 %v279_v1, %v16_v4  ;;  %v40_v8 = vmul.f32 %v279_v1, %v17_v5  ;;  %v41_v9 = vmul.f32 %v279_v1, %v18_v6  ;;  %v21_v12 = vld [vmem:[%s411_s0 + $0x30] sm:$0xff]  ;;  %v22_v16 = vld [vmem:[%s411_s0 + $0x38] sm:$0xff] }
   0x4   :  { %v19_v10 = vld [vmem:[%s411_s0 + $0x20] sm:$0xff]  ;;  %v43_v15 = vmul.f32 %v279_v1, %v20_v11  ;;  %v44_v20 = vmul.f32 %v279_v1, %v21_v12  ;;  %v45_v24 = vmul.f32 %v279_v1, %v22_v16  ;;  %v24_v28 = vld [vmem:[%s411_s0 + $0x48] sm:$0xff]  ;;  %v25_v30 = vld [vmem:[%s411_s0 + $0x50] sm:$0xff] }
   0x5   :  { %v61_v13 = vadd.f32 %v284_v2, %v38_v3  ;;  %v42_v14 = vmul.f32 %v279_v1, %v19_v10  ;;  %v62_v17 = vadd.f32 %v284_v2, %v39_v7  ;;  %v63_v18 = vadd.f32 %v284_v2, %v40_v8  ;;  %v23_v27 = vld [vmem:[%s411_s0 + $0x40] sm:$0xff]  ;;  %v26_v31 = vld [vmem:[%s411_s0 + $0x58] sm:$0xff] }
   0x6   :  { %v64_v19 = vadd.f32 %v284_v2, %v41_v9  ;;  %v320_v23 = vadd.f32 %v284_v2, %v43_v15 }
   0x7   :  { %v93_v21 = vmul.f32 0.70710677, %v61_v13  ;;  %v65_v22 = vadd.f32 %v284_v2, %v42_v14  ;;  %v94_v25 = vmul.f32 0.70710677, %v62_v17  ;;  %v95_v26 = vmul.f32 0.70710677, %v63_v18 }
   0x8   :  { %v96_v29 = vmul.f32 0.70710677, %v64_v19 }
   0x9   :  { %194 = verf.f32 %v93_v21 }
   0xa   :  { %8 = vsyncpa [#allocation3], 0  ;;  %196 = verf.f32 %v94_v25  ;;  %v97_v32 = vmul.f32 0.70710677, %v65_v22  ;;  %v98_v33 = vmul.f32 0.70710677, %v320_v23  ;;  %v67_v34 = vadd.f32 %v284_v2, %v44_v20 }
   0xb   :  { %198 = verf.f32 %v95_v26  ;;  %v338_v35 = vadd.f32 %v284_v2, %v45_v24  ;;  %v46_v36 = vmul.f32 %v279_v1, %v23_v27  ;;  %v47_v37 = vmul.f32 %v279_v1, %v24_v28  ;;  %v27_v40 = vld [vmem:[%s411_s0 + $0x60] sm:$0xff]  ;;  %v28_v48 = vld [vmem:[%s411_s0 + $0x68] sm:$0xff]  ;;  %v29_v51 = vld [vmem:[%s411_s0 + $0x70] sm:$0xff] }
   0xc   :  { %200 = verf.f32 %v96_v29  ;;  %v48_v38 = vmul.f32 %v279_v1, %v25_v30  ;;  %v49_v39 = vmul.f32 %v279_v1, %v26_v31  ;;  %v99_v41 = vmul.f32 0.70710677, %v67_v34  ;;  %v30_v52 = vld [vmem:[%s411_s0 + $0x78] sm:$0xff]  ;;  %s250_s0 = smov [#allocation2]  }
   0xd   :  { %202 = verf.f32 %v97_v32  ;;  %v100_v42 = vmul.f32 0.70710677, %v338_v35  ;;  %v349_v43 = vadd.f32 %v284_v2, %v46_v36  ;;  %v352_v44 = vadd.f32 %v284_v2, %v47_v37  ;;  %s178_s19 = sshll.u32 %s250_s0, 4  ;;  %s179_s19 = int_to_ptr.vmem [resolvable:$true] %s178_s19 }
   0xe   :  { %204 = verf.f32 %v98_v33  ;;  %v355_v45 = vadd.f32 %v284_v2, %v48_v38  ;;  %v358_v46 = vadd.f32 %v284_v2, %v49_v39  ;;  %v50_v47 = vmul.f32 %v279_v1, %v27_v40  ;;  %s226_s20 = scalar_lea.vmem %s179_s19, 2048  ;;  %p231_p1 = scmp.lt.s32.totalorder %s179_s19, %s179_s19 }
   0xf   :  { %206 = verf.f32 %v99_v41  ;;  %v77_v49 = vmul.f32 0.5, %v61_v13  ;;  %v101_v50 = vmul.f32 0.70710677, %v349_v43  ;;  %v78_v53 = vmul.f32 0.5, %v62_v17  ;;  %p227_p0 = scmp.ne.s32.totalorder %s179_s19, %s226_s20  ;;  %p232_p2 = scmp.lt.s32.totalorder %s226_s20, %s226_s20 }
  0x10   :  { %208 = verf.f32 %v100_v42  ;;  %v79_v54 = vmul.f32 0.5, %v63_v18  ;;  %v102_v55 = vmul.f32 0.70710677, %v352_v44  ;;  %v103_v56 = vmul.f32 0.70710677, %v355_v45 }
  0x11   :  { %210 = verf.f32 %v101_v50  ;;  %v104_v57 = vmul.f32 0.70710677, %v358_v46  ;;  %v375_v58 = vadd.f32 %v284_v2, %v50_v47  ;;  %v51_v59 = vmul.f32 %v279_v1, %v28_v48  ;;  %p233_p3 = por %p232_p2, %p231_p1 }
  0x12   :  { %v80_v61 = vmul.f32 0.5, %v64_v19  ;;  %212 = verf.f32 %v102_v55  ;;  %v52_v62 = vmul.f32 %v279_v1, %v29_v51  ;;  %v53_v63 = vmul.f32 %v279_v1, %v30_v52 }
  0x13   :  { %v195_v60 = vpop.eup %194  ;;  %v81_v4 = vmul.f32 0.5, %v65_v22  ;;  %214 = verf.f32 %v103_v56  ;;  %v105_v5 = vmul.f32 0.70710677, %v375_v58  ;;  %v74_v8 = vadd.f32 %v284_v2, %v51_v59  ;;  %p234_p4 = pnand %p233_p3, %p227_p0 }
  0x14   :  { %v197_v0 = vpop.eup %196  ;;  %v125_v3 = vadd.f32 1.0, %v195_v60  ;;  %216 = verf.f32 %v104_v57  ;;  %v383_v9 = vadd.f32 %v284_v2, %v52_v62  ;;  %v386_v1 = vadd.f32 %v284_v2, %v53_v63 }
  0x15   :  { %v199_v6 = vpop.eup %198  ;;  %v126_v7 = vadd.f32 1.0, %v197_v0  ;;  %218 = verf.f32 %v105_v5  ;;  %v82_v16 = vmul.f32 0.5, %v320_v23  ;;  %v106_v17 = vmul.f32 0.70710677, %v74_v8 }
  0x16   :  { %v201_v10 = vpop.eup %200  ;;  %v141_v11 = vmul.f32 %v125_v3, %v77_v49  ;;  %v127_v12 = vadd.f32 1.0, %v199_v6  ;;  %v83_v21 = vmul.f32 0.5, %v67_v34  ;;  %v107_v22 = vmul.f32 0.70710677, %v383_v9 }
  0x17   :  { %v203_v13 = vpop.eup %202  ;;  %v142_v14 = vmul.f32 %v126_v7, %v78_v53  ;;  %v128_v15 = vadd.f32 1.0, %v201_v10  ;;  %v84_v2 = vmul.f32 0.5, %v338_v35  ;;  %220 = verf.f32 %v106_v17 }
  0x18   :  { %v205_v18 = vpop.eup %204  ;;  %157 = vst [vmem:[#allocation2] sm:$0xff] %v141_v11  ;;  %v143_v19 = vmul.f32 %v127_v12, %v79_v54  ;;  %v129_v20 = vadd.f32 1.0, %v203_v13  ;;  %222 = verf.f32 %v107_v22  ;;  %v108_v23 = vmul.f32 0.70710677, %v386_v1 }
  0x19   :  { %v207_v24 = vpop.eup %206  ;;  %158 = vst [vmem:[#allocation2 + $0x8] sm:$0xff] %v142_v14  ;;  %v144_v25 = vmul.f32 %v128_v15, %v80_v61  ;;  %v130_v26 = vadd.f32 1.0, %v205_v18  ;;  %v85_v32 = vmul.f32 0.5, %v349_v43  ;;  %v86_v36 = vmul.f32 0.5, %v352_v44 }
  0x1a   :  { %v209_v27 = vpop.eup %208  ;;  %159 = vst [vmem:[#allocation2 + $0x10] sm:$0xff] %v143_v19  ;;  %v145_v28 = vmul.f32 %v129_v20, %v81_v4  ;;  %v131_v29 = vadd.f32 1.0, %v207_v24  ;;  %224 = verf.f32 %v108_v23  ;;  %v87_v39 = vmul.f32 0.5, %v355_v45 }
  0x1b   :  { %160 = vst [vmem:[#allocation2 + $0x18] sm:$0xff] %v144_v25  ;;  %v146_v30 = vmul.f32 %v130_v26, %v82_v16  ;;  %v132_v31 = vadd.f32 1.0, %v209_v27  ;;  %v211_v33 = vpop.eup %210  ;;  %v88_v42 = vmul.f32 0.5, %v358_v46  ;;  %v89_v49 = vmul.f32 0.5, %v375_v58 }
  0x1c   :  { %161 = vst [vmem:[#allocation2 + $0x20] sm:$0xff] %v145_v28  ;;  %v147_v34 = vmul.f32 %v131_v29, %v83_v21  ;;  %v213_v35 = vpop.eup %212  ;;  %v133_v38 = vadd.f32 1.0, %v211_v33  ;;  %v90_v45 = vmul.f32 0.5, %v74_v8  ;;  %v91_v46 = vmul.f32 0.5, %v383_v9 }
  0x1d   :  { %162 = vst [vmem:[#allocation2 + $0x28] sm:$0xff] %v146_v30  ;;  %v148_v37 = vmul.f32 %v132_v31, %v84_v2  ;;  %v215_v40 = vpop.eup %214  ;;  %v134_v41 = vadd.f32 1.0, %v213_v35  ;;  %v92_v58 = vmul.f32 0.5, %v386_v1 }
  0x1e   :  { %163 = vst [vmem:[#allocation2 + $0x30] sm:$0xff] %v147_v34  ;;  %v217_v47 = vpop.eup %216  ;;  %v149_v43 = vmul.f32 %v133_v38, %v85_v32  ;;  %v135_v48 = vadd.f32 1.0, %v215_v40 }
  0x1f   :  { %164 = vst [vmem:[#allocation2 + $0x38] sm:$0xff] %v148_v37  ;;  %v219_v50 = vpop.eup %218  ;;  %v150_v44 = vmul.f32 %v134_v41, %v86_v36  ;;  %v136_v51 = vadd.f32 1.0, %v217_v47 }
  0x20   :  { %165 = vst [vmem:[#allocation2 + $0x40] sm:$0xff] %v149_v43  ;;  %v151_v52 = vmul.f32 %v135_v48, %v87_v39  ;;  %v137_v53 = vadd.f32 1.0, %v219_v50 }
  0x21   :  { %166 = vst [vmem:[#allocation2 + $0x48] sm:$0xff] %v150_v44  ;;  %v152_v54 = vmul.f32 %v136_v51, %v88_v42  ;;  %v221_v55 = vpop.eup %220 }
  0x22   :  { %167 = vst [vmem:[#allocation2 + $0x50] sm:$0xff] %v151_v52  ;;  %v153_v56 = vmul.f32 %v137_v53, %v89_v49  ;;  %v223_v57 = vpop.eup %222  ;;  %v138_v59 = vadd.f32 1.0, %v221_v55 }
  0x23   :  { %168 = vst [vmem:[#allocation2 + $0x58] sm:$0xff] %v152_v54  ;;  %v139_v60 = vadd.f32 1.0, %v223_v57 }
  0x24   :  { %169 = vst [vmem:[#allocation2 + $0x60] sm:$0xff] %v153_v56  ;;  %v225_v61 = vpop.eup %224  ;;  %v154_v62 = vmul.f32 %v138_v59, %v90_v45 }
  0x25   :  { %v155_v63 = vmul.f32 %v139_v60, %v91_v46  ;;  %v140_v0 = vadd.f32 1.0, %v225_v61 }
  0x26   :  { %170 = vst [vmem:[#allocation2 + $0x68] sm:$0xff] %v154_v62 }
  0x27   :  { %171 = vst [vmem:[#allocation2 + $0x70] sm:$0xff] %v155_v63  ;;  %v156_v3 = vmul.f32 %v140_v0, %v92_v58 }
  0x29   :  { %172 = vst [vmem:[#allocation2 + $0x78] sm:$0xff] %v156_v3 }
  0x2a   :  { %237 = shalt.err (!%p234_p4)
}
  0x2b   :  { %s238_s23 = scalar_lea.hbm %s414_s3, 2048 }
  0x2c   :  { %p239_p5 = scmp.ne.s32.totalorder %s414_s3, %s238_s23  ;;  %p242_p6 = scmp.lt.u32.totalorder %s238_s23, %s414_s3 }
  0x2e   :  { %p244_p7 = pnand %p242_p6, %p239_p5 }
  0x30   :  { %247 = shalt.err (!%p244_p7)
}
  0x31   :  { %s251_s26 = smov 128   ;;  %s252_s27 = smov 8  }
  0x32   :  { %184 = dma.vmem_to_hbm [thread:$0]  %s179_s19, 2048, %s414_s3, [#allocation3], %s251_s26, %s251_s26, %s252_s27  }
  0x33   :  { %248 = dma.done.wait [#allocation3], 2048  }
  0x34   :  { %249 = vsyncadd [#allocation3], 4294965248 }
  0x35   :  { %188 = vsyncpa [#allocation3], 1 }

// kernel: conv_bn_gelu.2
= control target key start
LH: loop header
LB: loop body
LE: loop exit
PB: predicated region body
PF: predicated region fallthrough
CT: control target
= control target key end

     0   :  { %s11120_s18 = smov 0   ;;  %s13381_s0 = inlined_call_operand.vmem [shape: bf16[16,9,384], index: 0, kind: input, shape index: {}]   ;;  %s13382_s1 = inlined_call_operand.vmem [shape: bf16[16,9,384], index: 1, kind: input, shape index: {}]   ;;  %s13383_s2 = inlined_call_operand.vmem [shape: bf16[3,384,128], index: 2, kind: input, shape index: {}]   ;;  %s13384_s3 = inlined_call_operand.vmem [shape: f32[16,8,128], index: 3, kind: output, shape index: {0}]   ;;  %s13385_s4 = inlined_call_operand.vmem [shape: f32[2,1,128], index: 4, kind: output, shape index: {1}]   ;;  %s13386_s5 = inlined_call_operand.vmem [shape: f32[2,1,128], index: 5, kind: output, shape index: {2}]  }
   0x1 LB: > { %s11126_s19 = sadd.s32 4294967295, %s11086_s18   ;;  %p7621_p0 = scmp.ge.s32.totalorder %s11086_s18, 1  ;;  %s11086_s18 = sphi %s11120_s18, %s16_s18  }
   0x2   : > { %p206_p1 = scmp.lt.s32.totalorder %s11086_s18, 3 }
   0x4   : > { %p207_p2 = pnand %p7621_p0, %p206_p1 }
   0x5   : > { %v10432_v0 = vld [vmem:[%s13383_s2 + $0x100] sm:$0xff] (!%p207_p2)   ;;  %v11088_v1 = vmov (!%p207_p2), 0.0   ;;  %v10435_v4 = vld [vmem:[%s13383_s2 + $0x108] sm:$0xff] (!%p207_p2)   ;;  %vm11089_vm0 = vmmov (!%p207_p2), 0   ;;  %v10438_v7 = vld [vmem:[%s13383_s2 + $0x110] sm:$0xff] (!%p207_p2)   ;;  %s7622_s9 = sshll.u32 (!%p207_p2), %s11126_s19, 3 }
   0x6   : > { %210 = sbr.rel (%p207_p2) target bundleno = 1011 (0x3f3), region = 32  ;;  %9853 = vmatprep.subr.bf16.mxu1 (!%p207_p2), %v11088_v1  ;;  %v10433_v2 = vld [vmem:[%s13383_s2 + $0x140] sm:$0xff] (!%p207_p2)   ;;  %9109 = vmatprep.subr.bf16.mxu0 (!%p207_p2), %v10432_v0  ;;  %v10436_v5 = vld [vmem:[%s13383_s2 + $0x148] sm:$0xff] (!%p207_p2)   ;;  %v10439_v8 = vld [vmem:[%s13383_s2 + $0x150] sm:$0xff] (!%p207_p2)   ;;  %p248_p3 = scmp.lt.s32.totalorder (!%p207_p2), %s7622_s9, 15 }
   0x7   : > { %v10434_v3 = vld [vmem:[%s13383_s2 + $0xc0] sm:$0xff] (!%p207_p2)   ;;  %9854 = vmatpush3.bf16.msra.mxu1 (!%p207_p2), %v10433_v2  ;;  %v10437_v6 = vld [vmem:[%s13383_s2 + $0xc8] sm:$0xff] (!%p207_p2)   ;;  %9869 = vmatprep.mubr.msk.bf16.mxu1 (!%p207_p2), %vm11089_vm0, %v11088_v1  ;;  %v10440_v9 = vld [vmem:[%s13383_s2 + $0xd0] sm:$0xff] (!%p207_p2)   ;;  %p267_p4 = scmp.lt.s32.totalorder (!%p207_p2), %s11126_s19, 1 }
   0x8   : > { %9110 = vmatpush3.bf16.msra.mxu0 (!%p207_p2), %v10434_v3  ;;  %9855 = vmatprep.subr.bf16.mxu1 (!%p207_p2), %v11088_v1  ;;  %v10441_v10 = vld [vmem:[%s13383_s2 + $0x118] sm:$0xff] (!%p207_p2)   ;;  %v10444_v13 = vld [vmem:[%s13383_s2 + $0x120] sm:$0xff] (!%p207_p2)   ;;  %v10447_v16 = vld [vmem:[%s13383_s2 + $0x128] sm:$0xff] (!%p207_p2)  }
   0x9   : > { %9111 = vmatprep.subr.bf16.mxu0 (!%p207_p2), %v10435_v4  ;;  %v10442_v11 = vld [vmem:[%s13383_s2 + $0x158] sm:$0xff] (!%p207_p2)   ;;  %v10445_v14 = vld [vmem:[%s13383_s2 + $0x160] sm:$0xff] (!%p207_p2)   ;;  %v10448_v17 = vld [vmem:[%s13383_s2 + $0x168] sm:$0xff] (!%p207_p2)  }
   0xa   : > { %v10443_v12 = vld [vmem:[%s13383_s2 + $0xd8] sm:$0xff] (!%p207_p2)   ;;  %v10446_v15 = vld [vmem:[%s13383_s2 + $0xe0] sm:$0xff] (!%p207_p2)   ;;  %v10449_v18 = vld [vmem:[%s13383_s2 + $0xe8] sm:$0xff] (!%p207_p2)  }
   0xb   : > { %9856 = vmatpush3.bf16.msra.mxu1 (!%p207_p2), %v10436_v5  ;;  %v10450_v19 = vld [vmem:[%s13383_s2 + $0x130] sm:$0xff] (!%p207_p2)   ;;  %v10453_v23 = vld [vmem:[%s13383_s2 + $0x138] sm:$0xff] (!%p207_p2)   ;;  %v10459_v27 = vld [vmem:[%s13383_s2 + $0x40] sm:$0xff] (!%p207_p2)  }
   0xc   : > { %9112 = vmatpush3.bf16.msra.mxu0 (!%p207_p2), %v10437_v6  ;;  %9857 = vmatprep.subr.bf16.mxu1 (!%p207_p2), %v11088_v1  ;;  %v10451_v20 = vld [vmem:[%s13383_s2 + $0x170] sm:$0xff] (!%p207_p2)   ;;  %v10454_v25 = vld [vmem:[%s13383_s2 + $0x178] sm:$0xff] (!%p207_p2)   ;;  %v10460_v30 = vld [vmem:[%s13383_s2 + $0x80] sm:$0xff] (!%p207_p2)  }
   0xd   : > { %9113 = vmatprep.subr.bf16.mxu0 %v10438_v7  ;;  %s13388_s9 = smov (!%p248_p3, %s7622_s9), 15  ;;  %v10452_v21 = vld [vmem:[%s13383_s2 + $0xf0] sm:$0xff]   ;;  %v10455_v26 = vld [vmem:[%s13383_s2 + $0xf8] sm:$0xff]   ;;  %v10461_v31 = vld [vmem:[%s13383_s2] sm:$0xff]   ;;  %s13390_s19 = smov (!%p267_p4, %s11126_s19), 1 }
   0xe   : > { %s10421_s30 = smul.u32 24, %s13388_s9  ;;  %v10462_v32 = vld [vmem:[%s13383_s2 + $0x48] sm:$0xff]   ;;  %v10465_v35 = vld [vmem:[%s13383_s2 + $0x50] sm:$0xff]   ;;  %v10468_v38 = vld [vmem:[%s13383_s2 + $0x58] sm:$0xff]   ;;  %s7627_s6 = sshll.u32 %s13388_s9, 3 }
   0xf   : > { %9858 = vmatpush3.bf16.msra.mxu1 %v10439_v8  ;;  %v10463_v33 = vld [vmem:[%s13383_s2 + $0x88] sm:$0xff]   ;;  %v10466_v36 = vld [vmem:[%s13383_s2 + $0x90] sm:$0xff]   ;;  %v10469_v39 = vld [vmem:[%s13383_s2 + $0x98] sm:$0xff]   ;;  %s269_s10 = scalar_lea.vmem %s13385_s4, %s13390_s19  ;;  %s272_s12 = scalar_lea.vmem %s13386_s5, %s13390_s19 }
  0x10   : > { %9114 = vmatpush3.bf16.msra.mxu0 %v10440_v9  ;;  %9859 = vmatprep.subr.bf16.mxu1 %v11088_v1  ;;  %s11204_s15 = scalar_lea.vmem %s13382_s1, %s10421_s30  ;;  %v10464_v34 = vld [vmem:[%s13383_s2 + $0x8] sm:$0xff]   ;;  %v10467_v37 = vld [vmem:[%s13383_s2 + $0x10] sm:$0xff]   ;;  %v10470_v40 = vld [vmem:[%s13383_s2 + $0x18] sm:$0xff]   ;;  %s11275_s13 = scalar_lea.vmem %s13381_s0, %s10421_s30 }
  0x11   : > { %9115 = vmatprep.subr.bf16.mxu0 %v10441_v10  ;;  %v324_v22 = vld [vmem:[%s11204_s15] sm:$0xff]  ;;  %v10458_v28 = vld [vmem:[%s11204_s15 + $0x8] ss:$0 sps:$4 sm:$0xff]   ;;  %v10477_v49 = vld [vmem:[%s13383_s2 + $0x70] sm:$0xff]   ;;  %s12035_s30 = scalar_lea.vmem %s13384_s3, %s7627_s6 }
  0x12   : > { %v7677_v24 = vcombine.high %v324_v22, %v324_v22  ;;  %v7676_v29 = vcombine.low %v324_v22, %v324_v22  ;;  %v10471_v41 = vld [vmem:[%s13383_s2 + $0x60] sm:$0xff]   ;;  %v10474_v44 = vld [vmem:[%s13383_s2 + $0x68] sm:$0xff]   ;;  %v10478_v50 = vld [vmem:[%s13383_s2 + $0xb0] sm:$0xff]  }
  0x13   : > { %9860 = vmatpush3.bf16.msra.mxu1 %v10442_v11  ;;  %v10472_v42 = vld [vmem:[%s13383_s2 + $0xa0] sm:$0xff]   ;;  %v10475_v47 = vld [vmem:[%s13383_s2 + $0xa8] sm:$0xff]   ;;  %v10479_v51 = vld [vmem:[%s13383_s2 + $0x30] sm:$0xff]  }
  0x14   : > { %9116 = vmatpush3.bf16.msra.mxu0 %v10443_v12  ;;  %9861 = vmatprep.subr.bf16.mxu1 %v11088_v1  ;;  %v10473_v43 = vld [vmem:[%s13383_s2 + $0x20] sm:$0xff]   ;;  %v10476_v48 = vld [vmem:[%s13383_s2 + $0x28] sm:$0xff]   ;;  %v10480_v52 = vld [vmem:[%s13383_s2 + $0x78] sm:$0xff]  }
  0x15   : > { %9117 = vmatprep.subr.bf16.mxu0 %v10444_v13  ;;  %562 = vmatprep.mubr.bf16.mxu0 %v7677_v24  ;;  %v11288_v45 = vld [vmem:[%s11275_s13] sm:$0xff]  ;;  %v10481_v53 = vld [vmem:[%s13383_s2 + $0xb8] sm:$0xff]   ;;  %v10485_v56 = vld [vmem:[%s11275_s13 + $0x8] ss:$0 sps:$4 sm:$0xff]  }
  0x16   : > { %v7704_v46 = vcombine.high %v11288_v45, %v11288_v45  ;;  %v10482_v54 = vld [vmem:[%s13383_s2 + $0x38] sm:$0xff]   ;;  %v10486_v55 = vld [vmem:[%s13383_s2 + $0x1c0] sm:$0xff]   ;;  %v7703_v57 = vcombine.low %v11288_v45, %v11288_v45  ;;  %v10489_v60 = vld [vmem:[%s13383_s2 + $0x1c8] sm:$0xff]  }
  0x17   : > { %9862 = vmatpush3.bf16.msra.mxu1 %v10445_v14  ;;  %v10487_v58 = vld [vmem:[%s13383_s2 + $0x200] sm:$0xff]   ;;  %v10490_v61 = vld [vmem:[%s13383_s2 + $0x208] sm:$0xff]   ;;  %v10492_v63 = vld [vmem:[%s13383_s2 + $0x1d0] sm:$0xff]  }
  0x18   : > { %9118 = vmatpush3.bf16.msra.mxu0 %v10446_v15  ;;  %9863 = vmatprep.subr.bf16.mxu1 %v11088_v1  ;;  %v10488_v59 = vld [vmem:[%s13383_s2 + $0x180] sm:$0xff]   ;;  %v10491_v62 = vld [vmem:[%s13383_s2 + $0x188] sm:$0xff]   ;;  %v10493_v0 = vld [vmem:[%s13383_s2 + $0x210] sm:$0xff]  }
  0x19   : > { %9119 = vmatprep.subr.bf16.mxu0 %v10447_v16  ;;  %v10494_v2 = vld [vmem:[%s13383_s2 + $0x190] sm:$0xff]   ;;  %v10495_v3 = vld [vmem:[%s13383_s2 + $0x1d8] sm:$0xff]   ;;  %v10498_v8 = vld [vmem:[%s13383_s2 + $0x1e0] sm:$0xff]  }
  0x1a   : > { %v847_v4 = vld [vmem:[%s11275_s13 + $0xc] sm:$0x11]  ;;  %v10496_v5 = vld [vmem:[%s13383_s2 + $0x218] sm:$0xff]   ;;  %v10499_v11 = vld [vmem:[%s13383_s2 + $0x220] sm:$0xff]  }
  0x1b   : > { %9864 = vmatpush3.bf16.msra.mxu1 %v10448_v17  ;;  %v10497_v6 = vld [vmem:[%s13383_s2 + $0x198] sm:$0xff]   ;;  %v7779_v7 = vcombine.high %v11288_v45, %v847_v4  ;;  %v10500_v13 = vld [vmem:[%s13383_s2 + $0x1a0] sm:$0xff]   ;;  %v10512_v14 = vld [vmem:[%s11275_s13 + $0x8] ss:$12 sps:$4 sm:$0x1f]  }
  0x1c   : > { %9120 = vmatpush3.bf16.msra.mxu0 %v10449_v18  ;;  %9865 = vmatprep.subr.bf16.mxu1 %v11088_v1  ;;  %v10501_v15 = vld [vmem:[%s13383_s2 + $0x1e8] sm:$0xff]   ;;  %v7778_v18 = vcombine.low %v11288_v45, %v847_v4  ;;  %v928_v22 = vshll.u32 %v10512_v14, 16  ;;  %v10522_v45 = vld [vmem:[%s13383_s2 + $0x118] sm:$0xff]  }
  0x1d   : > { %9121 = vmatprep.subr.bf16.mxu0 %v10450_v19  ;;  %v919_v9 = vshrl.u32 %v7779_v7, 16  ;;  %v921_v10 = vshll.u32 %v7779_v7, 16  ;;  %v10502_v17 = vld [vmem:[%s13383_s2 + $0x228] sm:$0xff]   ;;  %v10546_v7 = vld [vmem:[%s13383_s2 + $0x50] sm:$0xff]  }
  0x1e   : > { %v10503_v19 = vld [vmem:[%s13383_s2 + $0x1a8] sm:$0xff]   ;;  %v914_v24 = vshll.u32 %v7778_v18, 16 }
  0x1f   : > { %9866 = vmatpush3.bf16.msra.mxu1 %v10451_v20  ;;  %v923_v12 = vrot.slane %v921_v10, 1  ;;  %v10504_v20 = vld [vmem:[%s13383_s2 + $0x1f0] sm:$0xff]   ;;  %v10549_v10 = vld [vmem:[%s13383_s2 + $0x58] sm:$0xff]  }
  0x20   : > { %9122 = vmatpush3.bf16.msra.mxu0 %v10452_v21  ;;  %9867 = vmatprep.subr.bf16.mxu1 %v11088_v1  ;;  %v10505_v21 = vld [vmem:[%s13383_s2 + $0x230] sm:$0xff]  }
  0x21   : > { %9123 = vmatprep.subr.bf16.mxu0 %v10453_v23  ;;  %v924_v16 = vor.u32 %v923_v12, %v919_v9  ;;  %v10506_v23 = vld [vmem:[%s13383_s2 + $0x1b0] sm:$0xff]   ;;  %v10551_v12 = vld [vmem:[%s13383_s2 + $0x18] sm:$0xff]  }
  0x22   : > { %v10548_v9 = vld [vmem:[%s13383_s2 + $0x10] sm:$0xff]  }
  0x23   : > { %9868 = vmatpush3.bf16.msra.mxu1 %v10454_v25  ;;  %v10507_v25 = vld [vmem:[%s13383_s2 + $0x1f8] sm:$0xff]  }
  0x24   : > { %9124 = vmatpush3.bf16.msra.mxu0 %v10455_v26  ;;  %9873 = vmatprep.subr.bf16.mxu1 %v11088_v1  ;;  %v10508_v26 = vld [vmem:[%s13383_s2 + $0x238] sm:$0xff]  }
  0x25   : > { %9140 = vmatprep.subr.bf16.mxu0 %v10459_v27  ;;  %v926_v27 = vshrl.u32 %v10512_v14, 16  ;;  %v10553_v14 = vld [vmem:[%s13383_s2 + $0xa0] sm:$0xff]  }
  0x26   : > { %9870 = vmatmul.mubr.bf16.vlgmr.msra.gmra.mrb[0].mxu1 %v10458_v28  ;;  %v930_v28 = vrot.slane %v928_v22, 1  ;;  %v10560_v22 = vld [vmem:[%s13383_s2 + $0x30] sm:$0xff]  }
  0x27   : > { %563 = vmatmul.mubr.bf16.vlgmr.msra.gmra.mrb[0].mxu0 %v7676_v29  ;;  %9874 = vmatpush3.bf16.msra.mxu1 %v10460_v30  ;;  %v912_v29 = vshrl.u32 %v7778_v18, 16  ;;  %v916_v30 = vrot.slane %v914_v24, 1  ;;  %v10557_v18 = vld [vmem:[%s13383_s2 + $0x28] sm:$0xff]   ;;  %v10561_v24 = vld [vmem:[%s13383_s2 + $0x78] sm:$0xff]  }
  0x28   : > { %9141 = vmatpush3.bf16.msra.mxu0 %v10461_v31  ;;  %9875 = vmatprep.subr.bf16.mxu1 %v11088_v1  ;;  %v10509_v31 = vld [vmem:[%s13383_s2 + $0x1b8] sm:$0xff]  }
  0x29   : > { %9142 = vmatprep.subr.bf16.mxu0 %v10462_v32  ;;  %9889 = vmatprep.mubr.msk.bf16.mxu1 %vm11089_vm0, %v11088_v1  ;;  %v10513_v32 = vld [vmem:[%s13383_s2 + $0x100] sm:$0xff]  }
  0x2a   : > { %797 = vmatprep.mubr.bf16.mxu0 %v7704_v46  ;;  %v10523_v46 = vld [vmem:[%s13383_s2 + $0x158] sm:$0xff]  }
  0x2b   : > { %9876 = vmatpush3.bf16.msra.mxu1 %v10463_v33  ;;  %v931_v33 = vor.u32 %v930_v28, %v926_v27  ;;  %v10563_v27 = vld [vmem:[%s13383_s2 + $0x38] sm:$0xff]   ;;  %v10566_v28 = vld [vmem:[%s11275_s13 + $0x20] ss:$0 sps:$4 sm:$0xff]  }
  0x2c   : > { %9143 = vmatpush3.bf16.msra.mxu0 %v10464_v34  ;;  %9877 = vmatprep.subr.bf16.mxu1 %v11088_v1  ;;  %v917_v34 = vor.u32 %v916_v30, %v912_v29  ;;  %v10567_v29 = vld [vmem:[%s13383_s2 + $0x1c0] sm:$0xff]  }
  0x2d   : > { %9144 = vmatprep.subr.bf16.mxu0 %v10465_v35  ;;  %v10514_v35 = vld [vmem:[%s13383_s2 + $0x140] sm:$0xff]  }
  0x2f   : > { %9878 = vmatpush3.bf16.msra.mxu1 %v10466_v36  ;;  %v10515_v36 = vld [vmem:[%s13383_s2 + $0xc0] sm:$0xff]  }
  0x30   : > { %9145 = vmatpush3.bf16.msra.mxu0 %v10467_v37  ;;  %9879 = vmatprep.subr.bf16.mxu1 %v11088_v1  ;;  %v10516_v37 = vld [vmem:[%s13383_s2 + $0x108] sm:$0xff]  }
  0x31   : > { %9146 = vmatprep.subr.bf16.mxu0 %v10468_v38  ;;  %v10517_v38 = vld [vmem:[%s13383_s2 + $0x148] sm:$0xff]  }
  0x33   : > { %9880 = vmatpush3.bf16.msra.mxu1 %v10469_v39  ;;  %v10518_v39 = vld [vmem:[%s13383_s2 + $0xc8] sm:$0xff]  }
  0x34   : > { %9147 = vmatpush3.bf16.msra.mxu0 %v10470_v40  ;;  %9881 = vmatprep.subr.bf16.mxu1 %v11088_v1  ;;  %v7807_v40 = vld [vmem:[%s11204_s15 + $0x18] sm:$0xff] }
  0x35   : > { %9148 = vmatprep.subr.bf16.mxu0 %v10471_v41  ;;  %v10519_v41 = vld [vmem:[%s13383_s2 + $0x110] sm:$0xff]  }
  0x37   : > { %9882 = vmatpush3.bf16.msra.mxu1 %v10472_v42  ;;  %v7858_v42 = vcombine.high %v7807_v40, %v7807_v40 }
  0x38   : > { %9149 = vmatpush3.bf16.msra.mxu0 %v10473_v43  ;;  %9883 = vmatprep.subr.bf16.mxu1 %v11088_v1  ;;  %v10520_v43 = vld [vmem:[%s13383_s2 + $0x150] sm:$0xff]  }
  0x39   : > { %9150 = vmatprep.subr.bf16.mxu0 %v10474_v44  ;;  %v10521_v44 = vld [vmem:[%s13383_s2 + $0xd0] sm:$0xff]  }
  0x3b   : > { %9884 = vmatpush3.bf16.msra.mxu1 %v10475_v47  ;;  %v10524_v47 = vld [vmem:[%s13383_s2 + $0xd8] sm:$0xff]  }
  0x3c   : > { %9151 = vmatpush3.bf16.msra.mxu0 %v10476_v48  ;;  %9885 = vmatprep.subr.bf16.mxu1 %v11088_v1  ;;  %v10525_v48 = vld [vmem:[%s13383_s2 + $0x120] sm:$0xff]  }
  0x3d   : > { %9152 = vmatprep.subr.bf16.mxu0 %v10477_v49  ;;  %v10526_v49 = vld [vmem:[%s13383_s2 + $0x160] sm:$0xff]  }
  0x3f   : > { %9886 = vmatpush3.bf16.msra.mxu1 %v10478_v50  ;;  %v10527_v50 = vld [vmem:[%s13383_s2 + $0xe0] sm:$0xff]  }
  0x40   : > { %9153 = vmatpush3.bf16.msra.mxu0 %v10479_v51  ;;  %9887 = vmatprep.subr.bf16.mxu1 %v11088_v1  ;;  %v10528_v51 = vld [vmem:[%s13383_s2 + $0x128] sm:$0xff]  }
  0x41   : > { %9154 = vmatprep.subr.bf16.mxu0 %v10480_v52  ;;  %v10529_v52 = vld [vmem:[%s13383_s2 + $0x168] sm:$0xff]  }
  0x43   : > { %9888 = vmatpush3.bf16.msra.mxu1 %v10481_v53  ;;  %v10530_v53 = vld [vmem:[%s13383_s2 + $0xe8] sm:$0xff]  }
  0x44   : > { %9155 = vmatpush3.bf16.msra.mxu0 %v10482_v54  ;;  %9893 = vmatprep.subr.bf16.mxu1 %v11088_v1  ;;  %v10531_v54 = vld [vmem:[%s13383_s2 + $0x130] sm:$0xff]  }
  0x45   : > { %9171 = vmatprep.subr.bf16.mxu0 %v10486_v55  ;;  %v10532_v55 = vld [vmem:[%s13383_s2 + $0x170] sm:$0xff]  }
  0x46   : > { %9890 = vmatmul.mubr.bf16.vlgmr.msra.gmra.mrb[0].mxu1 %v10485_v56  ;;  %v10533_v56 = vld [vmem:[%s13383_s2 + $0xf0] sm:$0xff]  }
  0x47   : > { %798 = vmatmul.mubr.bf16.vlgmr.msra.gmra.mrb[4].mxu0 %v7703_v57  ;;  %9894 = vmatpush3.bf16.msra.mxu1 %v10487_v58  ;;  %v10534_v57 = vld [vmem:[%s13383_s2 + $0x138] sm:$0xff]  }
  0x48   : > { %9172 = vmatpush3.bf16.msra.mxu0 %v10488_v59  ;;  %9895 = vmatprep.subr.bf16.mxu1 %v11088_v1  ;;  %v10535_v58 = vld [vmem:[%s13383_s2 + $0x178] sm:$0xff]  }
  0x49   : > { %9173 = vmatprep.subr.bf16.mxu0 %v10489_v60  ;;  %9909 = vmatprep.mubr.msk.bf16.mxu1 %vm11089_vm0, %v11088_v1  ;;  %v10536_v59 = vld [vmem:[%s13383_s2 + $0xf8] sm:$0xff]   ;;  %v10539_v60 = vld [vmem:[%s11204_s15 + $0x20] ss:$0 sps:$4 sm:$0xff]  }
  0x4a   : > { %1111 = vmatprep.mubr.bf16.mxu0 %v924_v16  ;;  %v10555_v16 = vld [vmem:[%s13383_s2 + $0x68] sm:$0xff]  }
  0x4b   : > { %9896 = vmatpush3.bf16.msra.mxu1 %v10490_v61  ;;  %v10540_v61 = vld [vmem:[%s13383_s2 + $0x40] sm:$0xff]  }
  0x4c   : > { %9174 = vmatpush3.bf16.msra.mxu0 %v10491_v62  ;;  %9897 = vmatprep.subr.bf16.mxu1 %v11088_v1  ;;  %v11496_v62 = vld [vmem:[%s11275_s13 + $0x18] sm:$0xff] }
  0x4d   : > { %9175 = vmatprep.subr.bf16.mxu0 %v10492_v63  ;;  %v7857_v63 = vcombine.low %v7807_v40, %v7807_v40  ;;  %v7885_v4 = vcombine.high %v11496_v62, %v11496_v62  ;;  %v10574_v40 = vld [vmem:[%s13383_s2 + $0x210] sm:$0xff]  }
  0x4f   : > { %9898 = vmatpush3.bf16.msra.mxu1 %v10493_v0  ;;  %v10541_v0 = vld [vmem:[%s13383_s2 + $0x80] sm:$0xff]  }
  0x50   : > { %9176 = vmatpush3.bf16.msra.mxu0 %v10494_v2  ;;  %9899 = vmatprep.subr.bf16.mxu1 %v11088_v1  ;;  %v10542_v2 = vld [vmem:[%s13383_s2] sm:$0xff]  }
  0x51   : > { %9177 = vmatprep.subr.bf16.mxu0 %v10495_v3  ;;  %v10543_v3 = vld [vmem:[%s13383_s2 + $0x48] sm:$0xff]  }
  0x53   : > { %9900 = vmatpush3.bf16.msra.mxu1 %v10496_v5  ;;  %v10544_v5 = vld [vmem:[%s13383_s2 + $0x88] sm:$0xff]  }
  0x54   : > { %9178 = vmatpush3.bf16.msra.mxu0 %v10497_v6  ;;  %9901 = vmatprep.subr.bf16.mxu1 %v11088_v1  ;;  %v10545_v6 = vld [vmem:[%s13383_s2 + $0x8] sm:$0xff]  }
  0x55   : > { %9179 = vmatprep.subr.bf16.mxu0 %v10498_v8  ;;  %v10547_v8 = vld [vmem:[%s13383_s2 + $0x90] sm:$0xff]  }
  0x57   : > { %9902 = vmatpush3.bf16.msra.mxu1 %v10499_v11  ;;  %v10550_v11 = vld [vmem:[%s13383_s2 + $0x98] sm:$0xff]  }
  0x58   : > { %9180 = vmatpush3.bf16.msra.mxu0 %v10500_v13  ;;  %9903 = vmatprep.subr.bf16.mxu1 %v11088_v1  ;;  %v10552_v13 = vld [vmem:[%s13383_s2 + $0x60] sm:$0xff]  }
  0x59   : > { %9181 = vmatprep.subr.bf16.mxu0 %v10501_v15  ;;  %v10554_v15 = vld [vmem:[%s13383_s2 + $0x20] sm:$0xff]  }
  0x5b   : > { %9904 = vmatpush3.bf16.msra.mxu1 %v10502_v17  ;;  %v10556_v17 = vld [vmem:[%s13383_s2 + $0xa8] sm:$0xff]  }
  0x5c   : > { %9182 = vmatpush3.bf16.msra.mxu0 %v10503_v19  ;;  %9905 = vmatprep.subr.bf16.mxu1 %v11088_v1  ;;  %v10558_v19 = vld [vmem:[%s13383_s2 + $0x70] sm:$0xff]  }
  0x5d   : > { %9183 = vmatprep.subr.bf16.mxu0 %v10504_v20  ;;  %v11563_v20 = vld [vmem:[%s11275_s13 + $0x24] sm:$0x11] }
  0x5f   : > { %9906 = vmatpush3.bf16.msra.mxu1 %v10505_v21  ;;  %v10559_v21 = vld [vmem:[%s13383_s2 + $0xb0] sm:$0xff]  }
  0x60   : > { %9184 = vmatpush3.bf16.msra.mxu0 %v10506_v23  ;;  %9907 = vmatprep.subr.bf16.mxu1 %v11088_v1  ;;  %v7964_v23 = vcombine.high %v11496_v62, %v11563_v20 }
  0x61   : > { %9185 = vmatprep.subr.bf16.mxu0 %v10507_v25  ;;  %v10562_v25 = vld [vmem:[%s13383_s2 + $0xb8] sm:$0xff]  }
  0x62   : > { %v1821_v30 = vshrl.u32 %v7964_v23, 16 }
  0x63   : > { %9908 = vmatpush3.bf16.msra.mxu1 %v10508_v26  ;;  %v1823_v26 = vshll.u32 %v7964_v23, 16  ;;  %v10611_v23 = vld [vmem:[%s13383_s2 + $0xe8] sm:$0xff]  }
  0x64   : > { %9186 = vmatpush3.bf16.msra.mxu0 %v10509_v31  ;;  %9913 = vmatprep.subr.bf16.mxu1 %v11088_v1 }
  0x65   : > { %9202 = vmatprep.subr.bf16.mxu0 %v10513_v32  ;;  %v1825_v31 = vrot.slane %v1823_v26, 1  ;;  %v7884_v32 = vcombine.low %v11496_v62, %v11496_v62  ;;  %v10614_v26 = vld [vmem:[%s13383_s2 + $0xf0] sm:$0xff]  }
  0x66   : > { %9910 = vmatmul.mubr.bf16.vlgmr.msra.gmra.mrb[0].mxu1 %v931_v33  ;;  %v10568_v33 = vld [vmem:[%s13383_s2 + $0x200] sm:$0xff]  }
  0x67   : > { %1112 = vmatmul.mubr.bf16.vlgmr.msra.gmra.mrb[8].mxu0 %v917_v34  ;;  %9914 = vmatpush3.bf16.msra.mxu1 %v10514_v35  ;;  %v10569_v34 = vld [vmem:[%s13383_s2 + $0x180] sm:$0xff]   ;;  %v10570_v35 = vld [vmem:[%s13383_s2 + $0x1c8] sm:$0xff]  }
  0x68   : > { %9203 = vmatpush3.bf16.msra.mxu0 %v10515_v36  ;;  %9915 = vmatprep.subr.bf16.mxu1 %v11088_v1  ;;  %v1826_v36 = vor.u32 %v1825_v31, %v1821_v30  ;;  %v10620_v30 = vld [vmem:[%s11204_s15 + $0x38] ss:$0 sps:$4 sm:$0xff]   ;;  %v10621_v31 = vld [vmem:[%s13383_s2 + $0x40] sm:$0xff]  }
  0x69   : > { %9204 = vmatprep.subr.bf16.mxu0 %v10516_v37  ;;  %9929 = vmatprep.mubr.msk.bf16.mxu1 %vm11089_vm0, %v11088_v1  ;;  %v10571_v37 = vld [vmem:[%s13383_s2 + $0x208] sm:$0xff]  }
  0x6a   : > { %1465 = vmatprep.mubr.bf16.mxu0 %v7858_v42  ;;  %v10576_v42 = vld [vmem:[%s13383_s2 + $0x1d8] sm:$0xff]  }
  0x6b   : > { %9916 = vmatpush3.bf16.msra.mxu1 %v10517_v38  ;;  %v10572_v38 = vld [vmem:[%s13383_s2 + $0x188] sm:$0xff]  }
  0x6c   : > { %9205 = vmatpush3.bf16.msra.mxu0 %v10518_v39  ;;  %9917 = vmatprep.subr.bf16.mxu1 %v11088_v1  ;;  %v10573_v39 = vld [vmem:[%s13383_s2 + $0x1d0] sm:$0xff]  }
  0x6d   : > { %9206 = vmatprep.subr.bf16.mxu0 %v10519_v41  ;;  %v10575_v41 = vld [vmem:[%s13383_s2 + $0x190] sm:$0xff]  }
  0x6f   : > { %9918 = vmatpush3.bf16.msra.mxu1 %v10520_v43  ;;  %v10577_v43 = vld [vmem:[%s13383_s2 + $0x218] sm:$0xff]  }
  0x70   : > { %9207 = vmatpush3.bf16.msra.mxu0 %v10521_v44  ;;  %9919 = vmatprep.subr.bf16.mxu1 %v11088_v1  ;;  %v10578_v44 = vld [vmem:[%s13383_s2 + $0x198] sm:$0xff]  }
  0x71   : > { %9208 = vmatprep.subr.bf16.mxu0 %v10522_v45  ;;  %v10579_v45 = vld [vmem:[%s13383_s2 + $0x1e0] sm:$0xff]  }
  0x73   : > { %9920 = vmatpush3.bf16.msra.mxu1 %v10523_v46  ;;  %v10580_v46 = vld [vmem:[%s13383_s2 + $0x220] sm:$0xff]  }
  0x74   : > { %9209 = vmatpush3.bf16.msra.mxu0 %v10524_v47  ;;  %9921 = vmatprep.subr.bf16.mxu1 %v11088_v1  ;;  %v10581_v47 = vld [vmem:[%s13383_s2 + $0x1a0] sm:$0xff]  }
  0x75   : > { %9210 = vmatprep.subr.bf16.mxu0 %v10525_v48  ;;  %v10593_v48 = vld [vmem:[%s11275_s13 + $0x20] ss:$12 sps:$4 sm:$0x1f]  }
  0x77   : > { %9922 = vmatpush3.bf16.msra.mxu1 %v10526_v49  ;;  %v10582_v49 = vld [vmem:[%s13383_s2 + $0x1e8] sm:$0xff]  }
  0x78   : > { %9211 = vmatpush3.bf16.msra.mxu0 %v10527_v50  ;;  %9923 = vmatprep.subr.bf16.mxu1 %v11088_v1  ;;  %v10583_v50 = vld [vmem:[%s13383_s2 + $0x228] sm:$0xff]  }
  0x79   : > { %9212 = vmatprep.subr.bf16.mxu0 %v10528_v51  ;;  %v7963_v51 = vcombine.low %v11496_v62, %v11563_v20  ;;  %v10608_v20 = vld [vmem:[%s13383_s2 + $0xe0] sm:$0xff]  }
  0x7b   : > { %9924 = vmatpush3.bf16.msra.mxu1 %v10529_v52  ;;  %v10584_v52 = vld [vmem:[%s13383_s2 + $0x1a8] sm:$0xff]   ;;  %v1814_v62 = vshrl.u32 %v7963_v51, 16 }
  0x7c   : > { %9213 = vmatpush3.bf16.msra.mxu0 %v10530_v53  ;;  %9925 = vmatprep.subr.bf16.mxu1 %v11088_v1  ;;  %v10585_v53 = vld [vmem:[%s13383_s2 + $0x1f0] sm:$0xff]  }
  0x7d   : > { %9214 = vmatprep.subr.bf16.mxu0 %v10531_v54  ;;  %v10586_v54 = vld [vmem:[%s13383_s2 + $0x230] sm:$0xff]  }
  0x7f   : > { %9926 = vmatpush3.bf16.msra.mxu1 %v10532_v55  ;;  %v1830_v55 = vshll.u32 %v10593_v48, 16 }
  0x80   : > { %9215 = vmatpush3.bf16.msra.mxu0 %v10533_v56  ;;  %9927 = vmatprep.subr.bf16.mxu1 %v11088_v1  ;;  %v10587_v56 = vld [vmem:[%s13383_s2 + $0x1b0] sm:$0xff]  }
  0x81   : > { %9216 = vmatprep.subr.bf16.mxu0 %v10534_v57  ;;  %v1816_v57 = vshll.u32 %v7963_v51, 16  ;;  %v11826_v51 = vld [vmem:[%s11275_s13 + $0x3c] sm:$0x11] }
  0x83   : > { %9928 = vmatpush3.bf16.msra.mxu1 %v10535_v58  ;;  %v10588_v58 = vld [vmem:[%s13383_s2 + $0x1f8] sm:$0xff]  }
  0x84   : > { %9217 = vmatpush3.bf16.msra.mxu0 %v10536_v59  ;;  %9933 = vmatprep.subr.bf16.mxu1 %v11088_v1  ;;  %v10589_v59 = vld [vmem:[%s13383_s2 + $0x238] sm:$0xff]  }
  0x85   : > { %9233 = vmatprep.subr.bf16.mxu0 %v10540_v61  ;;  %v1832_v61 = vrot.slane %v1830_v55, 1 }
  0x86   : > { %9930 = vmatmul.mubr.bf16.vlgmr.msra.gmra.mrb[4].mxu1 %v10539_v60  ;;  %v1828_v60 = vshrl.u32 %v10593_v48, 16  ;;  %v10635_v48 = vld [vmem:[%s13383_s2 + $0x20] sm:$0xff]  }
  0x87   : > { %1466 = vmatmul.mubr.bf16.vlgmr.msra.gmra.mrb[12].mxu0 %v7857_v63  ;;  %9934 = vmatpush3.bf16.msra.mxu1 %v10541_v0  ;;  %v1818_v63 = vrot.slane %v1816_v57, 1  ;;  %v10590_v0 = vld [vmem:[%s13383_s2 + $0x1b8] sm:$0xff]   ;;  %v10640_v57 = vld [vmem:[%s13383_s2 + $0xb0] sm:$0xff]  }
  0x88   : > { %9234 = vmatpush3.bf16.msra.mxu0 %v10542_v2  ;;  %9935 = vmatprep.subr.bf16.mxu1 %v11088_v1  ;;  %v10594_v2 = vld [vmem:[%s13383_s2 + $0x100] sm:$0xff]  }
  0x89   : > { %9235 = vmatprep.subr.bf16.mxu0 %v10543_v3  ;;  %1700 = vmatprep.mubr.bf16.mxu0 %v7885_v4  ;;  %v1833_v3 = vor.u32 %v1832_v61, %v1828_v60  ;;  %v11676_v4 = vld [vmem:[%s11204_s15 + $0x30] sm:$0xff] }
  0x8a   : > { %9949 = vmatprep.mubr.msk.bf16.mxu1 %vm11089_vm0, %v11088_v1  ;;  %v10641_v60 = vld [vmem:[%s13383_s2 + $0x30] sm:$0xff]  }
  0x8b   : > { %9936 = vmatpush3.bf16.msra.mxu1 %v10544_v5  ;;  %v1819_v5 = vor.u32 %v1818_v63, %v1814_v62  ;;  %v10642_v62 = vld [vmem:[%s13383_s2 + $0x78] sm:$0xff]  }
  0x8c   : > { %9236 = vmatpush3.bf16.msra.mxu0 %v10545_v6  ;;  %9937 = vmatprep.subr.bf16.mxu1 %v11088_v1  ;;  %v10595_v6 = vld [vmem:[%s13383_s2 + $0x140] sm:$0xff]  }
  0x8d   : > { %9237 = vmatprep.subr.bf16.mxu0 %v10546_v7  ;;  %v10596_v7 = vld [vmem:[%s13383_s2 + $0xc0] sm:$0xff]  }
  0x8f   : > { %9938 = vmatpush3.bf16.msra.mxu1 %v10547_v8  ;;  %v10597_v8 = vld [vmem:[%s13383_s2 + $0x108] sm:$0xff]  }
  0x90   : > { %9238 = vmatpush3.bf16.msra.mxu0 %v10548_v9  ;;  %9939 = vmatprep.subr.bf16.mxu1 %v11088_v1  ;;  %v8044_v9 = vcombine.high %v11676_v4, %v11676_v4 }
  0x91   : > { %9239 = vmatprep.subr.bf16.mxu0 %v10549_v10  ;;  %v10598_v10 = vld [vmem:[%s13383_s2 + $0x148] sm:$0xff]  }
  0x93   : > { %9940 = vmatpush3.bf16.msra.mxu1 %v10550_v11  ;;  %v10599_v11 = vld [vmem:[%s13383_s2 + $0xc8] sm:$0xff]  }
  0x94   : > { %9240 = vmatpush3.bf16.msra.mxu0 %v10551_v12  ;;  %9941 = vmatprep.subr.bf16.mxu1 %v11088_v1  ;;  %v10600_v12 = vld [vmem:[%s13383_s2 + $0x110] sm:$0xff]  }
  0x95   : > { %9241 = vmatprep.subr.bf16.mxu0 %v10552_v13  ;;  %v10601_v13 = vld [vmem:[%s13383_s2 + $0x150] sm:$0xff]  }
  0x97   : > { %9942 = vmatpush3.bf16.msra.mxu1 %v10553_v14  ;;  %v10602_v14 = vld [vmem:[%s13383_s2 + $0xd0] sm:$0xff]  }
  0x98   : > { %9242 = vmatpush3.bf16.msra.mxu0 %v10554_v15  ;;  %9943 = vmatprep.subr.bf16.mxu1 %v11088_v1  ;;  %v10603_v15 = vld [vmem:[%s13383_s2 + $0x118] sm:$0xff]  }
  0x99   : > { %9243 = vmatprep.subr.bf16.mxu0 %v10555_v16  ;;  %v10604_v16 = vld [vmem:[%s13383_s2 + $0x158] sm:$0xff]  }
  0x9b   : > { %9944 = vmatpush3.bf16.msra.mxu1 %v10556_v17  ;;  %v10605_v17 = vld [vmem:[%s13383_s2 + $0xd8] sm:$0xff]  }
  0x9c   : > { %9244 = vmatpush3.bf16.msra.mxu0 %v10557_v18  ;;  %9945 = vmatprep.subr.bf16.mxu1 %v11088_v1  ;;  %v10606_v18 = vld [vmem:[%s13383_s2 + $0x120] sm:$0xff]  }
  0x9d   : > { %9245 = vmatprep.subr.bf16.mxu0 %v10558_v19  ;;  %v10607_v19 = vld [vmem:[%s13383_s2 + $0x160] sm:$0xff]  }
  0x9f   : > { %9946 = vmatpush3.bf16.msra.mxu1 %v10559_v21  ;;  %v10609_v21 = vld [vmem:[%s13383_s2 + $0x128] sm:$0xff]  }
  0xa0   : > { %9246 = vmatpush3.bf16.msra.mxu0 %v10560_v22  ;;  %9947 = vmatprep.subr.bf16.mxu1 %v11088_v1  ;;  %v10610_v22 = vld [vmem:[%s13383_s2 + $0x168] sm:$0xff]  }
  0xa1   : > { %9247 = vmatprep.subr.bf16.mxu0 %v10561_v24  ;;  %v10612_v24 = vld [vmem:[%s13383_s2 + $0x130] sm:$0xff]  }
  0xa3   : > { %9948 = vmatpush3.bf16.msra.mxu1 %v10562_v25  ;;  %v10613_v25 = vld [vmem:[%s13383_s2 + $0x170] sm:$0xff]  }
  0xa4   : > { %9248 = vmatpush3.bf16.msra.mxu0 %v10563_v27  ;;  %9953 = vmatprep.subr.bf16.mxu1 %v11088_v1  ;;  %v10615_v27 = vld [vmem:[%s13383_s2 + $0x138] sm:$0xff]  }
  0xa5   : > { %9264 = vmatprep.subr.bf16.mxu0 %v10567_v29  ;;  %v10617_v29 = vld [vmem:[%s13383_s2 + $0xf8] sm:$0xff]  }
  0xa6   : > { %9950 = vmatmul.mubr.bf16.vlgmr.msra.gmra.mrb[4].mxu1 %v10566_v28  ;;  %v10616_v28 = vld [vmem:[%s13383_s2 + $0x178] sm:$0xff]  }
  0xa7   : > { %1701 = vmatmul.mubr.bf16.vlgmr.msra.gmra.mrb[16].mxu0 %v7884_v32  ;;  %9954 = vmatpush3.bf16.msra.mxu1 %v10568_v33  ;;  %v11764_v32 = vld [vmem:[%s11275_s13 + $0x30] sm:$0xff]  ;;  %v8043_v33 = vcombine.low %v11676_v4, %v11676_v4  ;;  %v10648_v4 = vld [vmem:[%s13383_s2 + $0x1c0] sm:$0xff]  }
  0xa8   : > { %9265 = vmatpush3.bf16.msra.mxu0 %v10569_v34  ;;  %9955 = vmatprep.subr.bf16.mxu1 %v11088_v1  ;;  %v10622_v34 = vld [vmem:[%s13383_s2 + $0x80] sm:$0xff]   ;;  %v8150_v55 = vcombine.high %v11764_v32, %v11826_v51 }
  0xa9   : > { %9266 = vmatprep.subr.bf16.mxu0 %v10570_v35  ;;  %9969 = vmatprep.mubr.msk.bf16.mxu1 %vm11089_vm0, %v11088_v1  ;;  %v10623_v35 = vld [vmem:[%s13383_s2] sm:$0xff]  }
  0xaa   : > { %2013 = vmatprep.mubr.bf16.mxu0 %v1826_v36  ;;  %v10624_v36 = vld [vmem:[%s13383_s2 + $0x48] sm:$0xff]   ;;  %v2726_v63 = vshll.u32 %v8150_v55, 16 }
  0xab   : > { %9956 = vmatpush3.bf16.msra.mxu1 %v10571_v37  ;;  %v8071_v37 = vcombine.high %v11764_v32, %v11764_v32 }
  0xac   : > { %9267 = vmatpush3.bf16.msra.mxu0 %v10572_v38  ;;  %9957 = vmatprep.subr.bf16.mxu1 %v11088_v1  ;;  %v10625_v38 = vld [vmem:[%s13383_s2 + $0x88] sm:$0xff]  }
  0xad   : > { %9268 = vmatprep.subr.bf16.mxu0 %v10573_v39  ;;  %v10626_v39 = vld [vmem:[%s13383_s2 + $0x8] sm:$0xff]  }
  0xaf   : > { %9958 = vmatpush3.bf16.msra.mxu1 %v10574_v40  ;;  %v10627_v40 = vld [vmem:[%s13383_s2 + $0x50] sm:$0xff]  }
  0xb0   : > { %9269 = vmatpush3.bf16.msra.mxu0 %v10575_v41  ;;  %9959 = vmatprep.subr.bf16.mxu1 %v11088_v1  ;;  %v10628_v41 = vld [vmem:[%s13383_s2 + $0x90] sm:$0xff]  }
  0xb1   : > { %9270 = vmatprep.subr.bf16.mxu0 %v10576_v42  ;;  %v10629_v42 = vld [vmem:[%s13383_s2 + $0x10] sm:$0xff]  }
  0xb3   : > { %9960 = vmatpush3.bf16.msra.mxu1 %v10577_v43  ;;  %v10630_v43 = vld [vmem:[%s13383_s2 + $0x58] sm:$0xff]  }
  0xb4   : > { %9271 = vmatpush3.bf16.msra.mxu0 %v10578_v44  ;;  %9961 = vmatprep.subr.bf16.mxu1 %v11088_v1  ;;  %v10631_v44 = vld [vmem:[%s13383_s2 + $0x98] sm:$0xff]  }
  0xb5   : > { %9272 = vmatprep.subr.bf16.mxu0 %v10579_v45  ;;  %v10632_v45 = vld [vmem:[%s13383_s2 + $0x18] sm:$0xff]  }
  0xb7   : > { %9962 = vmatpush3.bf16.msra.mxu1 %v10580_v46  ;;  %v10633_v46 = vld [vmem:[%s13383_s2 + $0x60] sm:$0xff]  }
  0xb8   : > { %9273 = vmatpush3.bf16.msra.mxu0 %v10581_v47  ;;  %9963 = vmatprep.subr.bf16.mxu1 %v11088_v1  ;;  %v10634_v47 = vld [vmem:[%s13383_s2 + $0xa0] sm:$0xff]  }
  0xb9   : > { %9274 = vmatprep.subr.bf16.mxu0 %v10582_v49  ;;  %v10636_v49 = vld [vmem:[%s13383_s2 + $0x68] sm:$0xff]  }
  0xbb   : > { %9964 = vmatpush3.bf16.msra.mxu1 %v10583_v50  ;;  %v10637_v50 = vld [vmem:[%s13383_s2 + $0xa8] sm:$0xff]  }
  0xbc   : > { %9275 = vmatpush3.bf16.msra.mxu0 %v10584_v52  ;;  %9965 = vmatprep.subr.bf16.mxu1 %v11088_v1  ;;  %v10638_v52 = vld [vmem:[%s13383_s2 + $0x28] sm:$0xff]  }
  0xbd   : > { %9276 = vmatprep.subr.bf16.mxu0 %v10585_v53  ;;  %v10639_v53 = vld [vmem:[%s13383_s2 + $0x70] sm:$0xff]  }
  0xbf   : > { %9966 = vmatpush3.bf16.msra.mxu1 %v10586_v54 }
  0xc0   : > { %9277 = vmatpush3.bf16.msra.mxu0 %v10587_v56  ;;  %9967 = vmatprep.subr.bf16.mxu1 %v11088_v1 }
  0xc1   : > { %9278 = vmatprep.subr.bf16.mxu0 %v10588_v58 }
  0xc3   : > { %9968 = vmatpush3.bf16.msra.mxu1 %v10589_v59 }
  0xc4   : > { %9279 = vmatpush3.bf16.msra.mxu0 %v10590_v0  ;;  %9973 = vmatprep.subr.bf16.mxu1 %v11088_v1  ;;  %v10643_v0 = vld [vmem:[%s13383_s2 + $0xb8] sm:$0xff]  }
  0xc5   : > { %9295 = vmatprep.subr.bf16.mxu0 %v10594_v2  ;;  %v10644_v2 = vld [vmem:[%s13383_s2 + $0x38] sm:$0xff]  }
  0xc6   : > { %9970 = vmatmul.mubr.bf16.vlgmr.msra.gmra.mrb[4].mxu1 %v1833_v3  ;;  %v10647_v3 = vld [vmem:[%s11275_s13 + $0x38] ss:$0 sps:$4 sm:$0xff]  }
  0xc7   : > { %2014 = vmatmul.mubr.bf16.vlgmr.msra.gmra.mrb[20].mxu0 %v1819_v5  ;;  %9974 = vmatpush3.bf16.msra.mxu1 %v10595_v6  ;;  %v2724_v5 = vshrl.u32 %v8150_v55, 16  ;;  %v2728_v6 = vrot.slane %v2726_v63, 1  ;;  %v10680_v55 = vld [vmem:[%s13383_s2 + $0xc8] sm:$0xff]   ;;  %v10688_v63 = vld [vmem:[%s13383_s2 + $0x160] sm:$0xff]  }
  0xc8   : > { %9296 = vmatpush3.bf16.msra.mxu0 %v10596_v7  ;;  %9975 = vmatprep.subr.bf16.mxu1 %v11088_v1  ;;  %v8070_v7 = vcombine.low %v11764_v32, %v11764_v32 }
  0xc9   : > { %9297 = vmatprep.subr.bf16.mxu0 %v10597_v8  ;;  %2368 = vmatprep.mubr.bf16.mxu0 %v8044_v9  ;;  %v10649_v8 = vld [vmem:[%s13383_s2 + $0x200] sm:$0xff]  }
  0xca   : > { %9989 = vmatprep.mubr.msk.bf16.mxu1 %vm11089_vm0, %v11088_v1  ;;  %v10650_v9 = vld [vmem:[%s13383_s2 + $0x180] sm:$0xff]  }
  0xcb   : > { %9976 = vmatpush3.bf16.msra.mxu1 %v10598_v10  ;;  %v10651_v10 = vld [vmem:[%s13383_s2 + $0x1c8] sm:$0xff]  }
  0xcc   : > { %9298 = vmatpush3.bf16.msra.mxu0 %v10599_v11  ;;  %9977 = vmatprep.subr.bf16.mxu1 %v11088_v1  ;;  %v2729_v11 = vor.u32 %v2728_v6, %v2724_v5  ;;  %v10693_v6 = vld [vmem:[%s13383_s2 + $0x130] sm:$0xff]  }
  0xcd   : > { %9299 = vmatprep.subr.bf16.mxu0 %v10600_v12  ;;  %v10652_v12 = vld [vmem:[%s13383_s2 + $0x208] sm:$0xff]  }
  0xcf   : > { %9978 = vmatpush3.bf16.msra.mxu1 %v10601_v13  ;;  %v10653_v13 = vld [vmem:[%s13383_s2 + $0x188] sm:$0xff]  }
  0xd0   : > { %9300 = vmatpush3.bf16.msra.mxu0 %v10602_v14  ;;  %9979 = vmatprep.subr.bf16.mxu1 %v11088_v1  ;;  %v10654_v14 = vld [vmem:[%s13383_s2 + $0x1d0] sm:$0xff]  }
  0xd1   : > { %9301 = vmatprep.subr.bf16.mxu0 %v10603_v15  ;;  %v10655_v15 = vld [vmem:[%s13383_s2 + $0x210] sm:$0xff]  }
  0xd3   : > { %9980 = vmatpush3.bf16.msra.mxu1 %v10604_v16  ;;  %v10656_v16 = vld [vmem:[%s13383_s2 + $0x190] sm:$0xff]  }
  0xd4   : > { %9302 = vmatpush3.bf16.msra.mxu0 %v10605_v17  ;;  %9981 = vmatprep.subr.bf16.mxu1 %v11088_v1  ;;  %v10657_v17 = vld [vmem:[%s13383_s2 + $0x1d8] sm:$0xff]  }
  0xd5   : > { %9303 = vmatprep.subr.bf16.mxu0 %v10606_v18  ;;  %v10658_v18 = vld [vmem:[%s13383_s2 + $0x218] sm:$0xff]  }
  0xd7   : > { %9982 = vmatpush3.bf16.msra.mxu1 %v10607_v19  ;;  %v10659_v19 = vld [vmem:[%s13383_s2 + $0x198] sm:$0xff]  }
  0xd8   : > { %9304 = vmatpush3.bf16.msra.mxu0 %v10608_v20  ;;  %9983 = vmatprep.subr.bf16.mxu1 %v11088_v1  ;;  %v10660_v20 = vld [vmem:[%s13383_s2 + $0x1e0] sm:$0xff]  }
  0xd9   : > { %9305 = vmatprep.subr.bf16.mxu0 %v10609_v21  ;;  %v10661_v21 = vld [vmem:[%s13383_s2 + $0x220] sm:$0xff]  }
  0xdb   : > { %9984 = vmatpush3.bf16.msra.mxu1 %v10610_v22  ;;  %v10662_v22 = vld [vmem:[%s13383_s2 + $0x1a0] sm:$0xff]  }
  0xdc   : > { %9306 = vmatpush3.bf16.msra.mxu0 %v10611_v23  ;;  %9985 = vmatprep.subr.bf16.mxu1 %v11088_v1  ;;  %v10674_v23 = vld [vmem:[%s11275_s13 + $0x38] ss:$12 sps:$4 sm:$0x1f]  }
  0xdd   : > { %9307 = vmatprep.subr.bf16.mxu0 %v10612_v24  ;;  %v10663_v24 = vld [vmem:[%s13383_s2 + $0x1e8] sm:$0xff]  }
  0xdf   : > { %9986 = vmatpush3.bf16.msra.mxu1 %v10613_v25  ;;  %v10664_v25 = vld [vmem:[%s13383_s2 + $0x228] sm:$0xff]  }
  0xe0   : > { %9308 = vmatpush3.bf16.msra.mxu0 %v10614_v26  ;;  %9987 = vmatprep.subr.bf16.mxu1 %v11088_v1  ;;  %v8149_v26 = vcombine.low %v11764_v32, %v11826_v51  ;;  %v2733_v32 = vshll.u32 %v10674_v23, 16  ;;  %v10677_v51 = vld [vmem:[%s13383_s2 + $0xc0] sm:$0xff]  }
  0xe1   : > { %9309 = vmatprep.subr.bf16.mxu0 %v10615_v27  ;;  %v10665_v27 = vld [vmem:[%s13383_s2 + $0x1a8] sm:$0xff]  }
  0xe3   : > { %9988 = vmatpush3.bf16.msra.mxu1 %v10616_v28  ;;  %v10666_v28 = vld [vmem:[%s13383_s2 + $0x1f0] sm:$0xff]  }
  0xe4   : > { %9310 = vmatpush3.bf16.msra.mxu0 %v10617_v29  ;;  %9993 = vmatprep.subr.bf16.mxu1 %v11088_v1 }
  0xe5   : > { %9326 = vmatprep.subr.bf16.mxu0 %v10621_v31  ;;  %v10668_v31 = vld [vmem:[%s13383_s2 + $0x1b0] sm:$0xff]  }
  0xe6   : > { %9990 = vmatmul.mubr.bf16.vlgmr.msra.gmra.mrb[8].mxu1 %v10620_v30  ;;  %v10667_v30 = vld [vmem:[%s13383_s2 + $0x230] sm:$0xff]  }
  0xe7   : > { %2369 = vmatmul.mubr.bf16.vlgmr.msra.gmra.mrb[24].mxu0 %v8043_v33  ;;  %9994 = vmatpush3.bf16.msra.mxu1 %v10622_v34  ;;  %v2719_v34 = vshll.u32 %v8149_v26, 16 }
  0xe8   : > { %9327 = vmatpush3.bf16.msra.mxu0 %v10623_v35  ;;  %9995 = vmatprep.subr.bf16.mxu1 %v11088_v1 }
  0xe9   : > { %9328 = vmatprep.subr.bf16.mxu0 %v10624_v36  ;;  %2603 = vmatprep.mubr.bf16.mxu0 %v8071_v37  ;;  %v10669_v37 = vld [vmem:[%s13383_s2 + $0x1f8] sm:$0xff]  }
  0xea   : > { %10009 = vmatprep.mubr.msk.bf16.mxu1 %vm11089_vm0, %v11088_v1 }
  0xeb   : > { %9996 = vmatpush3.bf16.msra.mxu1 %v10625_v38 }
  0xec   : > { %9329 = vmatpush3.bf16.msra.mxu0 %v10626_v39  ;;  %9997 = vmatprep.subr.bf16.mxu1 %v11088_v1  ;;  %v10670_v39 = vld [vmem:[%s13383_s2 + $0x238] sm:$0xff]  }
  0xed   : > { %9330 = vmatprep.subr.bf16.mxu0 %v10627_v40 }
  0xef   : > { %9998 = vmatpush3.bf16.msra.mxu1 %v10628_v41  ;;  %v2731_v41 = vshrl.u32 %v10674_v23, 16  ;;  %v10702_v23 = vld [vmem:[%s13383_s2 + $0x40] sm:$0xff]  }
  0xf0   : > { %9331 = vmatpush3.bf16.msra.mxu0 %v10629_v42  ;;  %9999 = vmatprep.subr.bf16.mxu1 %v11088_v1  ;;  %v2735_v42 = vrot.slane %v2733_v32, 1  ;;  %v10708_v32 = vld [vmem:[%s13383_s2 + $0x50] sm:$0xff]  }
  0xf1   : > { %9332 = vmatprep.subr.bf16.mxu0 %v10630_v43  ;;  %v2717_v43 = vshrl.u32 %v8149_v26, 16  ;;  %v10703_v26 = vld [vmem:[%s13383_s2 + $0x80] sm:$0xff]  }
  0xf3   : > { %10000 = vmatpush3.bf16.msra.mxu1 %v10631_v44  ;;  %v2721_v44 = vrot.slane %v2719_v34, 1  ;;  %v10710_v34 = vld [vmem:[%s13383_s2 + $0x10] sm:$0xff]  }
  0xf4   : > { %9333 = vmatpush3.bf16.msra.mxu0 %v10632_v45  ;;  %10001 = vmatprep.subr.bf16.mxu1 %v11088_v1  ;;  %v10671_v45 = vld [vmem:[%s13383_s2 + $0x1b8] sm:$0xff]  }
  0xf5   : > { %9334 = vmatprep.subr.bf16.mxu0 %v10633_v46  ;;  %v10675_v46 = vld [vmem:[%s13383_s2 + $0x100] sm:$0xff]  }
  0xf7   : > { %10002 = vmatpush3.bf16.msra.mxu1 %v10634_v47  ;;  %v2736_v47 = vor.u32 %v2735_v42, %v2731_v41  ;;  %v10717_v41 = vld [vmem:[%s13383_s2 + $0x68] sm:$0xff]  }
  0xf8   : > { %9335 = vmatpush3.bf16.msra.mxu0 %v10635_v48  ;;  %10003 = vmatprep.subr.bf16.mxu1 %v11088_v1  ;;  %v11951_v48 = vld [vmem:[%s11204_s15 + $0x48] sm:$0xff] }
  0xf9   : > { %9336 = vmatprep.subr.bf16.mxu0 %v10636_v49  ;;  %v2722_v49 = vor.u32 %v2721_v44, %v2717_v43  ;;  %v10718_v42 = vld [vmem:[%s13383_s2 + $0xa8] sm:$0xff]   ;;  %v12112_v43 = vld [vmem:[%s11275_s13 + $0x54] sm:$0x11] }
  0xfa   : > { %v9125_v54 = vpop.f32.mrb[0].mxu0  ;;  %v10719_v44 = vld [vmem:[%s13383_s2 + $0x28] sm:$0xff]  }
  0xfb   : > { %v9126_v56 = vpop.f32.mrb[1].mxu0  ;;  %10004 = vmatpush3.bf16.msra.mxu1 %v10637_v50  ;;  %v10676_v50 = vld [vmem:[%s13383_s2 + $0x140] sm:$0xff]  }
  0xfc   : > { %v11840_v58 = vadd.f32 %v9126_v56, %v9125_v54  ;;  %v9128_v59 = vpop.f32.mrb[2].mxu0  ;;  %9337 = vmatpush3.bf16.msra.mxu0 %v10638_v52  ;;  %10005 = vmatprep.subr.bf16.mxu1 %v11088_v1  ;;  %v10678_v52 = vld [vmem:[%s13383_s2 + $0x108] sm:$0xff]   ;;  %v10681_v56 = vld [vmem:[%s13383_s2 + $0x110] sm:$0xff]  }
  0xfd   : > { %v9129_v61 = vpop.f32.mrb[3].mxu0  ;;  %9338 = vmatprep.subr.bf16.mxu0 %v10639_v53  ;;  %v8230_v53 = vcombine.high %v11951_v48, %v11951_v48  ;;  %v10679_v54 = vld [vmem:[%s13383_s2 + $0x148] sm:$0xff]   ;;  %v10684_v59 = vld [vmem:[%s13383_s2 + $0x118] sm:$0xff]  }
  0xfe   : > { %v10686_v61 = vld [vmem:[%s13383_s2 + $0xd8] sm:$0xff]  }
  0xff   : > { %10006 = vmatpush3.bf16.msra.mxu1 %v10640_v57  ;;  %v10682_v57 = vld [vmem:[%s13383_s2 + $0x150] sm:$0xff]  }
 0x100   : > { %9339 = vmatpush3.bf16.msra.mxu0 %v10641_v60  ;;  %10007 = vmatprep.subr.bf16.mxu1 %v11088_v1  ;;  %v10685_v60 = vld [vmem:[%s13383_s2 + $0x158] sm:$0xff]  }
 0x101   : > { %9340 = vmatprep.subr.bf16.mxu0 %v10642_v62  ;;  %v10687_v62 = vld [vmem:[%s13383_s2 + $0x120] sm:$0xff]  }
 0x103   : > { %10008 = vmatpush3.bf16.msra.mxu1 %v10643_v0  ;;  %v10689_v0 = vld [vmem:[%s13383_s2 + $0xe0] sm:$0xff]  }
 0x104   : > { %9341 = vmatpush3.bf16.msra.mxu0 %v10644_v2  ;;  %10013 = vmatprep.subr.bf16.mxu1 %v11088_v1  ;;  %v10690_v2 = vld [vmem:[%s13383_s2 + $0x128] sm:$0xff]  }
 0x105   : > { %9357 = vmatprep.subr.bf16.mxu0 %v10648_v4  ;;  %v10692_v4 = vld [vmem:[%s13383_s2 + $0xe8] sm:$0xff]  }
 0x106   : > { %10010 = vmatmul.mubr.bf16.vlgmr.msra.gmra.mrb[8].mxu1 %v10647_v3  ;;  %v10691_v3 = vld [vmem:[%s13383_s2 + $0x168] sm:$0xff]  }
 0x107   : > { %2604 = vmatmul.mubr.bf16.vlgmr.msra.gmra.mrb[28].mxu0 %v8070_v7  ;;  %10014 = vmatpush3.bf16.msra.mxu1 %v10649_v8 }
 0x108   : > { %9358 = vmatpush3.bf16.msra.mxu0 %v10650_v9  ;;  %10015 = vmatprep.subr.bf16.mxu1 %v11088_v1 }
 0x109   : > { %9359 = vmatprep.subr.bf16.mxu0 %v10651_v10  ;;  %10029 = vmatprep.mubr.msk.bf16.mxu1 %vm11089_vm0, %v11088_v1 }
 0x10a   : > { %2916 = vmatprep.mubr.bf16.mxu0 %v2729_v11  ;;  %v10694_v11 = vld [vmem:[%s13383_s2 + $0x170] sm:$0xff]  }
 0x10b   : > { %10016 = vmatpush3.bf16.msra.mxu1 %v10652_v12  ;;  %v10695_v12 = vld [vmem:[%s13383_s2 + $0xf0] sm:$0xff]  }
 0x10c   : > { %9360 = vmatpush3.bf16.msra.mxu0 %v10653_v13  ;;  %10017 = vmatprep.subr.bf16.mxu1 %v11088_v1 }
 0x10d   : > { %9361 = vmatprep.subr.bf16.mxu0 %v10654_v14 }
 0x10f   : > { %10018 = vmatpush3.bf16.msra.mxu1 %v10655_v15 }
 0x110   : > { %9362 = vmatpush3.bf16.msra.mxu0 %v10656_v16  ;;  %10019 = vmatprep.subr.bf16.mxu1 %v11088_v1 }
 0x111   : > { %9363 = vmatprep.subr.bf16.mxu0 %v10657_v17  ;;  %v10696_v17 = vld [vmem:[%s13383_s2 + $0x138] sm:$0xff]  }
 0x113   : > { %10020 = vmatpush3.bf16.msra.mxu1 %v10658_v18 }
 0x114   : > { %9364 = vmatpush3.bf16.msra.mxu0 %v10659_v19  ;;  %10021 = vmatprep.subr.bf16.mxu1 %v11088_v1  ;;  %v10697_v19 = vld [vmem:[%s13383_s2 + $0x178] sm:$0xff]  }
 0x115   : > { %9365 = vmatprep.subr.bf16.mxu0 %v10660_v20  ;;  %v10698_v20 = vld [vmem:[%s13383_s2 + $0xf8] sm:$0xff]  }
 0x117   : > { %10022 = vmatpush3.bf16.msra.mxu1 %v10661_v21 }
 0x118   : > { %9366 = vmatpush3.bf16.msra.mxu0 %v10662_v22  ;;  %10023 = vmatprep.subr.bf16.mxu1 %v11088_v1  ;;  %v10701_v22 = vld [vmem:[%s11204_s15 + $0x50] ss:$0 sps:$4 sm:$0xff]  }
 0x119   : > { %9367 = vmatprep.subr.bf16.mxu0 %v10663_v24  ;;  %v12050_v24 = vld [vmem:[%s11275_s13 + $0x48] sm:$0xff] }
 0x11a   : > { %v9156_v29 = vpop.f32.mrb[4].mxu0 }
 0x11b   : > { %v9157_v33 = vpop.f32.mrb[5].mxu0  ;;  %10024 = vmatpush3.bf16.msra.mxu1 %v10664_v25  ;;  %v8229_v25 = vcombine.low %v11951_v48, %v11951_v48 }
 0x11c   : > { %v9158_v35 = vadd.f32 %v9157_v33, %v9156_v29  ;;  %v9159_v36 = vpop.f32.mrb[6].mxu0  ;;  %9368 = vmatpush3.bf16.msra.mxu0 %v10665_v27  ;;  %10025 = vmatprep.subr.bf16.mxu1 %v11088_v1  ;;  %v10704_v27 = vld [vmem:[%s13383_s2] sm:$0xff]   ;;  %v8257_v29 = vcombine.high %v12050_v24, %v12050_v24  ;;  %v10709_v33 = vld [vmem:[%s13383_s2 + $0x90] sm:$0xff]  }
 0x11d   : > { %v9160_v38 = vpop.f32.mrb[7].mxu0  ;;  %9369 = vmatprep.subr.bf16.mxu0 %v10666_v28  ;;  %v10705_v28 = vld [vmem:[%s13383_s2 + $0x48] sm:$0xff]   ;;  %v10712_v36 = vld [vmem:[%s13383_s2 + $0x98] sm:$0xff]  }
 0x11e   : > { %v11941_v40 = vadd.f32 %v9158_v35, %v11840_v58  ;;  %v10683_v58 = vld [vmem:[%s13383_s2 + $0xd0] sm:$0xff]   ;;  %v10711_v35 = vld [vmem:[%s13383_s2 + $0x58] sm:$0xff]   ;;  %v10714_v38 = vld [vmem:[%s13383_s2 + $0x60] sm:$0xff]  }
 0x11f   : > { %10026 = vmatpush3.bf16.msra.mxu1 %v10667_v30  ;;  %v10706_v30 = vld [vmem:[%s13383_s2 + $0x88] sm:$0xff]  }
 0x120   : > { %9370 = vmatpush3.bf16.msra.mxu0 %v10668_v31  ;;  %10027 = vmatprep.subr.bf16.mxu1 %v11088_v1  ;;  %v10707_v31 = vld [vmem:[%s13383_s2 + $0x8] sm:$0xff]  }
 0x121   : > { %9371 = vmatprep.subr.bf16.mxu0 %v10669_v37  ;;  %v10713_v37 = vld [vmem:[%s13383_s2 + $0x18] sm:$0xff]  }
 0x123   : > { %10028 = vmatpush3.bf16.msra.mxu1 %v10670_v39  ;;  %v10715_v39 = vld [vmem:[%s13383_s2 + $0xa0] sm:$0xff]  }
 0x124   : > { %9372 = vmatpush3.bf16.msra.mxu0 %v10671_v45  ;;  %10033 = vmatprep.subr.bf16.mxu1 %v11088_v1  ;;  %v10720_v45 = vld [vmem:[%s13383_s2 + $0x70] sm:$0xff]  }
 0x125   : > { %9388 = vmatprep.subr.bf16.mxu0 %v10675_v46 }
 0x126   : > { %10030 = vmatmul.mubr.bf16.vlgmr.msra.gmra.mrb[8].mxu1 %v2736_v47  ;;  %v8336_v47 = vcombine.high %v12050_v24, %v12112_v43 }
 0x127   : > { %2917 = vmatmul.mubr.bf16.vlgmr.msra.gmra.mrb[32].mxu0 %v2722_v49  ;;  %10034 = vmatpush3.bf16.msra.mxu1 %v10676_v50  ;;  %v10721_v49 = vld [vmem:[%s13383_s2 + $0xb0] sm:$0xff]  }
 0x128   : > { %9389 = vmatpush3.bf16.msra.mxu0 %v10677_v51  ;;  %10035 = vmatprep.subr.bf16.mxu1 %v11088_v1 }
 0x129   : > { %9390 = vmatprep.subr.bf16.mxu0 %v10678_v52  ;;  %3271 = vmatprep.mubr.bf16.mxu0 %v8230_v53  ;;  %v10722_v52 = vld [vmem:[%s13383_s2 + $0x30] sm:$0xff]  }
 0x12a   : > { %10049 = vmatprep.mubr.msk.bf16.mxu1 %vm11089_vm0, %v11088_v1 }
 0x12b   : > { %10036 = vmatpush3.bf16.msra.mxu1 %v10679_v54  ;;  %v10723_v54 = vld [vmem:[%s13383_s2 + $0x78] sm:$0xff]  }
 0x12c   : > { %9391 = vmatpush3.bf16.msra.mxu0 %v10680_v55  ;;  %10037 = vmatprep.subr.bf16.mxu1 %v11088_v1  ;;  %v10724_v55 = vld [vmem:[%s13383_s2 + $0xb8] sm:$0xff]  }
 0x12d   : > { %9392 = vmatprep.subr.bf16.mxu0 %v10681_v56  ;;  %v3629_v56 = vshll.u32 %v8336_v47, 16 }
 0x12f   : > { %10038 = vmatpush3.bf16.msra.mxu1 %v10682_v57  ;;  %v10725_v57 = vld [vmem:[%s13383_s2 + $0x38] sm:$0xff]  }
 0x130   : > { %9393 = vmatpush3.bf16.msra.mxu0 %v10683_v58  ;;  %10039 = vmatprep.subr.bf16.mxu1 %v11088_v1  ;;  %v10728_v58 = vld [vmem:[%s11275_s13 + $0x50] ss:$0 sps:$4 sm:$0xff]  }
 0x131   : > { %9394 = vmatprep.subr.bf16.mxu0 %v10684_v59  ;;  %v10729_v59 = vld [vmem:[%s13383_s2 + $0x1c0] sm:$0xff]  }
 0x133   : > { %10040 = vmatpush3.bf16.msra.mxu1 %v10685_v60  ;;  %v3627_v60 = vshrl.u32 %v8336_v47, 16  ;;  %v10760_v47 = vld [vmem:[%s13383_s2 + $0x148] sm:$0xff]  }
 0x134   : > { %9395 = vmatpush3.bf16.msra.mxu0 %v10686_v61  ;;  %10041 = vmatprep.subr.bf16.mxu1 %v11088_v1  ;;  %v3631_v61 = vrot.slane %v3629_v56, 1  ;;  %v10769_v56 = vld [vmem:[%s13383_s2 + $0x160] sm:$0xff]  }
 0x135   : > { %9396 = vmatprep.subr.bf16.mxu0 %v10687_v62  ;;  %v8256_v62 = vcombine.low %v12050_v24, %v12050_v24 }
 0x137   : > { %10042 = vmatpush3.bf16.msra.mxu1 %v10688_v63  ;;  %v10730_v63 = vld [vmem:[%s13383_s2 + $0x200] sm:$0xff]  }
 0x138   : > { %9397 = vmatpush3.bf16.msra.mxu0 %v10689_v0  ;;  %10043 = vmatprep.subr.bf16.mxu1 %v11088_v1  ;;  %v10731_v0 = vld [vmem:[%s13383_s2 + $0x180] sm:$0xff]  }
 0x139   : > { %v1153_v5 = vpop.f32.mrb[0].mxu1  ;;  %9398 = vmatprep.subr.bf16.mxu0 %v10690_v2  ;;  %v10732_v2 = vld [vmem:[%s13383_s2 + $0x1c8] sm:$0xff]  }
 0x13a   : > { %v9187_v7 = vpop.f32.mrb[8].mxu0  ;;  %v9911_v8 = vpop.f32.mrb[1].mxu1 }
 0x13b   : > { %v9188_v9 = vpop.f32.mrb[9].mxu0  ;;  %v1156_v10 = vpop.f32.mrb[2].mxu1  ;;  %10044 = vmatpush3.bf16.msra.mxu1 %v10691_v3  ;;  %v3632_v3 = vor.u32 %v3631_v61, %v3627_v60  ;;  %v10737_v8 = vld [vmem:[%s13383_s2 + $0x190] sm:$0xff]   ;;  %v10772_v61 = vld [vmem:[%s13383_s2 + $0x168] sm:$0xff]  }
 0x13c   : > { %v9189_v13 = vadd.f32 %v9188_v9, %v9187_v7  ;;  %v9190_v14 = vpop.f32.mrb[10].mxu0  ;;  %v9912_v15 = vpop.f32.mrb[3].mxu1  ;;  %9399 = vmatpush3.bf16.msra.mxu0 %v10692_v4  ;;  %10045 = vmatprep.subr.bf16.mxu1 %v11088_v1  ;;  %v10733_v4 = vld [vmem:[%s13383_s2 + $0x208] sm:$0xff]   ;;  %v10736_v7 = vld [vmem:[%s13383_s2 + $0x210] sm:$0xff]   ;;  %v10738_v9 = vld [vmem:[%s13383_s2 + $0x1d8] sm:$0xff]  }
 0x13d   : > { %v9191_v16 = vpop.f32.mrb[11].mxu0  ;;  %9400 = vmatprep.subr.bf16.mxu0 %v10693_v6  ;;  %v10735_v6 = vld [vmem:[%s13383_s2 + $0x1d0] sm:$0xff]   ;;  %v10739_v10 = vld [vmem:[%s13383_s2 + $0x218] sm:$0xff]   ;;  %v10743_v14 = vld [vmem:[%s13383_s2 + $0x1a0] sm:$0xff]  }
 0x13e   : > { %v10334_v18 = vadd.f32 %v11941_v40, %v9189_v13  ;;  %v10716_v40 = vld [vmem:[%s13383_s2 + $0x20] sm:$0xff]   ;;  %v10755_v15 = vld [vmem:[%s11275_s13 + $0x50] ss:$12 sps:$4 sm:$0x1f]   ;;  %v10744_v16 = vld [vmem:[%s13383_s2 + $0x1e8] sm:$0xff]  }
 0x13f   : > { %10046 = vmatpush3.bf16.msra.mxu1 %v10694_v11  ;;  %v10740_v11 = vld [vmem:[%s13383_s2 + $0x198] sm:$0xff]   ;;  %v10742_v13 = vld [vmem:[%s13383_s2 + $0x220] sm:$0xff]  }
 0x140   : > { %v12040_v21 = vadd.f32 %v10334_v18, %v1153_v5  ;;  %9401 = vmatpush3.bf16.msra.mxu0 %v10695_v12  ;;  %10047 = vmatprep.subr.bf16.mxu1 %v11088_v1  ;;  %v10734_v5 = vld [vmem:[%s13383_s2 + $0x188] sm:$0xff]   ;;  %v10741_v12 = vld [vmem:[%s13383_s2 + $0x1e0] sm:$0xff]  }
 0x141   : > { %9402 = vmatprep.subr.bf16.mxu0 %v10696_v17  ;;  %v10745_v17 = vld [vmem:[%s13383_s2 + $0x228] sm:$0xff]  }
 0x142   : > { %1160 = vst [vmem:[%s12035_s30] sm:$0xff] %v12040_v21  ;;  %v10746_v18 = vld [vmem:[%s13383_s2 + $0x1a8] sm:$0xff]   ;;  %v1161_v60 = vrot.slane %v12040_v21, 4 }
 0x143   : > { %10048 = vmatpush3.bf16.msra.mxu1 %v10697_v19  ;;  %v8335_v19 = vcombine.low %v12050_v24, %v12112_v43  ;;  %v10757_v43 = vld [vmem:[%s13383_s2 + $0x140] sm:$0xff]  }
 0x144   : > { %9403 = vmatpush3.bf16.msra.mxu0 %v10698_v20  ;;  %10053 = vmatprep.subr.bf16.mxu1 %v11088_v1  ;;  %v10747_v20 = vld [vmem:[%s13383_s2 + $0x1f0] sm:$0xff]  }
 0x145   : > { %9419 = vmatprep.subr.bf16.mxu0 %v10702_v23  ;;  %v3622_v24 = vshll.u32 %v8335_v19, 16 }
 0x146   : > { %10050 = vmatmul.mubr.bf16.vlgmr.msra.gmra.mrb[12].mxu1 %v10701_v22  ;;  %v10748_v22 = vld [vmem:[%s13383_s2 + $0x230] sm:$0xff]  }
 0x147   : > { %3272 = vmatmul.mubr.bf16.vlgmr.msra.gmra.mrb[36].mxu0 %v8229_v25  ;;  %10054 = vmatpush3.bf16.msra.mxu1 %v10703_v26  ;;  %v10749_v25 = vld [vmem:[%s13383_s2 + $0x1b0] sm:$0xff]   ;;  %v3636_v26 = vshll.u32 %v10755_v15, 16 }
 0x148   : > { %9420 = vmatpush3.bf16.msra.mxu0 %v10704_v27  ;;  %10055 = vmatprep.subr.bf16.mxu1 %v11088_v1 }
 0x149   : > { %9421 = vmatprep.subr.bf16.mxu0 %v10705_v28  ;;  %3506 = vmatprep.mubr.bf16.mxu0 %v8257_v29 }
 0x14a   : > { %10069 = vmatprep.mubr.msk.bf16.mxu1 %vm11089_vm0, %v11088_v1 }
 0x14b   : > { %10056 = vmatpush3.bf16.msra.mxu1 %v10706_v30  ;;  %v10750_v30 = vld [vmem:[%s13383_s2 + $0x1f8] sm:$0xff]  }
 0x14c   : > { %9422 = vmatpush3.bf16.msra.mxu0 %v10707_v31  ;;  %10057 = vmatprep.subr.bf16.mxu1 %v11088_v1 }
 0x14d   : > { %9423 = vmatprep.subr.bf16.mxu0 %v10708_v32  ;;  %v10751_v32 = vld [vmem:[%s13383_s2 + $0x238] sm:$0xff]  }
 0x14f   : > { %10058 = vmatpush3.bf16.msra.mxu1 %v10709_v33 }
 0x150   : > { %9424 = vmatpush3.bf16.msra.mxu0 %v10710_v34  ;;  %10059 = vmatprep.subr.bf16.mxu1 %v11088_v1  ;;  %v3634_v34 = vshrl.u32 %v10755_v15, 16  ;;  %v10778_v15 = vld [vmem:[%s13383_s2 + $0x178] sm:$0xff]  }
 0x151   : > { %9425 = vmatprep.subr.bf16.mxu0 %v10711_v35  ;;  %v3638_v35 = vrot.slane %v3636_v26, 1 }
 0x153   : > { %10060 = vmatpush3.bf16.msra.mxu1 %v10712_v36  ;;  %v3620_v36 = vshrl.u32 %v8335_v19, 16 }
 0x154   : > { %9426 = vmatpush3.bf16.msra.mxu0 %v10713_v37  ;;  %10061 = vmatprep.subr.bf16.mxu1 %v11088_v1  ;;  %v3624_v37 = vrot.slane %v3622_v24, 1 }
 0x155   : > { %9427 = vmatprep.subr.bf16.mxu0 %v10714_v38  ;;  %v10752_v38 = vld [vmem:[%s13383_s2 + $0x1b8] sm:$0xff]  }
 0x157   : > { %10062 = vmatpush3.bf16.msra.mxu1 %v10715_v39  ;;  %v10756_v39 = vld [vmem:[%s13383_s2 + $0x100] sm:$0xff]  }
 0x158   : > { %9428 = vmatpush3.bf16.msra.mxu0 %v10716_v40  ;;  %10063 = vmatprep.subr.bf16.mxu1 %v11088_v1  ;;  %v12237_v40 = vld [vmem:[%s11204_s15 + $0x60] sm:$0xff] }
 0x159   : > { %9429 = vmatprep.subr.bf16.mxu0 %v10717_v41  ;;  %v3639_v41 = vor.u32 %v3638_v35, %v3634_v34 }
 0x15a   : > { %v9218_v46 = vpop.f32.mrb[12].mxu0 }
 0x15b   : > { %v9219_v48 = vpop.f32.mrb[13].mxu0  ;;  %10064 = vmatpush3.bf16.msra.mxu1 %v10718_v42  ;;  %v3625_v42 = vor.u32 %v3624_v37, %v3620_v36 }
 0x15c   : > { %v12126_v50 = vadd.f32 %v9219_v48, %v9218_v46  ;;  %v9221_v51 = vpop.f32.mrb[14].mxu0  ;;  %9430 = vmatpush3.bf16.msra.mxu0 %v10719_v44  ;;  %10065 = vmatprep.subr.bf16.mxu1 %v11088_v1  ;;  %v10758_v44 = vld [vmem:[%s13383_s2 + $0xc0] sm:$0xff]   ;;  %v8416_v46 = vcombine.high %v12237_v40, %v12237_v40  ;;  %v10761_v48 = vld [vmem:[%s13383_s2 + $0xc8] sm:$0xff]  }
 0x15d   : > { %v9222_v53 = vpop.f32.mrb[15].mxu0  ;;  %9431 = vmatprep.subr.bf16.mxu0 %v10720_v45  ;;  %v10759_v45 = vld [vmem:[%s13383_s2 + $0x108] sm:$0xff]   ;;  %v10764_v51 = vld [vmem:[%s13383_s2 + $0xd0] sm:$0xff]  }
 0x15e   : > { %v10766_v53 = vld [vmem:[%s13383_s2 + $0x158] sm:$0xff]  }
 0x15f   : > { %10066 = vmatpush3.bf16.msra.mxu1 %v10721_v49  ;;  %v10762_v49 = vld [vmem:[%s13383_s2 + $0x110] sm:$0xff]  }
 0x160   : > { %9432 = vmatpush3.bf16.msra.mxu0 %v10722_v52  ;;  %10067 = vmatprep.subr.bf16.mxu1 %v11088_v1  ;;  %v10765_v52 = vld [vmem:[%s13383_s2 + $0x118] sm:$0xff]  }
 0x161   : > { %9433 = vmatprep.subr.bf16.mxu0 %v10723_v54  ;;  %v10767_v54 = vld [vmem:[%s13383_s2 + $0xd8] sm:$0xff]  }
 0x163   : > { %10068 = vmatpush3.bf16.msra.mxu1 %v10724_v55  ;;  %v10768_v55 = vld [vmem:[%s13383_s2 + $0x120] sm:$0xff]  }
 0x164   : > { %9434 = vmatpush3.bf16.msra.mxu0 %v10725_v57  ;;  %10073 = vmatprep.subr.bf16.mxu1 %v11088_v1  ;;  %v1168_v57 = vmul.f32 %v12040_v21, %v12040_v21 }
 0x165   : > { %9450 = vmatprep.subr.bf16.mxu0 %v10729_v59  ;;  %v10771_v59 = vld [vmem:[%s13383_s2 + $0x128] sm:$0xff]  }
 0x166   : > { %10070 = vmatmul.mubr.bf16.vlgmr.msra.gmra.mrb[12].mxu1 %v10728_v58  ;;  %v10770_v58 = vld [vmem:[%s13383_s2 + $0xe0] sm:$0xff]  }
 0x167   : > { %3507 = vmatmul.mubr.bf16.vlgmr.msra.gmra.mrb[40].mxu0 %v8256_v62  ;;  %10074 = vmatpush3.bf16.msra.mxu1 %v10730_v63  ;;  %v1169_v62 = vrot.slane %v1168_v57, 4  ;;  %v10773_v63 = vld [vmem:[%s13383_s2 + $0xe8] sm:$0xff]  }
 0x168   : > { %9451 = vmatpush3.bf16.msra.mxu0 %v10731_v0  ;;  %10075 = vmatprep.subr.bf16.mxu1 %v11088_v1 }
 0x169   : > { %9452 = vmatprep.subr.bf16.mxu0 %v10732_v2  ;;  %10089 = vmatprep.mubr.msk.bf16.mxu1 %vm11089_vm0, %v11088_v1  ;;  %v10774_v2 = vld [vmem:[%s13383_s2 + $0x130] sm:$0xff]  }
 0x16a   : > { %3819 = vmatprep.mubr.bf16.mxu0 %v3632_v3 }
 0x16b   : > { %10076 = vmatpush3.bf16.msra.mxu1 %v10733_v4 }
 0x16c   : > { %9453 = vmatpush3.bf16.msra.mxu0 %v10734_v5  ;;  %10077 = vmatprep.subr.bf16.mxu1 %v11088_v1  ;;  %v1162_v5 = vadd.f32 %v12040_v21, %v1161_v60  ;;  %v10777_v21 = vld [vmem:[%s13383_s2 + $0x138] sm:$0xff]   ;;  %v10796_v60 = vld [vmem:[%s13383_s2 + $0xa0] sm:$0xff]  }
 0x16d   : > { %9454 = vmatprep.subr.bf16.mxu0 %v10735_v6 }
 0x16f   : > { %10078 = vmatpush3.bf16.msra.mxu1 %v10736_v7 }
 0x170   : > { %9455 = vmatpush3.bf16.msra.mxu0 %v10737_v8  ;;  %10079 = vmatprep.subr.bf16.mxu1 %v11088_v1  ;;  %v10775_v8 = vld [vmem:[%s13383_s2 + $0x170] sm:$0xff]  }
 0x171   : > { %9456 = vmatprep.subr.bf16.mxu0 %v10738_v9 }
 0x173   : > { %10080 = vmatpush3.bf16.msra.mxu1 %v10739_v10 }
 0x174   : > { %9457 = vmatpush3.bf16.msra.mxu0 %v10740_v11  ;;  %10081 = vmatprep.subr.bf16.mxu1 %v11088_v1 }
 0x175   : > { %9458 = vmatprep.subr.bf16.mxu0 %v10741_v12  ;;  %v10776_v12 = vld [vmem:[%s13383_s2 + $0xf0] sm:$0xff]  }
 0x177   : > { %10082 = vmatpush3.bf16.msra.mxu1 %v10742_v13  ;;  %v1170_v13 = vadd.f32 %v1169_v62, %v1168_v57  ;;  %v10798_v62 = vld [vmem:[%s13383_s2 + $0x68] sm:$0xff]  }
 0x178   : > { %9459 = vmatpush3.bf16.msra.mxu0 %v10743_v14  ;;  %10083 = vmatprep.subr.bf16.mxu1 %v11088_v1 }
 0x179   : > { %9460 = vmatprep.subr.bf16.mxu0 %v10744_v16 }
 0x17a   : > { %v9249_v23 = vpop.f32.mrb[16].mxu0 }
 0x17b   : > { %v9250_v27 = vpop.f32.mrb[17].mxu0  ;;  %10084 = vmatpush3.bf16.msra.mxu1 %v10745_v17  ;;  %v1163_v17 = vrot.slane %v1162_v5, 2 }
 0x17c   : > { %v9251_v28 = vadd.f32 %v9250_v27, %v9249_v23  ;;  %v9252_v29 = vpop.f32.mrb[18].mxu0  ;;  %9461 = vmatpush3.bf16.msra.mxu0 %v10746_v18  ;;  %10085 = vmatprep.subr.bf16.mxu1 %v11088_v1  ;;  %v10779_v18 = vld [vmem:[%s13383_s2 + $0xf8] sm:$0xff]   ;;  %v10783_v23 = vld [vmem:[%s13383_s2 + $0x40] sm:$0xff]  }
 0x17d   : > { %v9253_v31 = vpop.f32.mrb[19].mxu0  ;;  %9462 = vmatprep.subr.bf16.mxu0 %v10747_v20  ;;  %v10782_v20 = vld [vmem:[%s11204_s15 + $0x68] ss:$0 sps:$4 sm:$0xff]   ;;  %v12331_v27 = vld [vmem:[%s11275_s13 + $0x60] sm:$0xff]  ;;  %v1164_v24 = vadd.f32 %v1163_v17, %v1162_v5 }
 0x17e   : > { %v12227_v33 = vadd.f32 %v9251_v28, %v12126_v50  ;;  %v10763_v50 = vld [vmem:[%s13383_s2 + $0x150] sm:$0xff]   ;;  %v8415_v28 = vcombine.low %v12237_v40, %v12237_v40  ;;  %v10784_v29 = vld [vmem:[%s13383_s2 + $0x80] sm:$0xff]   ;;  %v8443_v34 = vcombine.high %v12331_v27, %v12331_v27 }
 0x17f   : > { %10086 = vmatpush3.bf16.msra.mxu1 %v10748_v22  ;;  %v1171_v22 = vrot.slane %v1170_v13, 2 }
 0x180   : > { %9463 = vmatpush3.bf16.msra.mxu0 %v10749_v25  ;;  %10087 = vmatprep.subr.bf16.mxu1 %v11088_v1 }
 0x181   : > { %9464 = vmatprep.subr.bf16.mxu0 %v10750_v30  ;;  %v1172_v35 = vadd.f32 %v1171_v22, %v1170_v13  ;;  %v10812_v22 = vld [vmem:[%s13383_s2 + $0x180] sm:$0xff]  }
 0x183   : > { %10088 = vmatpush3.bf16.msra.mxu1 %v10751_v32  ;;  %v10785_v32 = vld [vmem:[%s13383_s2] sm:$0xff]  }
 0x184   : > { %9465 = vmatpush3.bf16.msra.mxu0 %v10752_v38  ;;  %10093 = vmatprep.subr.bf16.mxu1 %v11088_v1  ;;  %v1165_v38 = vrot.slane %v1164_v24, 1 }
 0x185   : > { %9481 = vmatprep.subr.bf16.mxu0 %v10756_v39  ;;  %v10787_v39 = vld [vmem:[%s13383_s2 + $0x88] sm:$0xff]  }
 0x186   : > { %10090 = vmatmul.mubr.bf16.vlgmr.msra.gmra.mrb[12].mxu1 %v3639_v41 }
 0x187   : > { %3820 = vmatmul.mubr.bf16.vlgmr.msra.gmra.mrb[44].mxu0 %v3625_v42  ;;  %10094 = vmatpush3.bf16.msra.mxu1 %v10757_v43  ;;  %v10788_v42 = vld [vmem:[%s13383_s2 + $0x8] sm:$0xff]   ;;  %v10789_v43 = vld [vmem:[%s13383_s2 + $0x50] sm:$0xff]  }
 0x188   : > { %9482 = vmatpush3.bf16.msra.mxu0 %v10758_v44  ;;  %10095 = vmatprep.subr.bf16.mxu1 %v11088_v1  ;;  %v1173_v44 = vrot.slane %v1172_v35, 1 }
 0x189   : > { %9483 = vmatprep.subr.bf16.mxu0 %v10759_v45  ;;  %4174 = vmatprep.mubr.bf16.mxu0 %v8416_v46 }
 0x18a   : > { %10109 = vmatprep.mubr.msk.bf16.mxu1 %vm11089_vm0, %v11088_v1 }
 0x18b   : > { %10096 = vmatpush3.bf16.msra.mxu1 %v10760_v47  ;;  %v10790_v47 = vld [vmem:[%s13383_s2 + $0x90] sm:$0xff]  }
 0x18c   : > { %9484 = vmatpush3.bf16.msra.mxu0 %v10761_v48  ;;  %10097 = vmatprep.subr.bf16.mxu1 %v11088_v1  ;;  %v1166_v48 = vadd.f32 %v1165_v38, %v1164_v24  ;;  %v10815_v24 = vld [vmem:[%s13383_s2 + $0x188] sm:$0xff]  }
 0x18d   : > { %9485 = vmatprep.subr.bf16.mxu0 %v10762_v49  ;;  %v10825_v38 = vld [vmem:[%s13383_s2 + $0x1e8] sm:$0xff]  }
 0x18f   : > { %10098 = vmatpush3.bf16.msra.mxu1 %v10763_v50 }
 0x190   : > { %9486 = vmatpush3.bf16.msra.mxu0 %v10764_v51  ;;  %10099 = vmatprep.subr.bf16.mxu1 %v11088_v1  ;;  %v10791_v51 = vld [vmem:[%s13383_s2 + $0x10] sm:$0xff]  }
 0x191   : > { %9487 = vmatprep.subr.bf16.mxu0 %v10765_v52  ;;  %v10792_v52 = vld [vmem:[%s13383_s2 + $0x58] sm:$0xff]  }
 0x193   : > { %10100 = vmatpush3.bf16.msra.mxu1 %v10766_v53  ;;  %v1174_v53 = vadd.f32 %v1173_v44, %v1172_v35  ;;  %v10823_v35 = vld [vmem:[%s13383_s2 + $0x220] sm:$0xff]  }
 0x194   : > { %9488 = vmatpush3.bf16.msra.mxu0 %v10767_v54  ;;  %10101 = vmatprep.subr.bf16.mxu1 %v11088_v1 }
 0x195   : > { %9489 = vmatprep.subr.bf16.mxu0 %v10768_v55 }
 0x197   : > { %10102 = vmatpush3.bf16.msra.mxu1 %v10769_v56  ;;  %v10793_v56 = vld [vmem:[%s13383_s2 + $0x98] sm:$0xff]  }
 0x198   : > { %9490 = vmatpush3.bf16.msra.mxu0 %v10770_v58  ;;  %10103 = vmatprep.subr.bf16.mxu1 %v11088_v1  ;;  %v10794_v58 = vld [vmem:[%s13383_s2 + $0x18] sm:$0xff]  }
 0x199   : > { %v2055_v0 = vpop.f32.mrb[4].mxu1  ;;  %9491 = vmatprep.subr.bf16.mxu0 %v10771_v59  ;;  %v10795_v59 = vld [vmem:[%s13383_s2 + $0x60] sm:$0xff]  }
 0x19a   : > { %v9280_v3 = vpop.f32.mrb[20].mxu0  ;;  %v9971_v4 = vpop.f32.mrb[5].mxu1 }
 0x19b   : > { %v9281_v6 = vpop.f32.mrb[21].mxu0  ;;  %v2058_v7 = vpop.f32.mrb[6].mxu1  ;;  %10104 = vmatpush3.bf16.msra.mxu1 %v10772_v61  ;;  %v10797_v61 = vld [vmem:[%s13383_s2 + $0x20] sm:$0xff]  }
 0x19c   : > { %v9282_v9 = vadd.f32 %v9281_v6, %v9280_v3  ;;  %v9283_v10 = vpop.f32.mrb[22].mxu0  ;;  %v9972_v11 = vpop.f32.mrb[7].mxu1  ;;  %9492 = vmatpush3.bf16.msra.mxu0 %v10773_v63  ;;  %10105 = vmatprep.subr.bf16.mxu1 %v11088_v1  ;;  %v10799_v63 = vld [vmem:[%s13383_s2 + $0xa8] sm:$0xff]   ;;  %v10801_v3 = vld [vmem:[%s13383_s2 + $0x70] sm:$0xff]  }
 0x19d   : > { %v9284_v14 = vpop.f32.mrb[23].mxu0  ;;  %9493 = vmatprep.subr.bf16.mxu0 %v10774_v2  ;;  %v10800_v2 = vld [vmem:[%s13383_s2 + $0x28] sm:$0xff]   ;;  %v10802_v7 = vld [vmem:[%s13383_s2 + $0xb0] sm:$0xff]  }
 0x19e   : > { %v10337_v16 = vadd.f32 %v12227_v33, %v9282_v9  ;;  %v10786_v33 = vld [vmem:[%s13383_s2 + $0x48] sm:$0xff]   ;;  %v10803_v10 = vld [vmem:[%s13383_s2 + $0x30] sm:$0xff]   ;;  %v10806_v14 = vld [vmem:[%s13383_s2 + $0x38] sm:$0xff]  }
 0x19f   : > { %10106 = vmatpush3.bf16.msra.mxu1 %v10775_v8 }
 0x1a0   : > { %v10338_v19 = vadd.f32 %v10337_v16, %v2055_v0  ;;  %9494 = vmatpush3.bf16.msra.mxu0 %v10776_v12  ;;  %10107 = vmatprep.subr.bf16.mxu1 %v11088_v1  ;;  %v12397_v0 = vld [vmem:[%s11275_s13 + $0x6c] sm:$0x11]  ;;  %v10804_v12 = vld [vmem:[%s13383_s2 + $0x78] sm:$0xff]   ;;  %v10810_v16 = vld [vmem:[%s13383_s2 + $0x1c0] sm:$0xff]  }
 0x1a1   : > { %9495 = vmatprep.subr.bf16.mxu0 %v10777_v21  ;;  %v8522_v5 = vcombine.high %v12331_v27, %v12397_v0  ;;  %v10805_v21 = vld [vmem:[%s13383_s2 + $0xb8] sm:$0xff]  }
 0x1a2   : > { %7990 = vst [vmem:[%s12035_s30 + $0x8] sm:$0xff] %v10338_v19  ;;  %v2064_v25 = vrot.slane %v10338_v19, 4  ;;  %v2071_v26 = vmul.f32 %v10338_v19, %v10338_v19 }
 0x1a3   : > { %10108 = vmatpush3.bf16.msra.mxu1 %v10778_v15  ;;  %v4532_v13 = vshll.u32 %v8522_v5, 16  ;;  %v10809_v15 = vld [vmem:[%s11275_s13 + $0x68] ss:$0 sps:$4 sm:$0xff]   ;;  %v4530_v17 = vshrl.u32 %v8522_v5, 16 }
 0x1a4   : > { %v2065_v30 = vadd.f32 %v10338_v19, %v2064_v25  ;;  %v2072_v31 = vrot.slane %v2071_v26, 4  ;;  %9496 = vmatpush3.bf16.msra.mxu0 %v10779_v18  ;;  %10113 = vmatprep.subr.bf16.mxu1 %v11088_v1  ;;  %v8442_v19 = vcombine.low %v12331_v27, %v12331_v27 }
 0x1a5   : > { %9512 = vmatprep.subr.bf16.mxu0 %v10783_v23  ;;  %v4534_v18 = vrot.slane %v4532_v13, 1  ;;  %v10813_v23 = vld [vmem:[%s13383_s2 + $0x1c8] sm:$0xff]   ;;  %v10849_v13 = vld [vmem:[%s13383_s2 + $0x120] sm:$0xff]  }
 0x1a6   : > { %v2066_v36 = vrot.slane %v2065_v30, 2  ;;  %v2073_v37 = vadd.f32 %v2072_v31, %v2071_v26  ;;  %10110 = vmatmul.mubr.bf16.vlgmr.msra.gmra.mrb[16].mxu1 %v10782_v20  ;;  %v10811_v20 = vld [vmem:[%s13383_s2 + $0x200] sm:$0xff]   ;;  %v10814_v26 = vld [vmem:[%s13383_s2 + $0x208] sm:$0xff]   ;;  %v10819_v31 = vld [vmem:[%s13383_s2 + $0x1d8] sm:$0xff]  }
 0x1a7   : > { %4175 = vmatmul.mubr.bf16.vlgmr.msra.gmra.mrb[48].mxu0 %v8415_v28  ;;  %10114 = vmatpush3.bf16.msra.mxu1 %v10784_v29  ;;  %v4535_v25 = vor.u32 %v4534_v18, %v4530_v17  ;;  %v10816_v28 = vld [vmem:[%s13383_s2 + $0x1d0] sm:$0xff]   ;;  %v10853_v17 = vld [vmem:[%s13383_s2 + $0x168] sm:$0xff]  }
 0x1a8   : > { %v2067_v40 = vadd.f32 %v2066_v36, %v2065_v30  ;;  %v2074_v41 = vrot.slane %v2073_v37, 2  ;;  %9513 = vmatpush3.bf16.msra.mxu0 %v10785_v32  ;;  %10115 = vmatprep.subr.bf16.mxu1 %v11088_v1  ;;  %v10817_v29 = vld [vmem:[%s13383_s2 + $0x210] sm:$0xff]   ;;  %v10820_v32 = vld [vmem:[%s13383_s2 + $0x218] sm:$0xff]   ;;  %v10824_v36 = vld [vmem:[%s13383_s2 + $0x1a0] sm:$0xff]  }
 0x1a9   : > { %9514 = vmatprep.subr.bf16.mxu0 %v10786_v33  ;;  %4409 = vmatprep.mubr.bf16.mxu0 %v8443_v34  ;;  %v10818_v30 = vld [vmem:[%s13383_s2 + $0x190] sm:$0xff]   ;;  %v10821_v33 = vld [vmem:[%s13383_s2 + $0x198] sm:$0xff]   ;;  %v10822_v34 = vld [vmem:[%s13383_s2 + $0x1e0] sm:$0xff]  }
 0x1aa   : > { %v2068_v45 = vrot.slane %v2067_v40, 1  ;;  %v2075_v46 = vadd.f32 %v2074_v41, %v2073_v37  ;;  %10129 = vmatprep.mubr.msk.bf16.mxu1 %vm11089_vm0, %v11088_v1  ;;  %v10836_v37 = vld [vmem:[%s11275_s13 + $0x68] ss:$12 sps:$4 sm:$0x1f]   ;;  %v8521_v41 = vcombine.low %v12331_v27, %v12397_v0 }
 0x1ab   : > { %10116 = vmatpush3.bf16.msra.mxu1 %v10787_v39  ;;  %v10826_v39 = vld [vmem:[%s13383_s2 + $0x228] sm:$0xff]  }
 0x1ac   : > { %v2069_v49 = vadd.f32 %v2068_v45, %v2067_v40  ;;  %v2076_v50 = vrot.slane %v2075_v46, 1  ;;  %9515 = vmatpush3.bf16.msra.mxu0 %v10788_v42  ;;  %10117 = vmatprep.subr.bf16.mxu1 %v11088_v1  ;;  %v10827_v40 = vld [vmem:[%s13383_s2 + $0x1a8] sm:$0xff]   ;;  %v10828_v42 = vld [vmem:[%s13383_s2 + $0x1f0] sm:$0xff]   ;;  %v4525_v27 = vshll.u32 %v8521_v41, 16 }
 0x1ad   : > { %9516 = vmatprep.subr.bf16.mxu0 %v10789_v43  ;;  %v10829_v43 = vld [vmem:[%s13383_s2 + $0x230] sm:$0xff]   ;;  %v10854_v18 = vld [vmem:[%s13383_s2 + $0xe8] sm:$0xff]  }
 0x1ae   : > { %v12369_v54 = vadd.f32 %v2069_v49, %v1166_v48  ;;  %v2077_v55 = vadd.f32 %v2076_v50, %v2075_v46  ;;  %v10830_v45 = vld [vmem:[%s13383_s2 + $0x1b0] sm:$0xff]   ;;  %v4539_v46 = vshll.u32 %v10836_v37, 16  ;;  %v10831_v50 = vld [vmem:[%s13383_s2 + $0x1f8] sm:$0xff]  }
 0x1af   : > { %10118 = vmatpush3.bf16.msra.mxu1 %v10790_v47 }
 0x1b0   : > { %v12374_v57 = vadd.f32 %v2077_v55, %v1174_v53  ;;  %9517 = vmatpush3.bf16.msra.mxu0 %v10791_v51  ;;  %10119 = vmatprep.subr.bf16.mxu1 %v11088_v1  ;;  %v4537_v55 = vshrl.u32 %v10836_v37, 16 }
 0x1b1   : > { %9518 = vmatprep.subr.bf16.mxu0 %v10792_v52  ;;  %v10832_v52 = vld [vmem:[%s13383_s2 + $0x238] sm:$0xff]  }
 0x1b3   : > { %10120 = vmatpush3.bf16.msra.mxu1 %v10793_v56  ;;  %v4541_v56 = vrot.slane %v4539_v46, 1 }
 0x1b4   : > { %9519 = vmatpush3.bf16.msra.mxu0 %v10794_v58  ;;  %10121 = vmatprep.subr.bf16.mxu1 %v11088_v1  ;;  %v4523_v58 = vshrl.u32 %v8521_v41, 16 }
 0x1b5   : > { %9520 = vmatprep.subr.bf16.mxu0 %v10795_v59  ;;  %v4527_v59 = vrot.slane %v4525_v27, 1  ;;  %v10867_v27 = vld [vmem:[%s13383_s2 + $0x48] sm:$0xff]  }
 0x1b7   : > { %10122 = vmatpush3.bf16.msra.mxu1 %v10796_v60  ;;  %v10833_v60 = vld [vmem:[%s13383_s2 + $0x1b8] sm:$0xff]   ;;  %v4528_v0 = vor.u32 %v4527_v59, %v4523_v58  ;;  %v10871_v58 = vld [vmem:[%s13383_s2 + $0x90] sm:$0xff]  }
 0x1b8   : > { %9521 = vmatpush3.bf16.msra.mxu0 %v10797_v61  ;;  %10123 = vmatprep.subr.bf16.mxu1 %v11088_v1  ;;  %v10837_v61 = vld [vmem:[%s13383_s2 + $0x100] sm:$0xff]  }
 0x1b9   : > { %9522 = vmatprep.subr.bf16.mxu0 %v10798_v62  ;;  %v4542_v62 = vor.u32 %v4541_v56, %v4537_v55  ;;  %v10870_v56 = vld [vmem:[%s13383_s2 + $0x50] sm:$0xff]  }
 0x1ba   : > { %v9311_v4 = vpop.f32.mrb[24].mxu0 }
 0x1bb   : > { %v9312_v6 = vpop.f32.mrb[25].mxu0  ;;  %10124 = vmatpush3.bf16.msra.mxu1 %v10799_v63  ;;  %v12522_v63 = vld [vmem:[%s11204_s15 + $0x78] sm:$0xff] }
 0x1bc   : > { %v12411_v8 = vadd.f32 %v9312_v6, %v9311_v4  ;;  %v9314_v9 = vpop.f32.mrb[26].mxu0  ;;  %9523 = vmatpush3.bf16.msra.mxu0 %v10800_v2  ;;  %10125 = vmatprep.subr.bf16.mxu1 %v11088_v1  ;;  %v10838_v2 = vld [vmem:[%s13383_s2 + $0x140] sm:$0xff]   ;;  %v10840_v4 = vld [vmem:[%s13383_s2 + $0x108] sm:$0xff]   ;;  %v8602_v5 = vcombine.high %v12522_v63, %v12522_v63 }
 0x1bd   : > { %v9315_v11 = vpop.f32.mrb[27].mxu0  ;;  %9524 = vmatprep.subr.bf16.mxu0 %v10801_v3  ;;  %v10839_v3 = vld [vmem:[%s13383_s2 + $0xc0] sm:$0xff]   ;;  %v10841_v6 = vld [vmem:[%s13383_s2 + $0x148] sm:$0xff]   ;;  %v10844_v9 = vld [vmem:[%s13383_s2 + $0x150] sm:$0xff]  }
 0x1be   : > { %v10846_v11 = vld [vmem:[%s13383_s2 + $0x118] sm:$0xff]  }
 0x1bf   : > { %10126 = vmatpush3.bf16.msra.mxu1 %v10802_v7  ;;  %v10842_v7 = vld [vmem:[%s13383_s2 + $0xc8] sm:$0xff]  }
 0x1c0   : > { %9525 = vmatpush3.bf16.msra.mxu0 %v10803_v10  ;;  %10127 = vmatprep.subr.bf16.mxu1 %v11088_v1  ;;  %v10845_v10 = vld [vmem:[%s13383_s2 + $0xd0] sm:$0xff]  }
 0x1c1   : > { %9526 = vmatprep.subr.bf16.mxu0 %v10804_v12  ;;  %v10847_v12 = vld [vmem:[%s13383_s2 + $0x158] sm:$0xff]  }
 0x1c3   : > { %10128 = vmatpush3.bf16.msra.mxu1 %v10805_v21  ;;  %v10848_v21 = vld [vmem:[%s13383_s2 + $0xd8] sm:$0xff]  }
 0x1c4   : > { %9527 = vmatpush3.bf16.msra.mxu0 %v10806_v14  ;;  %10133 = vmatprep.subr.bf16.mxu1 %v11088_v1  ;;  %v10850_v14 = vld [vmem:[%s13383_s2 + $0x160] sm:$0xff]  }
 0x1c5   : > { %9543 = vmatprep.subr.bf16.mxu0 %v10810_v16  ;;  %v10852_v16 = vld [vmem:[%s13383_s2 + $0x128] sm:$0xff]  }
 0x1c6   : > { %10130 = vmatmul.mubr.bf16.vlgmr.msra.gmra.mrb[16].mxu1 %v10809_v15  ;;  %v10851_v15 = vld [vmem:[%s13383_s2 + $0xe0] sm:$0xff]  }
 0x1c7   : > { %4410 = vmatmul.mubr.bf16.vlgmr.msra.gmra.mrb[52].mxu0 %v8442_v19  ;;  %10134 = vmatpush3.bf16.msra.mxu1 %v10811_v20  ;;  %v10855_v20 = vld [vmem:[%s13383_s2 + $0x130] sm:$0xff]  }
 0x1c8   : > { %9544 = vmatpush3.bf16.msra.mxu0 %v10812_v22  ;;  %10135 = vmatprep.subr.bf16.mxu1 %v11088_v1 }
 0x1c9   : > { %9545 = vmatprep.subr.bf16.mxu0 %v10813_v23  ;;  %10149 = vmatprep.mubr.msk.bf16.mxu1 %vm11089_vm0, %v11088_v1 }
 0x1ca   : > { %4722 = vmatprep.mubr.bf16.mxu0 %v4535_v25  ;;  %v10856_v25 = vld [vmem:[%s13383_s2 + $0x170] sm:$0xff]  }
 0x1cb   : > { %10136 = vmatpush3.bf16.msra.mxu1 %v10814_v26  ;;  %v10857_v26 = vld [vmem:[%s13383_s2 + $0xf0] sm:$0xff]  }
 0x1cc   : > { %9546 = vmatpush3.bf16.msra.mxu0 %v10815_v24  ;;  %10137 = vmatprep.subr.bf16.mxu1 %v11088_v1 }
 0x1cd   : > { %9547 = vmatprep.subr.bf16.mxu0 %v10816_v28 }
 0x1cf   : > { %10138 = vmatpush3.bf16.msra.mxu1 %v10817_v29 }
 0x1d0   : > { %9548 = vmatpush3.bf16.msra.mxu0 %v10818_v30  ;;  %10139 = vmatprep.subr.bf16.mxu1 %v11088_v1 }
 0x1d1   : > { %9549 = vmatprep.subr.bf16.mxu0 %v10819_v31 }
 0x1d3   : > { %10140 = vmatpush3.bf16.msra.mxu1 %v10820_v32 }
 0x1d4   : > { %9550 = vmatpush3.bf16.msra.mxu0 %v10821_v33  ;;  %10141 = vmatprep.subr.bf16.mxu1 %v11088_v1  ;;  %v10858_v33 = vld [vmem:[%s13383_s2 + $0x138] sm:$0xff]  }
 0x1d5   : > { %9551 = vmatprep.subr.bf16.mxu0 %v10822_v34  ;;  %v10859_v34 = vld [vmem:[%s13383_s2 + $0x178] sm:$0xff]  }
 0x1d7   : > { %10142 = vmatpush3.bf16.msra.mxu1 %v10823_v35 }
 0x1d8   : > { %9552 = vmatpush3.bf16.msra.mxu0 %v10824_v36  ;;  %10143 = vmatprep.subr.bf16.mxu1 %v11088_v1  ;;  %v10860_v36 = vld [vmem:[%s13383_s2 + $0xf8] sm:$0xff]  }
 0x1d9   : > { %9553 = vmatprep.subr.bf16.mxu0 %v10825_v38  ;;  %v10863_v38 = vld [vmem:[%s11204_s15 + $0x80] ss:$0 sps:$4 sm:$0xff]  }
 0x1da   : > { %v9342_v44 = vpop.f32.mrb[28].mxu0 }
 0x1db   : > { %v9343_v47 = vpop.f32.mrb[29].mxu0  ;;  %10144 = vmatpush3.bf16.msra.mxu1 %v10826_v39  ;;  %v10864_v39 = vld [vmem:[%s13383_s2 + $0x40] sm:$0xff]  }
 0x1dc   : > { %v9344_v48 = vadd.f32 %v9343_v47, %v9342_v44  ;;  %v9345_v49 = vpop.f32.mrb[30].mxu0  ;;  %9554 = vmatpush3.bf16.msra.mxu0 %v10827_v40  ;;  %10145 = vmatprep.subr.bf16.mxu1 %v11088_v1  ;;  %v10865_v44 = vld [vmem:[%s13383_s2 + $0x80] sm:$0xff]  }
 0x1dd   : > { %v9346_v51 = vpop.f32.mrb[31].mxu0  ;;  %9555 = vmatprep.subr.bf16.mxu0 %v10828_v42  ;;  %v12612_v42 = vld [vmem:[%s11275_s13 + $0x78] sm:$0xff]  ;;  %v10866_v47 = vld [vmem:[%s13383_s2] sm:$0xff]  }
 0x1de   : > { %v12512_v53 = vadd.f32 %v9344_v48, %v12411_v8  ;;  %v10843_v8 = vld [vmem:[%s13383_s2 + $0x110] sm:$0xff]   ;;  %v10868_v48 = vld [vmem:[%s13383_s2 + $0x88] sm:$0xff]   ;;  %v8629_v49 = vcombine.high %v12612_v42, %v12612_v42 }
 0x1df   : > { %10146 = vmatpush3.bf16.msra.mxu1 %v10829_v43  ;;  %v8601_v43 = vcombine.low %v12522_v63, %v12522_v63 }
 0x1e0   : > { %9556 = vmatpush3.bf16.msra.mxu0 %v10830_v45  ;;  %10147 = vmatprep.subr.bf16.mxu1 %v11088_v1 }
 0x1e1   : > { %9557 = vmatprep.subr.bf16.mxu0 %v10831_v50 }
 0x1e3   : > { %10148 = vmatpush3.bf16.msra.mxu1 %v10832_v52  ;;  %v10869_v52 = vld [vmem:[%s13383_s2 + $0x8] sm:$0xff]  }
 0x1e4   : > { %9558 = vmatpush3.bf16.msra.mxu0 %v10833_v60  ;;  %10153 = vmatprep.subr.bf16.mxu1 %v11088_v1 }
 0x1e5   : > { %9574 = vmatprep.subr.bf16.mxu0 %v10837_v61  ;;  %v10872_v61 = vld [vmem:[%s13383_s2 + $0x10] sm:$0xff]  }
 0x1e6   : > { %10150 = vmatmul.mubr.bf16.vlgmr.msra.gmra.mrb[16].mxu1 %v4542_v62 }
 0x1e7   : > { %4723 = vmatmul.mubr.bf16.vlgmr.msra.gmra.mrb[56].mxu0 %v4528_v0  ;;  %10154 = vmatpush3.bf16.msra.mxu1 %v10838_v2  ;;  %v10873_v0 = vld [vmem:[%s13383_s2 + $0x58] sm:$0xff]  }
 0x1e8   : > { %9575 = vmatpush3.bf16.msra.mxu0 %v10839_v3  ;;  %10155 = vmatprep.subr.bf16.mxu1 %v11088_v1  ;;  %v10874_v2 = vld [vmem:[%s13383_s2 + $0x98] sm:$0xff]  }
 0x1e9   : > { %9576 = vmatprep.subr.bf16.mxu0 %v10840_v4  ;;  %5077 = vmatprep.mubr.bf16.mxu0 %v8602_v5  ;;  %v10875_v5 = vld [vmem:[%s13383_s2 + $0x18] sm:$0xff]  }
 0x1ea   : > { %10169 = vmatprep.mubr.msk.bf16.mxu1 %vm11089_vm0, %v11088_v1 }
 0x1eb   : > { %10156 = vmatpush3.bf16.msra.mxu1 %v10841_v6 }
 0x1ec   : > { %9577 = vmatpush3.bf16.msra.mxu0 %v10842_v7  ;;  %10157 = vmatprep.subr.bf16.mxu1 %v11088_v1  ;;  %v10876_v7 = vld [vmem:[%s13383_s2 + $0x60] sm:$0xff]  }
 0x1ed   : > { %9578 = vmatprep.subr.bf16.mxu0 %v10843_v8  ;;  %v10878_v8 = vld [vmem:[%s13383_s2 + $0x20] sm:$0xff]  }
 0x1ef   : > { %10158 = vmatpush3.bf16.msra.mxu1 %v10844_v9  ;;  %v10880_v9 = vld [vmem:[%s13383_s2 + $0xa8] sm:$0xff]  }
 0x1f0   : > { %9579 = vmatpush3.bf16.msra.mxu0 %v10845_v10  ;;  %10159 = vmatprep.subr.bf16.mxu1 %v11088_v1  ;;  %v10881_v10 = vld [vmem:[%s13383_s2 + $0x28] sm:$0xff]  }
 0x1f1   : > { %9580 = vmatprep.subr.bf16.mxu0 %v10846_v11  ;;  %v12683_v11 = vld [vmem:[%s11275_s13 + $0x84] sm:$0x11] }
 0x1f3   : > { %10160 = vmatpush3.bf16.msra.mxu1 %v10847_v12  ;;  %v10882_v12 = vld [vmem:[%s13383_s2 + $0x70] sm:$0xff]  }
 0x1f4   : > { %9581 = vmatpush3.bf16.msra.mxu0 %v10848_v21  ;;  %10161 = vmatprep.subr.bf16.mxu1 %v11088_v1 }
 0x1f5   : > { %9582 = vmatprep.subr.bf16.mxu0 %v10849_v13  ;;  %v8708_v13 = vcombine.high %v12612_v42, %v12683_v11 }
 0x1f7   : > { %10162 = vmatpush3.bf16.msra.mxu1 %v10850_v14 }
 0x1f8   : > { %9583 = vmatpush3.bf16.msra.mxu0 %v10851_v15  ;;  %10163 = vmatprep.subr.bf16.mxu1 %v11088_v1  ;;  %v10883_v15 = vld [vmem:[%s13383_s2 + $0xb0] sm:$0xff]  }
 0x1f9   : > { %v2958_v19 = vpop.f32.mrb[8].mxu1  ;;  %9584 = vmatprep.subr.bf16.mxu0 %v10852_v16 }
 0x1fa   : > { %v9373_v22 = vpop.f32.mrb[32].mxu0  ;;  %v10031_v23 = vpop.f32.mrb[9].mxu1 }
 0x1fb   : > { %v9374_v24 = vpop.f32.mrb[33].mxu0  ;;  %v2961_v28 = vpop.f32.mrb[10].mxu1  ;;  %10164 = vmatpush3.bf16.msra.mxu1 %v10853_v17  ;;  %v5435_v23 = vshll.u32 %v8708_v13, 16 }
 0x1fc   : > { %v9375_v29 = vadd.f32 %v9374_v24, %v9373_v22  ;;  %v9376_v30 = vpop.f32.mrb[34].mxu0  ;;  %v10032_v31 = vpop.f32.mrb[11].mxu1  ;;  %9585 = vmatpush3.bf16.msra.mxu0 %v10854_v18  ;;  %10165 = vmatprep.subr.bf16.mxu1 %v11088_v1  ;;  %v10884_v18 = vld [vmem:[%s13383_s2 + $0x30] sm:$0xff]   ;;  %v10886_v22 = vld [vmem:[%s13383_s2 + $0xb8] sm:$0xff]   ;;  %v10890_v24 = vld [vmem:[%s11275_s13 + $0x80] ss:$0 sps:$4 sm:$0xff]  }
 0x1fd   : > { %v9377_v32 = vpop.f32.mrb[35].mxu0  ;;  %9586 = vmatprep.subr.bf16.mxu0 %v10855_v20  ;;  %v10885_v20 = vld [vmem:[%s13383_s2 + $0x78] sm:$0xff]   ;;  %v10892_v28 = vld [vmem:[%s13383_s2 + $0x200] sm:$0xff]   ;;  %v5437_v30 = vrot.slane %v5435_v23, 1  ;;  %v8628_v31 = vcombine.low %v12612_v42, %v12612_v42 }
 0x1fe   : > { %v10340_v35 = vadd.f32 %v12512_v53, %v9375_v29  ;;  %v5433_v29 = vshrl.u32 %v8708_v13, 16  ;;  %v10893_v32 = vld [vmem:[%s13383_s2 + $0x180] sm:$0xff]   ;;  %v10922_v13 = vld [vmem:[%s13383_s2 + $0x148] sm:$0xff]  }
 0x1ff   : > { %10166 = vmatpush3.bf16.msra.mxu1 %v10856_v25  ;;  %v10887_v25 = vld [vmem:[%s13383_s2 + $0x38] sm:$0xff]   ;;  %v10930_v23 = vld [vmem:[%s13383_s2 + $0x120] sm:$0xff]  }
 0x200   : > { %v10341_v37 = vadd.f32 %v10340_v35, %v2958_v19  ;;  %9587 = vmatpush3.bf16.msra.mxu0 %v10857_v26  ;;  %10167 = vmatprep.subr.bf16.mxu1 %v11088_v1  ;;  %v10891_v26 = vld [vmem:[%s13383_s2 + $0x1c0] sm:$0xff]   ;;  %v10896_v35 = vld [vmem:[%s13383_s2 + $0x188] sm:$0xff]  }
 0x201   : > { %9588 = vmatprep.subr.bf16.mxu0 %v10858_v33  ;;  %v10894_v33 = vld [vmem:[%s13383_s2 + $0x1c8] sm:$0xff]  }
 0x202   : > { %8176 = vst [vmem:[%s12035_s30 + $0x10] sm:$0xff] %v10341_v37  ;;  %v2967_v40 = vrot.slane %v10341_v37, 4  ;;  %v2974_v41 = vmul.f32 %v10341_v37, %v10341_v37 }
 0x203   : > { %10168 = vmatpush3.bf16.msra.mxu1 %v10859_v34  ;;  %v10895_v34 = vld [vmem:[%s13383_s2 + $0x208] sm:$0xff]  }
 0x204   : > { %v2968_v45 = vadd.f32 %v10341_v37, %v2967_v40  ;;  %v2975_v46 = vrot.slane %v2974_v41, 4  ;;  %9589 = vmatpush3.bf16.msra.mxu0 %v10860_v36  ;;  %10173 = vmatprep.subr.bf16.mxu1 %v11088_v1  ;;  %v5438_v36 = vor.u32 %v5437_v30, %v5433_v29  ;;  %v10897_v37 = vld [vmem:[%s13383_s2 + $0x1d0] sm:$0xff]   ;;  %v10900_v40 = vld [vmem:[%s13383_s2 + $0x1d8] sm:$0xff]   ;;  %v10935_v29 = vld [vmem:[%s13383_s2 + $0xe8] sm:$0xff]  }
 0x205   : > { %9605 = vmatprep.subr.bf16.mxu0 %v10864_v39  ;;  %v10899_v39 = vld [vmem:[%s13383_s2 + $0x190] sm:$0xff]  }
 0x206   : > { %v2969_v50 = vrot.slane %v2968_v45, 2  ;;  %v2976_v51 = vadd.f32 %v2975_v46, %v2974_v41  ;;  %10170 = vmatmul.mubr.bf16.vlgmr.msra.gmra.mrb[20].mxu1 %v10863_v38  ;;  %v10898_v38 = vld [vmem:[%s13383_s2 + $0x210] sm:$0xff]   ;;  %v10901_v41 = vld [vmem:[%s13383_s2 + $0x218] sm:$0xff]   ;;  %v10905_v46 = vld [vmem:[%s13383_s2 + $0x1a0] sm:$0xff]  }
 0x207   : > { %5078 = vmatmul.mubr.bf16.vlgmr.msra.gmra.mrb[60].mxu0 %v8601_v43  ;;  %10174 = vmatpush3.bf16.msra.mxu1 %v10865_v44  ;;  %v10902_v43 = vld [vmem:[%s13383_s2 + $0x198] sm:$0xff]   ;;  %v10903_v44 = vld [vmem:[%s13383_s2 + $0x1e0] sm:$0xff]  }
 0x208   : > { %v2970_v53 = vadd.f32 %v2969_v50, %v2968_v45  ;;  %v2977_v55 = vrot.slane %v2976_v51, 2  ;;  %9606 = vmatpush3.bf16.msra.mxu0 %v10866_v47  ;;  %10175 = vmatprep.subr.bf16.mxu1 %v11088_v1  ;;  %v10904_v45 = vld [vmem:[%s13383_s2 + $0x220] sm:$0xff]   ;;  %v10906_v47 = vld [vmem:[%s13383_s2 + $0x1e8] sm:$0xff]  }
 0x209   : > { %9607 = vmatprep.subr.bf16.mxu0 %v10867_v27  ;;  %5312 = vmatprep.mubr.bf16.mxu0 %v8629_v49  ;;  %v10917_v27 = vld [vmem:[%s11275_s13 + $0x80] ss:$12 sps:$4 sm:$0x1f]   ;;  %v8707_v49 = vcombine.low %v12612_v42, %v12683_v11 }
 0x20a   : > { %v2971_v59 = vrot.slane %v2970_v53, 1  ;;  %v2978_v60 = vadd.f32 %v2977_v55, %v2976_v51  ;;  %10189 = vmatprep.mubr.msk.bf16.mxu1 %vm11089_vm0, %v11088_v1  ;;  %v10908_v50 = vld [vmem:[%s13383_s2 + $0x1a8] sm:$0xff]   ;;  %v10909_v51 = vld [vmem:[%s13383_s2 + $0x1f0] sm:$0xff]   ;;  %v5442_v42 = vshll.u32 %v10917_v27, 16 }
 0x20b   : > { %10176 = vmatpush3.bf16.msra.mxu1 %v10868_v48  ;;  %v10907_v48 = vld [vmem:[%s13383_s2 + $0x228] sm:$0xff]  }
 0x20c   : > { %v2972_v62 = vadd.f32 %v2971_v59, %v2970_v53  ;;  %v2979_v63 = vrot.slane %v2978_v60, 1  ;;  %9608 = vmatpush3.bf16.msra.mxu0 %v10869_v52  ;;  %10177 = vmatprep.subr.bf16.mxu1 %v11088_v1  ;;  %v10910_v52 = vld [vmem:[%s13383_s2 + $0x230] sm:$0xff]   ;;  %v5428_v53 = vshll.u32 %v8707_v49, 16 }
 0x20d   : > { %9609 = vmatprep.subr.bf16.mxu0 %v10870_v56 }
 0x20e   : > { %v12654_v3 = vadd.f32 %v2972_v62, %v12369_v54  ;;  %v2980_v4 = vadd.f32 %v2979_v63, %v2978_v60  ;;  %v10877_v54 = vld [vmem:[%s13383_s2 + $0xa0] sm:$0xff]   ;;  %v10913_v63 = vld [vmem:[%s13383_s2 + $0x238] sm:$0xff]  }
 0x20f   : > { %10178 = vmatpush3.bf16.msra.mxu1 %v10871_v58  ;;  %v10911_v58 = vld [vmem:[%s13383_s2 + $0x1b0] sm:$0xff]  }
 0x210   : > { %v12660_v6 = vadd.f32 %v2980_v4, %v12374_v57  ;;  %9610 = vmatpush3.bf16.msra.mxu0 %v10872_v61  ;;  %10179 = vmatprep.subr.bf16.mxu1 %v11088_v1  ;;  %v10879_v57 = vld [vmem:[%s13383_s2 + $0x68] sm:$0xff]   ;;  %v10912_v61 = vld [vmem:[%s13383_s2 + $0x1f8] sm:$0xff]  }
 0x211   : > { %9611 = vmatprep.subr.bf16.mxu0 %v10873_v0  ;;  %v5440_v0 = vshrl.u32 %v10917_v27, 16  ;;  %v10945_v27 = vld [vmem:[%s13383_s2 + $0x40] sm:$0xff]  }
 0x213   : > { %10180 = vmatpush3.bf16.msra.mxu1 %v10874_v2  ;;  %v5426_v2 = vshrl.u32 %v8707_v49, 16 }
 0x214   : > { %9612 = vmatpush3.bf16.msra.mxu0 %v10875_v5  ;;  %10181 = vmatprep.subr.bf16.mxu1 %v11088_v1  ;;  %v10914_v5 = vld [vmem:[%s13383_s2 + $0x1b8] sm:$0xff]  }
 0x215   : > { %9613 = vmatprep.subr.bf16.mxu0 %v10876_v7  ;;  %v5444_v7 = vrot.slane %v5442_v42, 1 }
 0x217   : > { %10182 = vmatpush3.bf16.msra.mxu1 %v10877_v54  ;;  %v5430_v54 = vrot.slane %v5428_v53, 1  ;;  %v10946_v53 = vld [vmem:[%s13383_s2 + $0x80] sm:$0xff]  }
 0x218   : > { %9614 = vmatpush3.bf16.msra.mxu0 %v10878_v8  ;;  %10183 = vmatprep.subr.bf16.mxu1 %v11088_v1  ;;  %v10918_v8 = vld [vmem:[%s13383_s2 + $0x100] sm:$0xff]  }
 0x219   : > { %9615 = vmatprep.subr.bf16.mxu0 %v10879_v57  ;;  %v10919_v57 = vld [vmem:[%s13383_s2 + $0x140] sm:$0xff]   ;;  %v5431_v11 = vor.u32 %v5430_v54, %v5426_v2  ;;  %v10950_v2 = vld [vmem:[%s13383_s2 + $0x8] sm:$0xff]   ;;  %v10952_v54 = vld [vmem:[%s13383_s2 + $0x90] sm:$0xff]  }
 0x21a   : > { %v9404_v21 = vpop.f32.mrb[36].mxu0 }
 0x21b   : > { %v9405_v14 = vpop.f32.mrb[37].mxu0  ;;  %10184 = vmatpush3.bf16.msra.mxu1 %v10880_v9  ;;  %v5445_v9 = vor.u32 %v5444_v7, %v5440_v0 }
 0x21c   : > { %v12694_v16 = vadd.f32 %v9405_v14, %v9404_v21  ;;  %v9407_v17 = vpop.f32.mrb[38].mxu0  ;;  %9616 = vmatpush3.bf16.msra.mxu0 %v10881_v10  ;;  %10185 = vmatprep.subr.bf16.mxu1 %v11088_v1  ;;  %v12808_v10 = vld [vmem:[%s11204_s15 + $0x90] sm:$0xff]  ;;  %v10921_v21 = vld [vmem:[%s13383_s2 + $0x108] sm:$0xff]  }
 0x21d   : > { %v9408_v19 = vpop.f32.mrb[39].mxu0  ;;  %9617 = vmatprep.subr.bf16.mxu0 %v10882_v12  ;;  %v10920_v12 = vld [vmem:[%s13383_s2 + $0xc0] sm:$0xff]   ;;  %v8788_v14 = vcombine.high %v12808_v10, %v12808_v10  ;;  %v10925_v17 = vld [vmem:[%s13383_s2 + $0x150] sm:$0xff]  }
 0x21e   : > { %v10927_v19 = vld [vmem:[%s13383_s2 + $0x118] sm:$0xff]  }
 0x21f   : > { %10186 = vmatpush3.bf16.msra.mxu1 %v10883_v15  ;;  %v10923_v15 = vld [vmem:[%s13383_s2 + $0xc8] sm:$0xff]  }
 0x220   : > { %9618 = vmatpush3.bf16.msra.mxu0 %v10884_v18  ;;  %10187 = vmatprep.subr.bf16.mxu1 %v11088_v1  ;;  %v10926_v18 = vld [vmem:[%s13383_s2 + $0xd0] sm:$0xff]  }
 0x221   : > { %9619 = vmatprep.subr.bf16.mxu0 %v10885_v20  ;;  %v10928_v20 = vld [vmem:[%s13383_s2 + $0x158] sm:$0xff]  }
 0x223   : > { %10188 = vmatpush3.bf16.msra.mxu1 %v10886_v22  ;;  %v10929_v22 = vld [vmem:[%s13383_s2 + $0xd8] sm:$0xff]  }
 0x224   : > { %9620 = vmatpush3.bf16.msra.mxu0 %v10887_v25  ;;  %10193 = vmatprep.subr.bf16.mxu1 %v11088_v1  ;;  %v10931_v25 = vld [vmem:[%s13383_s2 + $0x160] sm:$0xff]  }
 0x225   : > { %9636 = vmatprep.subr.bf16.mxu0 %v10891_v26  ;;  %v10932_v26 = vld [vmem:[%s13383_s2 + $0xe0] sm:$0xff]  }
 0x226   : > { %10190 = vmatmul.mubr.bf16.vlgmr.msra.gmra.mrb[20].mxu1 %v10890_v24  ;;  %v10933_v24 = vld [vmem:[%s13383_s2 + $0x128] sm:$0xff]  }
 0x227   : > { %5313 = vmatmul.mubr.bf16.vlgmr.msra.gmra.mrb[64].mxu0 %v8628_v31  ;;  %10194 = vmatpush3.bf16.msra.mxu1 %v10892_v28  ;;  %v10934_v28 = vld [vmem:[%s13383_s2 + $0x168] sm:$0xff]   ;;  %v10936_v31 = vld [vmem:[%s13383_s2 + $0x130] sm:$0xff]  }
 0x228   : > { %9637 = vmatpush3.bf16.msra.mxu0 %v10893_v32  ;;  %10195 = vmatprep.subr.bf16.mxu1 %v11088_v1 }
 0x229   : > { %9638 = vmatprep.subr.bf16.mxu0 %v10894_v33  ;;  %10209 = vmatprep.mubr.msk.bf16.mxu1 %vm11089_vm0, %v11088_v1 }
 0x22a   : > { %5625 = vmatprep.mubr.bf16.mxu0 %v5438_v36 }
 0x22b   : > { %10196 = vmatpush3.bf16.msra.mxu1 %v10895_v34  ;;  %v10937_v34 = vld [vmem:[%s13383_s2 + $0x170] sm:$0xff]  }
 0x22c   : > { %9639 = vmatpush3.bf16.msra.mxu0 %v10896_v35  ;;  %10197 = vmatprep.subr.bf16.mxu1 %v11088_v1  ;;  %v10938_v35 = vld [vmem:[%s13383_s2 + $0xf0] sm:$0xff]  }
 0x22d   : > { %9640 = vmatprep.subr.bf16.mxu0 %v10897_v37 }
 0x22f   : > { %10198 = vmatpush3.bf16.msra.mxu1 %v10898_v38 }
 0x230   : > { %9641 = vmatpush3.bf16.msra.mxu0 %v10899_v39  ;;  %10199 = vmatprep.subr.bf16.mxu1 %v11088_v1 }
 0x231   : > { %9642 = vmatprep.subr.bf16.mxu0 %v10900_v40 }
 0x233   : > { %10200 = vmatpush3.bf16.msra.mxu1 %v10901_v41 }
 0x234   : > { %9643 = vmatpush3.bf16.msra.mxu0 %v10902_v43  ;;  %10201 = vmatprep.subr.bf16.mxu1 %v11088_v1  ;;  %v10939_v43 = vld [vmem:[%s13383_s2 + $0x138] sm:$0xff]  }
 0x235   : > { %9644 = vmatprep.subr.bf16.mxu0 %v10903_v44 }
 0x237   : > { %10202 = vmatpush3.bf16.msra.mxu1 %v10904_v45  ;;  %v10940_v45 = vld [vmem:[%s13383_s2 + $0x178] sm:$0xff]  }
 0x238   : > { %9645 = vmatpush3.bf16.msra.mxu0 %v10905_v46  ;;  %10203 = vmatprep.subr.bf16.mxu1 %v11088_v1 }
 0x239   : > { %9646 = vmatprep.subr.bf16.mxu0 %v10906_v47  ;;  %v10941_v47 = vld [vmem:[%s13383_s2 + $0xf8] sm:$0xff]  }
 0x23a   : > { %v9435_v55 = vpop.f32.mrb[40].mxu0 }
 0x23b   : > { %v9436_v56 = vpop.f32.mrb[41].mxu0  ;;  %10204 = vmatpush3.bf16.msra.mxu1 %v10907_v48 }
 0x23c   : > { %v9437_v59 = vadd.f32 %v9436_v56, %v9435_v55  ;;  %v9438_v60 = vpop.f32.mrb[42].mxu0  ;;  %9647 = vmatpush3.bf16.msra.mxu0 %v10908_v50  ;;  %10205 = vmatprep.subr.bf16.mxu1 %v11088_v1  ;;  %v10944_v50 = vld [vmem:[%s11204_s15 + $0x98] ss:$0 sps:$4 sm:$0xff]   ;;  %v10947_v56 = vld [vmem:[%s13383_s2] sm:$0xff]  }
 0x23d   : > { %v9439_v62 = vpop.f32.mrb[43].mxu0  ;;  %9648 = vmatprep.subr.bf16.mxu0 %v10909_v51  ;;  %v12895_v51 = vld [vmem:[%s11275_s13 + $0x90] sm:$0xff] }
 0x23e   : > { %v12795_v4 = vadd.f32 %v9437_v59, %v12694_v16  ;;  %v10924_v16 = vld [vmem:[%s13383_s2 + $0x110] sm:$0xff]   ;;  %v8815_v59 = vcombine.high %v12895_v51, %v12895_v51  ;;  %v10949_v62 = vld [vmem:[%s13383_s2 + $0x88] sm:$0xff]  }
 0x23f   : > { %10206 = vmatpush3.bf16.msra.mxu1 %v10910_v52  ;;  %v8787_v52 = vcombine.low %v12808_v10, %v12808_v10  ;;  %v10954_v10 = vld [vmem:[%s13383_s2 + $0x58] sm:$0xff]  }
 0x240   : > { %9649 = vmatpush3.bf16.msra.mxu0 %v10911_v58  ;;  %10207 = vmatprep.subr.bf16.mxu1 %v11088_v1  ;;  %v10948_v58 = vld [vmem:[%s13383_s2 + $0x48] sm:$0xff]  }
 0x241   : > { %9650 = vmatprep.subr.bf16.mxu0 %v10912_v61 }
 0x243   : > { %10208 = vmatpush3.bf16.msra.mxu1 %v10913_v63 }
 0x244   : > { %9651 = vmatpush3.bf16.msra.mxu0 %v10914_v5  ;;  %10213 = vmatprep.subr.bf16.mxu1 %v11088_v1 }
 0x245   : > { %9667 = vmatprep.subr.bf16.mxu0 %v10918_v8 }
 0x246   : > { %10210 = vmatmul.mubr.bf16.vlgmr.msra.gmra.mrb[20].mxu1 %v5445_v9  ;;  %v10953_v9 = vld [vmem:[%s13383_s2 + $0x10] sm:$0xff]  }
 0x247   : > { %5626 = vmatmul.mubr.bf16.vlgmr.msra.gmra.mrb[68].mxu0 %v5431_v11  ;;  %10214 = vmatpush3.bf16.msra.mxu1 %v10919_v57 }
 0x248   : > { %9668 = vmatpush3.bf16.msra.mxu0 %v10920_v12  ;;  %10215 = vmatprep.subr.bf16.mxu1 %v11088_v1 }
 0x249   : > { %9669 = vmatprep.subr.bf16.mxu0 %v10921_v21  ;;  %5980 = vmatprep.mubr.bf16.mxu0 %v8788_v14  ;;  %v10955_v21 = vld [vmem:[%s13383_s2 + $0x98] sm:$0xff]  }
 0x24a   : > { %10229 = vmatprep.mubr.msk.bf16.mxu1 %vm11089_vm0, %v11088_v1  ;;  %v10956_v14 = vld [vmem:[%s13383_s2 + $0x18] sm:$0xff]  }
 0x24b   : > { %10216 = vmatpush3.bf16.msra.mxu1 %v10922_v13 }
 0x24c   : > { %9670 = vmatpush3.bf16.msra.mxu0 %v10923_v15  ;;  %10217 = vmatprep.subr.bf16.mxu1 %v11088_v1  ;;  %v10958_v15 = vld [vmem:[%s13383_s2 + $0xa0] sm:$0xff]  }
 0x24d   : > { %9671 = vmatprep.subr.bf16.mxu0 %v10924_v16  ;;  %v10960_v16 = vld [vmem:[%s13383_s2 + $0x68] sm:$0xff]  }
 0x24f   : > { %10218 = vmatpush3.bf16.msra.mxu1 %v10925_v17  ;;  %v10961_v17 = vld [vmem:[%s13383_s2 + $0xa8] sm:$0xff]  }
 0x250   : > { %9672 = vmatpush3.bf16.msra.mxu0 %v10926_v18  ;;  %10219 = vmatprep.subr.bf16.mxu1 %v11088_v1  ;;  %v12963_v18 = vld [vmem:[%s11275_s13 + $0x9c] sm:$0x11] }
 0x251   : > { %9673 = vmatprep.subr.bf16.mxu0 %v10927_v19  ;;  %v10962_v19 = vld [vmem:[%s13383_s2 + $0x28] sm:$0xff]  }
 0x253   : > { %10220 = vmatpush3.bf16.msra.mxu1 %v10928_v20  ;;  %v10963_v20 = vld [vmem:[%s13383_s2 + $0x70] sm:$0xff]  }
 0x254   : > { %9674 = vmatpush3.bf16.msra.mxu0 %v10929_v22  ;;  %10221 = vmatprep.subr.bf16.mxu1 %v11088_v1 }
 0x255   : > { %9675 = vmatprep.subr.bf16.mxu0 %v10930_v23  ;;  %v8894_v23 = vcombine.high %v12895_v51, %v12963_v18 }
 0x257   : > { %10222 = vmatpush3.bf16.msra.mxu1 %v10931_v25 }
 0x258   : > { %9676 = vmatpush3.bf16.msra.mxu0 %v10932_v26  ;;  %10223 = vmatprep.subr.bf16.mxu1 %v11088_v1  ;;  %v10964_v26 = vld [vmem:[%s13383_s2 + $0xb0] sm:$0xff]  }
 0x259   : > { %v3861_v30 = vpop.f32.mrb[12].mxu1  ;;  %9677 = vmatprep.subr.bf16.mxu0 %v10933_v24 }
 0x25a   : > { %v9466_v32 = vpop.f32.mrb[44].mxu0  ;;  %v10091_v33 = vpop.f32.mrb[13].mxu1 }
 0x25b   : > { %v9467_v36 = vpop.f32.mrb[45].mxu0  ;;  %v3864_v37 = vpop.f32.mrb[14].mxu1  ;;  %10224 = vmatpush3.bf16.msra.mxu1 %v10934_v28  ;;  %v10967_v33 = vld [vmem:[%s13383_s2 + $0xb8] sm:$0xff]  }
 0x25c   : > { %v9468_v38 = vadd.f32 %v9467_v36, %v9466_v32  ;;  %v9469_v39 = vpop.f32.mrb[46].mxu0  ;;  %v10092_v40 = vpop.f32.mrb[15].mxu1  ;;  %9678 = vmatpush3.bf16.msra.mxu0 %v10935_v29  ;;  %10225 = vmatprep.subr.bf16.mxu1 %v11088_v1  ;;  %v10965_v29 = vld [vmem:[%s13383_s2 + $0x30] sm:$0xff]   ;;  %v6338_v32 = vshll.u32 %v8894_v23, 16  ;;  %v10971_v36 = vld [vmem:[%s11275_s13 + $0x98] ss:$0 sps:$4 sm:$0xff]  }
 0x25d   : > { %v9470_v41 = vpop.f32.mrb[47].mxu0  ;;  %9679 = vmatprep.subr.bf16.mxu0 %v10936_v31  ;;  %v10966_v31 = vld [vmem:[%s13383_s2 + $0x78] sm:$0xff]   ;;  %v6336_v37 = vshrl.u32 %v8894_v23, 16  ;;  %v8814_v39 = vcombine.low %v12895_v51, %v12895_v51  ;;  %v10973_v40 = vld [vmem:[%s13383_s2 + $0x200] sm:$0xff]  }
 0x25e   : > { %v10343_v44 = vadd.f32 %v12795_v4, %v9468_v38  ;;  %v10951_v4 = vld [vmem:[%s13383_s2 + $0x50] sm:$0xff]   ;;  %v6340_v38 = vrot.slane %v6338_v32, 1  ;;  %v10974_v41 = vld [vmem:[%s13383_s2 + $0x180] sm:$0xff]   ;;  %v11010_v32 = vld [vmem:[%s13383_s2 + $0xd8] sm:$0xff]  }
 0x25f   : > { %10226 = vmatpush3.bf16.msra.mxu1 %v10937_v34  ;;  %v10968_v34 = vld [vmem:[%s13383_s2 + $0x38] sm:$0xff]  }
 0x260   : > { %v10344_v46 = vadd.f32 %v10343_v44, %v3861_v30  ;;  %9680 = vmatpush3.bf16.msra.mxu0 %v10938_v35  ;;  %10227 = vmatprep.subr.bf16.mxu1 %v11088_v1  ;;  %v10972_v35 = vld [vmem:[%s13383_s2 + $0x1c0] sm:$0xff]   ;;  %v6341_v44 = vor.u32 %v6340_v38, %v6336_v37  ;;  %v11015_v37 = vld [vmem:[%s13383_s2 + $0x168] sm:$0xff]  }
 0x261   : > { %9681 = vmatprep.subr.bf16.mxu0 %v10939_v43  ;;  %v10975_v43 = vld [vmem:[%s13383_s2 + $0x1c8] sm:$0xff]  }
 0x262   : > { %8362 = vst [vmem:[%s12035_s30 + $0x18] sm:$0xff] %v10344_v46  ;;  %v3870_v48 = vrot.slane %v10344_v46, 4  ;;  %v3877_v49 = vmul.f32 %v10344_v46, %v10344_v46  ;;  %v11016_v38 = vld [vmem:[%s13383_s2 + $0xe8] sm:$0xff]  }
 0x263   : > { %10228 = vmatpush3.bf16.msra.mxu1 %v10940_v45  ;;  %v10976_v45 = vld [vmem:[%s13383_s2 + $0x208] sm:$0xff]  }
 0x264   : > { %v3871_v55 = vadd.f32 %v10344_v46, %v3870_v48  ;;  %v3878_v42 = vrot.slane %v3877_v49, 4  ;;  %9682 = vmatpush3.bf16.msra.mxu0 %v10941_v47  ;;  %10233 = vmatprep.subr.bf16.mxu1 %v11088_v1  ;;  %v10977_v46 = vld [vmem:[%s13383_s2 + $0x188] sm:$0xff]   ;;  %v10978_v47 = vld [vmem:[%s13383_s2 + $0x1d0] sm:$0xff]  }
 0x265   : > { %9698 = vmatprep.subr.bf16.mxu0 %v10945_v27  ;;  %v10979_v27 = vld [vmem:[%s13383_s2 + $0x210] sm:$0xff]  }
 0x266   : > { %v3872_v60 = vrot.slane %v3871_v55, 2  ;;  %v3879_v61 = vadd.f32 %v3878_v42, %v3877_v49  ;;  %10230 = vmatmul.mubr.bf16.vlgmr.msra.gmra.mrb[24].mxu1 %v10944_v50  ;;  %v10980_v48 = vld [vmem:[%s13383_s2 + $0x190] sm:$0xff]   ;;  %v10981_v49 = vld [vmem:[%s13383_s2 + $0x1d8] sm:$0xff]   ;;  %v10986_v42 = vld [vmem:[%s13383_s2 + $0x1a0] sm:$0xff]  }
 0x267   : > { %5981 = vmatmul.mubr.bf16.vlgmr.msra.gmra.mrb[72].mxu0 %v8787_v52  ;;  %10234 = vmatpush3.bf16.msra.mxu1 %v10946_v53  ;;  %v10982_v50 = vld [vmem:[%s13383_s2 + $0x218] sm:$0xff]   ;;  %v10984_v53 = vld [vmem:[%s13383_s2 + $0x1e0] sm:$0xff]  }
 0x268   : > { %v3873_v63 = vadd.f32 %v3872_v60, %v3871_v55  ;;  %v3880_v0 = vrot.slane %v3879_v61, 2  ;;  %9699 = vmatpush3.bf16.msra.mxu0 %v10947_v56  ;;  %10235 = vmatprep.subr.bf16.mxu1 %v11088_v1  ;;  %v10983_v52 = vld [vmem:[%s13383_s2 + $0x198] sm:$0xff]   ;;  %v10985_v55 = vld [vmem:[%s13383_s2 + $0x220] sm:$0xff]   ;;  %v10987_v56 = vld [vmem:[%s13383_s2 + $0x1e8] sm:$0xff]   ;;  %v8893_v60 = vcombine.low %v12895_v51, %v12963_v18 }
 0x269   : > { %9700 = vmatprep.subr.bf16.mxu0 %v10948_v58  ;;  %6215 = vmatprep.mubr.bf16.mxu0 %v8815_v59  ;;  %v10998_v58 = vld [vmem:[%s11275_s13 + $0x98] ss:$12 sps:$4 sm:$0x1f]   ;;  %v10988_v59 = vld [vmem:[%s13383_s2 + $0x228] sm:$0xff]   ;;  %v10991_v51 = vld [vmem:[%s13383_s2 + $0x230] sm:$0xff]  }
 0x26a   : > { %v3874_v5 = vrot.slane %v3873_v63, 1  ;;  %v3881_v7 = vadd.f32 %v3880_v0, %v3879_v61  ;;  %10249 = vmatprep.mubr.msk.bf16.mxu1 %vm11089_vm0, %v11088_v1  ;;  %v10989_v61 = vld [vmem:[%s13383_s2 + $0x1a8] sm:$0xff]   ;;  %v6345_v0 = vshll.u32 %v10998_v58, 16 }
 0x26b   : > { %10236 = vmatpush3.bf16.msra.mxu1 %v10949_v62  ;;  %v10990_v62 = vld [vmem:[%s13383_s2 + $0x1f0] sm:$0xff]  }
 0x26c   : > { %v3875_v8 = vadd.f32 %v3874_v5, %v3873_v63  ;;  %v3882_v57 = vrot.slane %v3881_v7, 1  ;;  %9701 = vmatpush3.bf16.msra.mxu0 %v10950_v2  ;;  %10237 = vmatprep.subr.bf16.mxu1 %v11088_v1 }
 0x26d   : > { %9702 = vmatprep.subr.bf16.mxu0 %v10951_v4  ;;  %v6331_v4 = vshll.u32 %v8893_v60, 16 }
 0x26e   : > { %v12934_v11 = vadd.f32 %v3875_v8, %v12654_v3  ;;  %v3883_v12 = vadd.f32 %v3882_v57, %v3881_v7  ;;  %v10957_v3 = vld [vmem:[%s13383_s2 + $0x60] sm:$0xff]   ;;  %v10993_v57 = vld [vmem:[%s13383_s2 + $0x1f8] sm:$0xff]  }
 0x26f   : > { %10238 = vmatpush3.bf16.msra.mxu1 %v10952_v54  ;;  %v10992_v54 = vld [vmem:[%s13383_s2 + $0x1b0] sm:$0xff]  }
 0x270   : > { %v12940_v13 = vadd.f32 %v3883_v12, %v12660_v6  ;;  %9703 = vmatpush3.bf16.msra.mxu0 %v10953_v9  ;;  %10239 = vmatprep.subr.bf16.mxu1 %v11088_v1  ;;  %v10959_v6 = vld [vmem:[%s13383_s2 + $0x20] sm:$0xff]   ;;  %v6347_v12 = vrot.slane %v6345_v0, 1 }
 0x271   : > { %9704 = vmatprep.subr.bf16.mxu0 %v10954_v10  ;;  %v6343_v10 = vshrl.u32 %v10998_v58, 16  ;;  %v11026_v58 = vld [vmem:[%s13383_s2 + $0x40] sm:$0xff]  }
 0x272   : > { %v11027_v0 = vld [vmem:[%s13383_s2 + $0x80] sm:$0xff]  }
 0x273   : > { %10240 = vmatpush3.bf16.msra.mxu1 %v10955_v21  ;;  %v10994_v21 = vld [vmem:[%s13383_s2 + $0x238] sm:$0xff]  }
 0x274   : > { %9705 = vmatpush3.bf16.msra.mxu0 %v10956_v14  ;;  %10241 = vmatprep.subr.bf16.mxu1 %v11088_v1  ;;  %v6329_v14 = vshrl.u32 %v8893_v60, 16 }
 0x275   : > { %9706 = vmatprep.subr.bf16.mxu0 %v10957_v3  ;;  %v6333_v3 = vrot.slane %v6331_v4, 1  ;;  %v11028_v4 = vld [vmem:[%s13383_s2] sm:$0xff]  }
 0x277   : > { %10242 = vmatpush3.bf16.msra.mxu1 %v10958_v15  ;;  %v10995_v15 = vld [vmem:[%s13383_s2 + $0x1b8] sm:$0xff]   ;;  %v6334_v18 = vor.u32 %v6333_v3, %v6329_v14 }
 0x278   : > { %9707 = vmatpush3.bf16.msra.mxu0 %v10959_v6  ;;  %10243 = vmatprep.subr.bf16.mxu1 %v11088_v1  ;;  %v10999_v6 = vld [vmem:[%s13383_s2 + $0x100] sm:$0xff]  }
 0x279   : > { %9708 = vmatprep.subr.bf16.mxu0 %v10960_v16  ;;  %v6348_v16 = vor.u32 %v6347_v12, %v6343_v10  ;;  %v11031_v12 = vld [vmem:[%s13383_s2 + $0x8] sm:$0xff]  }
 0x27a   : > { %v9497_v22 = vpop.f32.mrb[48].mxu0 }
 0x27b   : > { %v9498_v25 = vpop.f32.mrb[49].mxu0  ;;  %10244 = vmatpush3.bf16.msra.mxu1 %v10961_v17  ;;  %v13088_v17 = vld [vmem:[%s11204_s15 + $0xa8] sm:$0xff] }
 0x27c   : > { %v12977_v24 = vadd.f32 %v9498_v25, %v9497_v22  ;;  %v9500_v28 = vpop.f32.mrb[50].mxu0  ;;  %9709 = vmatpush3.bf16.msra.mxu0 %v10962_v19  ;;  %10245 = vmatprep.subr.bf16.mxu1 %v11088_v1  ;;  %v11000_v19 = vld [vmem:[%s13383_s2 + $0x140] sm:$0xff]   ;;  %v11002_v22 = vld [vmem:[%s13383_s2 + $0x108] sm:$0xff]   ;;  %v8974_v23 = vcombine.high %v13088_v17, %v13088_v17 }
 0x27d   : > { %v9501_v30 = vpop.f32.mrb[51].mxu0  ;;  %9710 = vmatprep.subr.bf16.mxu0 %v10963_v20  ;;  %v11001_v20 = vld [vmem:[%s13383_s2 + $0xc0] sm:$0xff]   ;;  %v11003_v25 = vld [vmem:[%s13383_s2 + $0x148] sm:$0xff]   ;;  %v11006_v28 = vld [vmem:[%s13383_s2 + $0x150] sm:$0xff]  }
 0x27e   : > { %v11008_v30 = vld [vmem:[%s13383_s2 + $0x118] sm:$0xff]  }
 0x27f   : > { %10246 = vmatpush3.bf16.msra.mxu1 %v10964_v26  ;;  %v11004_v26 = vld [vmem:[%s13383_s2 + $0xc8] sm:$0xff]  }
 0x280   : > { %9711 = vmatpush3.bf16.msra.mxu0 %v10965_v29  ;;  %10247 = vmatprep.subr.bf16.mxu1 %v11088_v1  ;;  %v11007_v29 = vld [vmem:[%s13383_s2 + $0xd0] sm:$0xff]  }
 0x281   : > { %9712 = vmatprep.subr.bf16.mxu0 %v10966_v31  ;;  %v11009_v31 = vld [vmem:[%s13383_s2 + $0x158] sm:$0xff]  }
 0x283   : > { %10248 = vmatpush3.bf16.msra.mxu1 %v10967_v33  ;;  %v11011_v33 = vld [vmem:[%s13383_s2 + $0x120] sm:$0xff]  }
 0x284   : > { %9713 = vmatpush3.bf16.msra.mxu0 %v10968_v34  ;;  %10253 = vmatprep.subr.bf16.mxu1 %v11088_v1  ;;  %v11012_v34 = vld [vmem:[%s13383_s2 + $0x160] sm:$0xff]  }
 0x285   : > { %9729 = vmatprep.subr.bf16.mxu0 %v10972_v35  ;;  %v11013_v35 = vld [vmem:[%s13383_s2 + $0xe0] sm:$0xff]  }
 0x286   : > { %10250 = vmatmul.mubr.bf16.vlgmr.msra.gmra.mrb[24].mxu1 %v10971_v36  ;;  %v11014_v36 = vld [vmem:[%s13383_s2 + $0x128] sm:$0xff]  }
 0x287   : > { %6216 = vmatmul.mubr.bf16.vlgmr.msra.gmra.mrb[76].mxu0 %v8814_v39  ;;  %10254 = vmatpush3.bf16.msra.mxu1 %v10973_v40  ;;  %v11017_v40 = vld [vmem:[%s13383_s2 + $0x130] sm:$0xff]  }
 0x288   : > { %9730 = vmatpush3.bf16.msra.mxu0 %v10974_v41  ;;  %10255 = vmatprep.subr.bf16.mxu1 %v11088_v1 }
 0x289   : > { %9731 = vmatprep.subr.bf16.mxu0 %v10975_v43  ;;  %10269 = vmatprep.mubr.msk.bf16.mxu1 %vm11089_vm0, %v11088_v1 }
 0x28a   : > { %6528 = vmatprep.mubr.bf16.mxu0 %v6341_v44 }
 0x28b   : > { %10256 = vmatpush3.bf16.msra.mxu1 %v10976_v45 }
 0x28c   : > { %9732 = vmatpush3.bf16.msra.mxu0 %v10977_v46  ;;  %10257 = vmatprep.subr.bf16.mxu1 %v11088_v1  ;;  %v11018_v46 = vld [vmem:[%s13383_s2 + $0x170] sm:$0xff]  }
 0x28d   : > { %9733 = vmatprep.subr.bf16.mxu0 %v10978_v47 }
 0x28f   : > { %10258 = vmatpush3.bf16.msra.mxu1 %v10979_v27 }
 0x290   : > { %9734 = vmatpush3.bf16.msra.mxu0 %v10980_v48  ;;  %10259 = vmatprep.subr.bf16.mxu1 %v11088_v1 }
 0x291   : > { %9735 = vmatprep.subr.bf16.mxu0 %v10981_v49  ;;  %v11019_v49 = vld [vmem:[%s13383_s2 + $0xf0] sm:$0xff]  }
 0x293   : > { %10260 = vmatpush3.bf16.msra.mxu1 %v10982_v50 }
 0x294   : > { %9736 = vmatpush3.bf16.msra.mxu0 %v10983_v52  ;;  %10261 = vmatprep.subr.bf16.mxu1 %v11088_v1  ;;  %v11020_v52 = vld [vmem:[%s13383_s2 + $0x138] sm:$0xff]  }
 0x295   : > { %9737 = vmatprep.subr.bf16.mxu0 %v10984_v53 }
 0x297   : > { %10262 = vmatpush3.bf16.msra.mxu1 %v10985_v55  ;;  %v11021_v55 = vld [vmem:[%s13383_s2 + $0x178] sm:$0xff]  }
 0x298   : > { %9738 = vmatpush3.bf16.msra.mxu0 %v10986_v42  ;;  %10263 = vmatprep.subr.bf16.mxu1 %v11088_v1 }
 0x299   : > { %9739 = vmatprep.subr.bf16.mxu0 %v10987_v56  ;;  %v11022_v56 = vld [vmem:[%s13383_s2 + $0xf8] sm:$0xff]  }
 0x29a   : > { %v9528_v63 = vpop.f32.mrb[52].mxu0 }
 0x29b   : > { %v9529_v2 = vpop.f32.mrb[53].mxu0  ;;  %10264 = vmatpush3.bf16.msra.mxu1 %v10988_v59 }
 0x29c   : > { %v9530_v5 = vadd.f32 %v9529_v2, %v9528_v63  ;;  %v9531_v7 = vpop.f32.mrb[54].mxu0  ;;  %9740 = vmatpush3.bf16.msra.mxu0 %v10989_v61  ;;  %10265 = vmatprep.subr.bf16.mxu1 %v11088_v1  ;;  %v11025_v61 = vld [vmem:[%s11204_s15 + $0xb0] ss:$0 sps:$4 sm:$0xff]   ;;  %v8973_v63 = vcombine.low %v13088_v17, %v13088_v17 }
 0x29d   : > { %v9532_v8 = vpop.f32.mrb[55].mxu0  ;;  %9741 = vmatprep.subr.bf16.mxu0 %v10990_v62  ;;  %v13178_v62 = vld [vmem:[%s11275_s13 + $0xa8] sm:$0xff]  ;;  %v11034_v17 = vld [vmem:[%s13383_s2 + $0x10] sm:$0xff]  }
 0x29e   : > { %v13075_v9 = vadd.f32 %v9530_v5, %v12977_v24  ;;  %v11005_v24 = vld [vmem:[%s13383_s2 + $0x110] sm:$0xff]   ;;  %v11029_v5 = vld [vmem:[%s13383_s2 + $0x48] sm:$0xff]   ;;  %v9001_v7 = vcombine.high %v13178_v62, %v13178_v62 }
 0x29f   : > { %10266 = vmatpush3.bf16.msra.mxu1 %v10991_v51 }
 0x2a0   : > { %9742 = vmatpush3.bf16.msra.mxu0 %v10992_v54  ;;  %10267 = vmatprep.subr.bf16.mxu1 %v11088_v1 }
 0x2a1   : > { %9743 = vmatprep.subr.bf16.mxu0 %v10993_v57  ;;  %v11030_v57 = vld [vmem:[%s13383_s2 + $0x88] sm:$0xff]  }
 0x2a3   : > { %10268 = vmatpush3.bf16.msra.mxu1 %v10994_v21  ;;  %v11032_v21 = vld [vmem:[%s13383_s2 + $0x50] sm:$0xff]  }
 0x2a4   : > { %9744 = vmatpush3.bf16.msra.mxu0 %v10995_v15  ;;  %10273 = vmatprep.subr.bf16.mxu1 %v11088_v1  ;;  %v11033_v15 = vld [vmem:[%s13383_s2 + $0x90] sm:$0xff]  }
 0x2a5   : > { %9760 = vmatprep.subr.bf16.mxu0 %v10999_v6 }
 0x2a6   : > { %10270 = vmatmul.mubr.bf16.vlgmr.msra.gmra.mrb[24].mxu1 %v6348_v16 }
 0x2a7   : > { %6529 = vmatmul.mubr.bf16.vlgmr.msra.gmra.mrb[80].mxu0 %v6334_v18  ;;  %10274 = vmatpush3.bf16.msra.mxu1 %v11000_v19  ;;  %v11035_v18 = vld [vmem:[%s13383_s2 + $0x58] sm:$0xff]  }
 0x2a8   : > { %9761 = vmatpush3.bf16.msra.mxu0 %v11001_v20  ;;  %10275 = vmatprep.subr.bf16.mxu1 %v11088_v1 }
 0x2a9   : > { %9762 = vmatprep.subr.bf16.mxu0 %v11002_v22  ;;  %6883 = vmatprep.mubr.bf16.mxu0 %v8974_v23  ;;  %v11036_v22 = vld [vmem:[%s13383_s2 + $0x98] sm:$0xff]  }
 0x2aa   : > { %10289 = vmatprep.mubr.msk.bf16.mxu1 %vm11089_vm0, %v11088_v1 }
 0x2ab   : > { %10276 = vmatpush3.bf16.msra.mxu1 %v11003_v25  ;;  %v11037_v25 = vld [vmem:[%s13383_s2 + $0x18] sm:$0xff]  }
 0x2ac   : > { %9763 = vmatpush3.bf16.msra.mxu0 %v11004_v26  ;;  %10277 = vmatprep.subr.bf16.mxu1 %v11088_v1  ;;  %v11039_v26 = vld [vmem:[%s13383_s2 + $0xa0] sm:$0xff]  }
 0x2ad   : > { %9764 = vmatprep.subr.bf16.mxu0 %v11005_v24  ;;  %v11041_v24 = vld [vmem:[%s13383_s2 + $0x68] sm:$0xff]  }
 0x2af   : > { %10278 = vmatpush3.bf16.msra.mxu1 %v11006_v28  ;;  %v11042_v28 = vld [vmem:[%s13383_s2 + $0xa8] sm:$0xff]  }
 0x2b0   : > { %9765 = vmatpush3.bf16.msra.mxu0 %v11007_v29  ;;  %10279 = vmatprep.subr.bf16.mxu1 %v11088_v1  ;;  %v13246_v29 = vld [vmem:[%s11275_s13 + $0xb4] sm:$0x11] }
 0x2b1   : > { %9766 = vmatprep.subr.bf16.mxu0 %v11008_v30  ;;  %v11043_v30 = vld [vmem:[%s13383_s2 + $0x28] sm:$0xff]  }
 0x2b3   : > { %10280 = vmatpush3.bf16.msra.mxu1 %v11009_v31  ;;  %v11044_v31 = vld [vmem:[%s13383_s2 + $0x70] sm:$0xff]  }
 0x2b4   : > { %9767 = vmatpush3.bf16.msra.mxu0 %v11010_v32  ;;  %10281 = vmatprep.subr.bf16.mxu1 %v11088_v1 }
 0x2b5   : > { %9768 = vmatprep.subr.bf16.mxu0 %v11011_v33  ;;  %v9080_v33 = vcombine.high %v13178_v62, %v13246_v29 }
 0x2b7   : > { %10282 = vmatpush3.bf16.msra.mxu1 %v11012_v34 }
 0x2b8   : > { %9769 = vmatpush3.bf16.msra.mxu0 %v11013_v35  ;;  %10283 = vmatprep.subr.bf16.mxu1 %v11088_v1  ;;  %v11045_v35 = vld [vmem:[%s13383_s2 + $0xb0] sm:$0xff]  }
 0x2b9   : > { %v4764_v39 = vpop.f32.mrb[16].mxu1  ;;  %9770 = vmatprep.subr.bf16.mxu0 %v11014_v36 }
 0x2ba   : > { %v9559_v41 = vpop.f32.mrb[56].mxu0  ;;  %v10151_v43 = vpop.f32.mrb[17].mxu1 }
 0x2bb   : > { %v9560_v44 = vpop.f32.mrb[57].mxu0  ;;  %v4767_v45 = vpop.f32.mrb[18].mxu1  ;;  %10284 = vmatpush3.bf16.msra.mxu1 %v11015_v37  ;;  %v11048_v43 = vld [vmem:[%s13383_s2 + $0xb8] sm:$0xff]  }
 0x2bc   : > { %v9561_v47 = vadd.f32 %v9560_v44, %v9559_v41  ;;  %v9562_v27 = vpop.f32.mrb[58].mxu0  ;;  %v10152_v48 = vpop.f32.mrb[19].mxu1  ;;  %9771 = vmatpush3.bf16.msra.mxu0 %v11016_v38  ;;  %10285 = vmatprep.subr.bf16.mxu1 %v11088_v1  ;;  %v11046_v38 = vld [vmem:[%s13383_s2 + $0x30] sm:$0xff]   ;;  %v7241_v41 = vshll.u32 %v9080_v33, 16  ;;  %v11049_v44 = vld [vmem:[%s13383_s2 + $0x38] sm:$0xff]   ;;  %v11053_v45 = vld [vmem:[%s13383_s2 + $0x1c0] sm:$0xff]  }
 0x2bd   : > { %v9563_v50 = vpop.f32.mrb[59].mxu0  ;;  %9772 = vmatprep.subr.bf16.mxu0 %v11017_v40  ;;  %v11047_v40 = vld [vmem:[%s13383_s2 + $0x78] sm:$0xff]   ;;  %v9000_v48 = vcombine.low %v13178_v62, %v13178_v62 }
 0x2be   : > { %v10346_v53 = vadd.f32 %v13075_v9, %v9561_v47  ;;  %v7239_v47 = vshrl.u32 %v9080_v33, 16  ;;  %v7243_v27 = vrot.slane %v7241_v41, 1  ;;  %v11055_v50 = vld [vmem:[%s13383_s2 + $0x180] sm:$0xff]  }
 0x2bf   : > { %10286 = vmatpush3.bf16.msra.mxu1 %v11018_v46  ;;  %v11052_v46 = vld [vmem:[%s11275_s13 + $0xb0] ss:$0 sps:$4 sm:$0xff]  }
 0x2c0   : > { %v10347_v42 = vadd.f32 %v10346_v53, %v4764_v39  ;;  %9773 = vmatpush3.bf16.msra.mxu0 %v11019_v49  ;;  %10287 = vmatprep.subr.bf16.mxu1 %v11088_v1  ;;  %v11054_v49 = vld [vmem:[%s13383_s2 + $0x200] sm:$0xff]   ;;  %v7244_v53 = vor.u32 %v7243_v27, %v7239_v47 }
 0x2c1   : > { %9774 = vmatprep.subr.bf16.mxu0 %v11020_v52  ;;  %v11056_v52 = vld [vmem:[%s13383_s2 + $0x1c8] sm:$0xff]  }
 0x2c2   : > { %8548 = vst [vmem:[%s12035_s30 + $0x20] sm:$0xff] %v10347_v42  ;;  %v4773_v59 = vrot.slane %v10347_v42, 4  ;;  %v4780_v60 = vmul.f32 %v10347_v42, %v10347_v42 }
 0x2c3   : > { %10288 = vmatpush3.bf16.msra.mxu1 %v11021_v55  ;;  %v11057_v55 = vld [vmem:[%s13383_s2 + $0x208] sm:$0xff]  }
 0x2c4   : > { %v4774_v2 = vadd.f32 %v10347_v42, %v4773_v59  ;;  %v4781_v51 = vrot.slane %v4780_v60, 4  ;;  %9775 = vmatpush3.bf16.msra.mxu0 %v11022_v56  ;;  %10293 = vmatprep.subr.bf16.mxu1 %v11088_v1  ;;  %v11058_v42 = vld [vmem:[%s13383_s2 + $0x188] sm:$0xff]   ;;  %v11059_v56 = vld [vmem:[%s13383_s2 + $0x1d0] sm:$0xff]  }
 0x2c5   : > { %9791 = vmatprep.subr.bf16.mxu0 %v11026_v58  ;;  %v11060_v58 = vld [vmem:[%s13383_s2 + $0x210] sm:$0xff]  }
 0x2c6   : > { %v4775_v54 = vrot.slane %v4774_v2, 2  ;;  %v4782_v8 = vadd.f32 %v4781_v51, %v4780_v60  ;;  %10290 = vmatmul.mubr.bf16.vlgmr.msra.gmra.mrb[28].mxu1 %v11025_v61  ;;  %v11061_v59 = vld [vmem:[%s13383_s2 + $0x190] sm:$0xff]   ;;  %v11062_v60 = vld [vmem:[%s13383_s2 + $0x1d8] sm:$0xff]   ;;  %v11067_v51 = vld [vmem:[%s13383_s2 + $0x1a0] sm:$0xff]  }
 0x2c7   : > { %6884 = vmatmul.mubr.bf16.vlgmr.msra.gmra.mrb[84].mxu0 %v8973_v63  ;;  %10294 = vmatpush3.bf16.msra.mxu1 %v11027_v0  ;;  %v11063_v61 = vld [vmem:[%s13383_s2 + $0x218] sm:$0xff]   ;;  %v11065_v0 = vld [vmem:[%s13383_s2 + $0x1e0] sm:$0xff]  }
 0x2c8   : > { %v4776_v9 = vadd.f32 %v4775_v54, %v4774_v2  ;;  %v4783_v10 = vrot.slane %v4782_v8, 2  ;;  %9792 = vmatpush3.bf16.msra.mxu0 %v11028_v4  ;;  %10295 = vmatprep.subr.bf16.mxu1 %v11088_v1  ;;  %v11064_v63 = vld [vmem:[%s13383_s2 + $0x198] sm:$0xff]   ;;  %v11066_v2 = vld [vmem:[%s13383_s2 + $0x220] sm:$0xff]   ;;  %v11068_v4 = vld [vmem:[%s13383_s2 + $0x1e8] sm:$0xff]   ;;  %v9079_v54 = vcombine.low %v13178_v62, %v13246_v29 }
 0x2c9   : > { %9793 = vmatprep.subr.bf16.mxu0 %v11029_v5  ;;  %7118 = vmatprep.mubr.bf16.mxu0 %v9001_v7  ;;  %v11079_v5 = vld [vmem:[%s11275_s13 + $0xb0] ss:$12 sps:$4 sm:$0x1f]   ;;  %v11069_v7 = vld [vmem:[%s13383_s2 + $0x228] sm:$0xff]  }
 0x2ca   : > { %v4777_v14 = vrot.slane %v4776_v9, 1  ;;  %v4784_v3 = vadd.f32 %v4783_v10, %v4782_v8  ;;  %10309 = vmatprep.mubr.msk.bf16.mxu1 %vm11089_vm0, %v11088_v1  ;;  %v11070_v8 = vld [vmem:[%s13383_s2 + $0x1a8] sm:$0xff]   ;;  %v7248_v10 = vshll.u32 %v11079_v5, 16  ;;  %v11072_v62 = vld [vmem:[%s13383_s2 + $0x230] sm:$0xff]  }
 0x2cb   : > { %10296 = vmatpush3.bf16.msra.mxu1 %v11030_v57  ;;  %v11071_v57 = vld [vmem:[%s13383_s2 + $0x1f0] sm:$0xff]  }
 0x2cc   : > { %v4778_v6 = vadd.f32 %v4777_v14, %v4776_v9  ;;  %v4785_v16 = vrot.slane %v4784_v3, 1  ;;  %9794 = vmatpush3.bf16.msra.mxu0 %v11031_v12  ;;  %10297 = vmatprep.subr.bf16.mxu1 %v11088_v1 }
 0x2cd   : > { %9795 = vmatprep.subr.bf16.mxu0 %v11032_v21  ;;  %v7234_v21 = vshll.u32 %v9079_v54, 16 }
 0x2ce   : > { %v13217_v19 = vadd.f32 %v4778_v6, %v12934_v11  ;;  %v4786_v20 = vadd.f32 %v4785_v16, %v4784_v3  ;;  %v11038_v11 = vld [vmem:[%s13383_s2 + $0x60] sm:$0xff]   ;;  %v11074_v16 = vld [vmem:[%s13383_s2 + $0x1f8] sm:$0xff]  }
 0x2cf   : > { %10298 = vmatpush3.bf16.msra.mxu1 %v11033_v15  ;;  %v11073_v15 = vld [vmem:[%s13383_s2 + $0x1b0] sm:$0xff]  }
 0x2d0   : > { %v13223_v23 = vadd.f32 %v4786_v20, %v12940_v13  ;;  %9796 = vmatpush3.bf16.msra.mxu0 %v11034_v17  ;;  %10299 = vmatprep.subr.bf16.mxu1 %v11088_v1  ;;  %v11040_v13 = vld [vmem:[%s13383_s2 + $0x20] sm:$0xff]   ;;  %v7250_v20 = vrot.slane %v7248_v10, 1 }
 0x2d1   : > { %9797 = vmatprep.subr.bf16.mxu0 %v11035_v18  ;;  %v7246_v18 = vshrl.u32 %v11079_v5, 16 }
 0x2d3   : > { %10300 = vmatpush3.bf16.msra.mxu1 %v11036_v22  ;;  %v11075_v22 = vld [vmem:[%s13383_s2 + $0x238] sm:$0xff]  }
 0x2d4   : > { %9798 = vmatpush3.bf16.msra.mxu0 %v11037_v25  ;;  %10301 = vmatprep.subr.bf16.mxu1 %v11088_v1  ;;  %v7232_v25 = vshrl.u32 %v9079_v54, 16 }
 0x2d5   : > { %9799 = vmatprep.subr.bf16.mxu0 %v11038_v11  ;;  %v7236_v11 = vrot.slane %v7234_v21, 1 }
 0x2d7   : > { %10302 = vmatpush3.bf16.msra.mxu1 %v11039_v26  ;;  %v11076_v26 = vld [vmem:[%s13383_s2 + $0x1b8] sm:$0xff]  }
 0x2d8   : > { %9800 = vmatpush3.bf16.msra.mxu0 %v11040_v13  ;;  %10303 = vmatprep.subr.bf16.mxu1 %v11088_v1  ;;  %v7251_v13 = vor.u32 %v7250_v20, %v7246_v18 }
 0x2d9   : > { %9801 = vmatprep.subr.bf16.mxu0 %v11041_v24  ;;  %v7237_v24 = vor.u32 %v7236_v11, %v7232_v25 }
 0x2da   : > { %v9590_v32 = vpop.f32.mrb[60].mxu0 }
 0x2db   : > { %v9591_v34 = vpop.f32.mrb[61].mxu0  ;;  %10304 = vmatpush3.bf16.msra.mxu1 %v11042_v28 }
 0x2dc   : > { %v13260_v36 = vadd.f32 %v9591_v34, %v9590_v32  ;;  %v9593_v37 = vpop.f32.mrb[62].mxu0  ;;  %9802 = vmatpush3.bf16.msra.mxu0 %v11043_v30  ;;  %10305 = vmatprep.subr.bf16.mxu1 %v11088_v1 }
 0x2dd   : > { %v9594_v39 = vpop.f32.mrb[63].mxu0  ;;  %9803 = vmatprep.subr.bf16.mxu0 %v11044_v31 }
 0x2df   : > { %10306 = vmatpush3.bf16.msra.mxu1 %v11045_v35 }
 0x2e0   : > { %9804 = vmatpush3.bf16.msra.mxu0 %v11046_v38  ;;  %10307 = vmatprep.subr.bf16.mxu1 %v11088_v1 }
 0x2e1   : > { %9805 = vmatprep.subr.bf16.mxu0 %v11047_v40 }
 0x2e3   : > { %10308 = vmatpush3.bf16.msra.mxu1 %v11048_v43 }
 0x2e4   : > { %9806 = vmatpush3.bf16.msra.mxu0 %v11049_v44  ;;  %10313 = vmatprep.subr.bf16.mxu1 %v11088_v1 }
 0x2e5   : > { %9822 = vmatprep.subr.bf16.mxu0 %v11053_v45 }
 0x2e6   : > { %10310 = vmatmul.mubr.bf16.vlgmr.msra.gmra.mrb[28].mxu1 %v11052_v46 }
 0x2e7   : > { %7119 = vmatmul.mubr.bf16.vlgmr.msra.gmra.mrb[88].mxu0 %v9000_v48  ;;  %10314 = vmatpush3.bf16.msra.mxu1 %v11054_v49 }
 0x2e8   : > { %9823 = vmatpush3.bf16.msra.mxu0 %v11055_v50  ;;  %10315 = vmatprep.subr.bf16.mxu1 %v11088_v1 }
 0x2e9   : > { %9824 = vmatprep.subr.bf16.mxu0 %v11056_v52  ;;  %10329 = vmatprep.mubr.msk.bf16.mxu1 %vm11089_vm0, %v11088_v1 }
 0x2ea   : > { %7431 = vmatprep.mubr.bf16.mxu0 %v7244_v53 }
 0x2eb   : > { %10316 = vmatpush3.bf16.msra.mxu1 %v11057_v55 }
 0x2ec   : > { %9825 = vmatpush3.bf16.msra.mxu0 %v11058_v42  ;;  %10317 = vmatprep.subr.bf16.mxu1 %v11088_v1 }
 0x2ed   : > { %9826 = vmatprep.subr.bf16.mxu0 %v11059_v56 }
 0x2ef   : > { %10318 = vmatpush3.bf16.msra.mxu1 %v11060_v58 }
 0x2f0   : > { %9827 = vmatpush3.bf16.msra.mxu0 %v11061_v59  ;;  %10319 = vmatprep.subr.bf16.mxu1 %v11088_v1 }
 0x2f1   : > { %9828 = vmatprep.subr.bf16.mxu0 %v11062_v60 }
 0x2f3   : > { %10320 = vmatpush3.bf16.msra.mxu1 %v11063_v61 }
 0x2f4   : > { %9829 = vmatpush3.bf16.msra.mxu0 %v11064_v63  ;;  %10321 = vmatprep.subr.bf16.mxu1 %v11088_v1 }
 0x2f5   : > { %9830 = vmatprep.subr.bf16.mxu0 %v11065_v0 }
 0x2f7   : > { %10322 = vmatpush3.bf16.msra.mxu1 %v11066_v2 }
 0x2f8   : > { %9831 = vmatpush3.bf16.msra.mxu0 %v11067_v51  ;;  %10323 = vmatprep.subr.bf16.mxu1 %v11088_v1 }
 0x2f9   : > { %9832 = vmatprep.subr.bf16.mxu0 %v11068_v4 }
 0x2fa   : > { %v9621_v9 = vpop.f32.mrb[64].mxu0 }
 0x2fb   : > { %v9622_v12 = vpop.f32.mrb[65].mxu0  ;;  %10324 = vmatpush3.bf16.msra.mxu1 %v11069_v7 }
 0x2fc   : > { %v9623_v14 = vadd.f32 %v9622_v12, %v9621_v9  ;;  %v9624_v3 = vpop.f32.mrb[66].mxu0  ;;  %9833 = vmatpush3.bf16.msra.mxu0 %v11070_v8  ;;  %10325 = vmatprep.subr.bf16.mxu1 %v11088_v1 }
 0x2fd   : > { %v9625_v6 = vpop.f32.mrb[67].mxu0  ;;  %9834 = vmatprep.subr.bf16.mxu0 %v11071_v57 }
 0x2fe   : > { %v10348_v17 = vadd.f32 %v9623_v14, %v13260_v36 }
 0x2ff   : > { %10326 = vmatpush3.bf16.msra.mxu1 %v11072_v62 }
 0x300   : > { %9835 = vmatpush3.bf16.msra.mxu0 %v11073_v15  ;;  %10327 = vmatprep.subr.bf16.mxu1 %v11088_v1 }
 0x301   : > { %9836 = vmatprep.subr.bf16.mxu0 %v11074_v16 }
 0x303   : > { %10328 = vmatpush3.bf16.msra.mxu1 %v11075_v22 }
 0x304   : > { %9837 = vmatpush3.bf16.msra.mxu0 %v11076_v26 }
 0x306   : > { %10330 = vmatmul.mubr.bf16.vlgmr.msra.gmra.mrb[28].mxu1 %v7251_v13 }
 0x307   : > { %7432 = vmatmul.mubr.bf16.vlgmr.msra.gmra.mrb[92].mxu0 %v7237_v24 }
 0x319   : > { %v5667_v28 = vpop.f32.mrb[20].mxu1 }
 0x31a   : > { %v9652_v29 = vpop.f32.mrb[68].mxu0  ;;  %v10211_v30 = vpop.f32.mrb[21].mxu1 }
 0x31b   : > { %v9653_v31 = vpop.f32.mrb[69].mxu0  ;;  %v5670_v32 = vpop.f32.mrb[22].mxu1 }
 0x31c   : > { %v9654_v33 = vadd.f32 %v9653_v31, %v9652_v29  ;;  %v9655_v34 = vpop.f32.mrb[70].mxu0  ;;  %v10212_v1 = vpop.f32.mrb[23].mxu1 }
 0x31d   : > { %v9656_v35 = vpop.f32.mrb[71].mxu0 }
 0x31e   : > { %v10349_v36 = vadd.f32 %v10348_v17, %v9654_v33 }
 0x320   : > { %v10350_v37 = vadd.f32 %v10349_v36, %v5667_v28 }
 0x322   : > { %8734 = vst [vmem:[%s12035_s30 + $0x28] sm:$0xff] %v10350_v37  ;;  %v5676_v38 = vrot.slane %v10350_v37, 4  ;;  %v5683_v39 = vmul.f32 %v10350_v37, %v10350_v37 }
 0x324   : > { %v5677_v40 = vadd.f32 %v10350_v37, %v5676_v38  ;;  %v5684_v41 = vrot.slane %v5683_v39, 4 }
 0x326   : > { %v5678_v43 = vrot.slane %v5677_v40, 2  ;;  %v5685_v44 = vadd.f32 %v5684_v41, %v5683_v39 }
 0x328   : > { %v5679_v45 = vadd.f32 %v5678_v43, %v5677_v40  ;;  %v5686_v46 = vrot.slane %v5685_v44, 2 }
 0x32a   : > { %v5680_v47 = vrot.slane %v5679_v45, 1  ;;  %v5687_v27 = vadd.f32 %v5686_v46, %v5685_v44 }
 0x32c   : > { %v5681_v48 = vadd.f32 %v5680_v47, %v5679_v45  ;;  %v5688_v49 = vrot.slane %v5687_v27, 1 }
 0x32e   : > { %v5682_v50 = vadd.f32 %v5681_v48, %v13217_v19  ;;  %v5689_v52 = vadd.f32 %v5688_v49, %v5687_v27 }
 0x330   : > { %v5690_v53 = vadd.f32 %v5689_v52, %v13223_v23 }
 0x33a   : > { %v9683_v55 = vpop.f32.mrb[72].mxu0 }
 0x33b   : > { %v9684_v42 = vpop.f32.mrb[73].mxu0 }
 0x33c   : > { %v9685_v56 = vadd.f32 %v9684_v42, %v9683_v55  ;;  %v9686_v58 = vpop.f32.mrb[74].mxu0 }
 0x33d   : > { %v9687_v59 = vpop.f32.mrb[75].mxu0 }
 0x35a   : > { %v9714_v60 = vpop.f32.mrb[76].mxu0 }
 0x35b   : > { %v9715_v61 = vpop.f32.mrb[77].mxu0 }
 0x35c   : > { %v9716_v63 = vadd.f32 %v9715_v61, %v9714_v60  ;;  %v9717_v0 = vpop.f32.mrb[78].mxu0 }
 0x35d   : > { %v9718_v2 = vpop.f32.mrb[79].mxu0 }
 0x35e   : > { %v10351_v51 = vadd.f32 %v9716_v63, %v9685_v56 }
 0x379   : > { %v6570_v4 = vpop.f32.mrb[24].mxu1 }
 0x37a   : > { %v9745_v5 = vpop.f32.mrb[80].mxu0  ;;  %v10271_v7 = vpop.f32.mrb[25].mxu1 }
 0x37b   : > { %v9746_v54 = vpop.f32.mrb[81].mxu0  ;;  %v6573_v19 = vpop.f32.mrb[26].mxu1 }
 0x37c   : > { %v9747_v8 = vadd.f32 %v9746_v54, %v9745_v5  ;;  %v9748_v57 = vpop.f32.mrb[82].mxu0  ;;  %v10272_v23 = vpop.f32.mrb[27].mxu1 }
 0x37d   : > { %v9749_v9 = vpop.f32.mrb[83].mxu0 }
 0x37e   : > { %v10352_v10 = vadd.f32 %v10351_v51, %v9747_v8 }
 0x380   : > { %v10353_v12 = vadd.f32 %v10352_v10, %v6570_v4 }
 0x382   : > { %8920 = vst [vmem:[%s12035_s30 + $0x30] sm:$0xff] %v10353_v12  ;;  %v6579_v62 = vrot.slane %v10353_v12, 4  ;;  %v6586_v21 = vmul.f32 %v10353_v12, %v10353_v12 }
 0x384   : > { %v6580_v14 = vadd.f32 %v10353_v12, %v6579_v62  ;;  %v6587_v3 = vrot.slane %v6586_v21, 4 }
 0x386   : > { %v6581_v15 = vrot.slane %v6580_v14, 2  ;;  %v6588_v6 = vadd.f32 %v6587_v3, %v6586_v21 }
 0x388   : > { %v6582_v16 = vadd.f32 %v6581_v15, %v6580_v14  ;;  %v6589_v17 = vrot.slane %v6588_v6, 2 }
 0x38a   : > { %v6583_v18 = vrot.slane %v6582_v16, 1  ;;  %v6590_v20 = vadd.f32 %v6589_v17, %v6588_v6 }
 0x38c   : > { %v6584_v22 = vadd.f32 %v6583_v18, %v6582_v16  ;;  %v6591_v25 = vrot.slane %v6590_v20, 1 }
 0x38e   : > { %v6585_v11 = vadd.f32 %v6584_v22, %v5682_v50  ;;  %v6592_v26 = vadd.f32 %v6591_v25, %v6590_v20 }
 0x390   : > { %v6593_v13 = vadd.f32 %v6592_v26, %v5690_v53 }
 0x39a   : > { %v9776_v24 = vpop.f32.mrb[84].mxu0 }
 0x39b   : > { %v9777_v28 = vpop.f32.mrb[85].mxu0 }
 0x39c   : > { %v9778_v29 = vadd.f32 %v9777_v28, %v9776_v24  ;;  %v9779_v30 = vpop.f32.mrb[86].mxu0 }
 0x39d   : > { %v9780_v31 = vpop.f32.mrb[87].mxu0 }
 0x3ba   : > { %v9807_v32 = vpop.f32.mrb[88].mxu0 }
 0x3bb   : > { %v9808_v33 = vpop.f32.mrb[89].mxu0 }
 0x3bc   : > { %v9809_v34 = vadd.f32 %v9808_v33, %v9807_v32  ;;  %v9810_v1 = vpop.f32.mrb[90].mxu0 }
 0x3bd   : > { %v9811_v35 = vpop.f32.mrb[91].mxu0 }
 0x3be   : > { %v10354_v36 = vadd.f32 %v9809_v34, %v9778_v29 }
 0x3d9   : > { %v7473_v37 = vpop.f32.mrb[28].mxu1 }
 0x3da   : > { %v9838_v38 = vpop.f32.mrb[92].mxu0  ;;  %v10331_v39 = vpop.f32.mrb[29].mxu1 }
 0x3db   : > { %v9839_v40 = vpop.f32.mrb[93].mxu0  ;;  %v7476_v41 = vpop.f32.mrb[30].mxu1 }
 0x3dc   : > { %v9840_v43 = vadd.f32 %v9839_v40, %v9838_v38  ;;  %v9841_v44 = vpop.f32.mrb[94].mxu0  ;;  %v10332_v45 = vpop.f32.mrb[31].mxu1 }
 0x3dd   : > { %v9842_v46 = vpop.f32.mrb[95].mxu0 }
 0x3de   : > { %v10355_v47 = vadd.f32 %v10354_v36, %v9840_v43 }
 0x3e0   : > { %v10356_v27 = vadd.f32 %v10355_v47, %v7473_v37 }
 0x3e2   : > { %9106 = vst [vmem:[%s12035_s30 + $0x38] sm:$0xff] %v10356_v27  ;;  %v7482_v48 = vrot.slane %v10356_v27, 4  ;;  %v7489_v49 = vmul.f32 %v10356_v27, %v10356_v27 }
 0x3e4   : > { %v7483_v50 = vadd.f32 %v10356_v27, %v7482_v48  ;;  %v7490_v52 = vrot.slane %v7489_v49, 4 }
 0x3e6   : > { %v7484_v53 = vrot.slane %v7483_v50, 2  ;;  %v7491_v55 = vadd.f32 %v7490_v52, %v7489_v49 }
 0x3e8   : > { %v7485_v42 = vadd.f32 %v7484_v53, %v7483_v50  ;;  %v7492_v56 = vrot.slane %v7491_v55, 2 }
 0x3ea   : > { %v7486_v58 = vrot.slane %v7485_v42, 1  ;;  %v7493_v59 = vadd.f32 %v7492_v56, %v7491_v55 }
 0x3ec   : > { %v7487_v60 = vadd.f32 %v7486_v58, %v7485_v42  ;;  %v7494_v61 = vrot.slane %v7493_v59, 1 }
 0x3ee   : > { %v7488_v63 = vadd.f32 %v7487_v60, %v6585_v11  ;;  %v7495_v0 = vadd.f32 %v7494_v61, %v7493_v59 }
 0x3f0   : > { %v7496_v2 = vadd.f32 %v7495_v0, %v6593_v13  ;;  %7497 = vst [vmem:[%s269_s10] sm:$0x1] %v7488_v63 }
 0x3f2   : > { %7498 = vst [vmem:[%s272_s12] sm:$0x1] %v7496_v2 }
 0x3f3 PF: > { %s16_s18 = sadd.s32 1, %s11086_s18  }
 0x3f4   : > { %p13_p5 = scmp.ge.s32.totalorder %s16_s18, 4  }
 0x3f6   :  { %15 = sbr.rel (!%p13_p5) target bundleno = 1 (0x1), region = 112 }

</bundles_post_ra>
